<compile_context>
chip_gen: v7x
topology: tpu7x:2x2x1
jax: 0.10.0
libtpu: 0.0.40
codegen_flags: <defaults>
</compile_context>

<pallas_src>
import functools

import jax
import jax.numpy as jnp
from jax import lax
from jax.experimental import pallas as pl
from jax.experimental.pallas import tpu as pltpu

LANE = 128
F32 = jnp.float32
BF16 = jnp.bfloat16


@functools.lru_cache(maxsize=None)
def _budgets():
    """(vmem_limit_bytes, row_tile_cap) derived from the local TPU generation."""
    try:
        cap = int(pltpu.get_tpu_info().vmem_capacity_bytes)
    except Exception:  # unknown / emulator: fall back to v7x-safe numbers
        cap = 64 * 1024 * 1024
    vmem_limit = max(32 * 1024 * 1024,
                     min(cap - 16 * 1024 * 1024, 96 * 1024 * 1024))
    # 2048-row tiles only where VMEM allows it (v5e/v6e: 128 MiB; v7x: 64 MiB).
    row_cap = 2048 if cap >= 96 * 1024 * 1024 else 1024
    return vmem_limit, row_cap


def _round_up(x, m):
    return (x + m - 1) // m * m


def _pick_tile(dim, cap, mult):
    """Largest tile <= cap that divides `dim` and is a multiple of `mult`
    (or the full dim when dim <= cap).
    # TODO(synk): for arbitrary (non-factoring) dims a cdiv grid + masking
    # would be more robust than requiring exact divisibility."""
    if dim <= cap:
        return dim
    t = (cap // mult) * mult
    while t >= mult:
        if dim % t == 0:
            return t
        t -= mult
    return dim


# ----------------------------------------------------------------------------
# Pallas kernel: fused [BN+LReLU prologue] -> GEMM -> [bias/act + stats] epilogue
# ----------------------------------------------------------------------------
def _gemm_kernel(*refs, act, with_prologue, with_stats, single_k):
    """One (tm, tn) output tile of the im2col GEMM.

    Ref order: [scale_k, shift_k]?, a, w, b, y, [stats]?, [acc]?
      scale_k/shift_k: (1, tk) f32  folded BN of the *previous* layer
      a: (tm, tk) bf16   w: (tk, tn) bf16   b: (1, tn) f32
      y: (tm, tn) bf16   stats: (1, 2, tn) f32 per-row-tile (sum, sumsq)
      acc: (tm, tn) f32 VMEM scratch (only when the K axis is tiled)
    """
    i = 0
    if with_prologue:
        scale_ref, shift_ref = refs[0], refs[1]
        i = 2
    a_ref, w_ref, b_ref, y_ref = refs[i], refs[i + 1], refs[i + 2], refs[i + 3]
    i += 4
    stats_ref = refs[i] if with_stats else None
    if with_stats:
        i += 1
    acc_ref = None if single_k else refs[i]

    a = a_ref[...]
    if with_prologue:
        # BN affine + LeakyReLU of the previous layer, applied to the raw
        # (pre-BN) bf16 patches.  VPU work hidden under the MXU-bound dot.
        af = a.astype(jnp.float32) * scale_ref[...] + shift_ref[...]
        a = jnp.where(af > 0, af, 0.2 * af).astype(BF16)

    part = jnp.dot(a, w_ref[...], preferred_element_type=jnp.float32)

    def epilogue(acc):
        y = acc + b_ref[...]
        if act == "lrelu":
            y = jnp.where(y > 0, y, 0.2 * y)
        y_ref[...] = y.astype(y_ref.dtype)
        if with_stats:
            # NOTE: zero-padded output channels (Cout..Cp) contribute zeros
            # here on purpose; they are sliced off before the stats are used.
            s = jnp.sum(y, axis=0, keepdims=True)
            sq = jnp.sum(y * y, axis=0, keepdims=True)
            stats_ref[...] = jnp.concatenate([s, sq], axis=0)[None, :, :]

    if single_k:
        epilogue(part)
    else:
        k = pl.program_id(2)

        @pl.when(k == 0)
        def _():
            acc_ref[...] = jnp.zeros_like(acc_ref)

        acc_ref[...] += part

        @pl.when(k == pl.num_programs(2) - 1)
        def _():
            epilogue(acc_ref[...])


# ----------------------------------------------------------------------------
# Pallas wrapper
# ----------------------------------------------------------------------------
def conv_gemm(patches, w_r, bias, *, act, with_stats, prologue):
    """patches: (M, K) bf16; w_r: (K, Cp) bf16; bias: (1, Cp) f32;
    prologue: None or ((1, K) f32 scale_k, (1, K) f32 shift_k)."""
    M, K = patches.shape
    Cp = w_r.shape[1]
    vmem_limit, row_cap = _budgets()
    tm = _pick_tile(M, row_cap, 16)      # bf16 rows -> full (16,128) vreg tiles
    tk = _pick_tile(K, 2048, LANE)
    tn = _pick_tile(Cp, 512, LANE)       # lane-dense Cout column blocks
    nm, nn, nk = M // tm, Cp // tn, K // tk
    single_k = nk == 1

    in_specs, args = [], []
    if prologue is not None:
        in_specs += [pl.BlockSpec((1, tk), lambda i, j, k: (0, k)),
                     pl.BlockSpec((1, tk), lambda i, j, k: (0, k))]
        args += [prologue[0], prologue[1]]
    in_specs += [
        pl.BlockSpec((tm, tk), lambda i, j, k: (i, k)),
        # TODO(synk): when nk > 1 the weight is re-streamed once per row tile;
        # a constant-index full-K spec + in-kernel pl.ds slice would keep it
        # VMEM-resident (not needed at demo sizes where nk == 1).
        pl.BlockSpec((tk, tn), lambda i, j, k: (k, j)),
        pl.BlockSpec((1, tn), lambda i, j, k: (0, j)),
    ]
    args += [patches, w_r, bias]

    out_shape = [jax.ShapeDtypeStruct((M, Cp), BF16)]
    out_specs = [pl.BlockSpec((tm, tn), lambda i, j, k: (i, j))]
    if with_stats:
        out_shape.append(jax.ShapeDtypeStruct((nm, 2, Cp), jnp.float32))
        out_specs.append(pl.BlockSpec((1, 2, tn), lambda i, j, k: (i, 0, j)))

    scratch = [] if single_k else [pltpu.VMEM((tm, tn), jnp.float32)]

    cost = pl.CostEstimate(
        flops=2 * M * K * Cp,
        transcendentals=0,
        bytes_accessed=(M * K * 2 + K * Cp * 2 + Cp * 4 + M * Cp * 2
                        + (2 * K * 4 if prologue is not None else 0)
                        + (nm * 2 * Cp * 4 if with_stats else 0)),
    )

    outs = pl.pallas_call(
        functools.partial(_gemm_kernel, act=act,
                          with_prologue=prologue is not None,
                          with_stats=with_stats, single_k=single_k),
        out_shape=tuple(out_shape),
        grid_spec=pltpu.PrefetchScalarGridSpec(
            num_scalar_prefetch=0,
            grid=(nm, nn, nk),
            in_specs=in_specs,
            out_specs=tuple(out_specs),
            scratch_shapes=scratch),
        compiler_params=pltpu.CompilerParams(
            dimension_semantics=("parallel", "parallel", "arbitrary"),
            vmem_limit_bytes=vmem_limit),
        cost_estimate=cost,
    )(*args)

    if with_stats:
        return outs[0], outs[1]
    return outs[0], None


# ----------------------------------------------------------------------------
# Glue: NHWC im2col (with optional per-channel neutral fill), weights, BN fold
# ----------------------------------------------------------------------------
def im2col_nhwc(x, k, stride, pad, fill=None):
    """x: (N, H, W, C) -> ((N*Ho*Wo, k*k*C), Ho, Wo), column order (kh, kw, C).
    `fill` (len C) replaces zero padding; used to fold BN into the consumer.
    # TODO(synk): fuse this gather into the GEMM via a kh*kw grid axis so the
    # patch matrix is never materialized in HBM."""
    if pad > 0:
        N, H, W, C = x.shape
        if fill is None:
            x = jnp.pad(x, ((0, 0), (pad, pad), (pad, pad), (0, 0)))
        else:
            base = jnp.broadcast_to(fill.reshape(1, 1, 1, C).astype(x.dtype),
                                    (N, H + 2 * pad, W + 2 * pad, C))
            x = lax.dynamic_update_slice(base, x, (0, pad, pad, 0))
    N, Hp, Wp, C = x.shape
    Ho = (Hp - k) // stride + 1
    Wo = (Wp - k) // stride + 1
    cols = [x[:, ki:ki + stride * Ho:stride, kj:kj + stride * Wo:stride, :]
            for ki in range(k) for kj in range(k)]
    p = jnp.concatenate(cols, axis=-1)            # (N, Ho, Wo, k*k*C)
    return p.reshape(N * Ho * Wo, k * k * C), Ho, Wo


def _prep_weight(w, Cp):
    """(Cout, Cin, kh, kw) -> (kh*kw*Cin, Cp) bf16, Cout zero-padded to Cp."""
    Cout, Cin, kh, kw = w.shape
    wr = w.transpose(2, 3, 1, 0).reshape(kh * kw * Cin, Cout)
    return jnp.pad(wr, ((0, 0), (0, Cp - Cout))).astype(BF16)


def _prep_bias(b, Cp):
    return jnp.pad(b.astype(F32), (0, Cp - b.shape[0])).reshape(1, Cp)


def conv_layer(x_nhwc, w, b, stride, pad, *, act, with_stats, prologue):
    """One conv as im2col + Pallas GEMM.  `prologue` is the (scale_c, shift_c)
    of the *previous* layer's BatchNorm (+ LeakyReLU), applied inside the GEMM
    so that layer never writes post-BN activations to HBM."""
    N = x_nhwc.shape[0]
    Cout, Cin, kh, kw = w.shape
    Cp = _round_up(Cout, LANE)
    fill, pro = None, None
    if prologue is not None:
        scale_c, shift_c = prologue
        # Pad value the prologue maps to 0 (== zero-padding post-BN data).
        # TODO(synk): exact only for gamma != 0; the where() just avoids nan/inf.
        safe = jnp.where(scale_c != 0, scale_c, 1.0)
        fill = jnp.where(scale_c != 0, -shift_c / safe, 0.0)
        K = kh * kw * Cin
        pro = (jnp.tile(scale_c, kh * kw).reshape(1, K),
               jnp.tile(shift_c, kh * kw).reshape(1, K))
    patches, Ho, Wo = im2col_nhwc(x_nhwc, kh, stride, pad, fill=fill)
    y, stats = conv_gemm(patches.astype(BF16), _prep_weight(w, Cp),
                         _prep_bias(b, Cp), act=act, with_stats=with_stats,
                         prologue=pro)
    return y, stats, (N, Ho, Wo, Cout, Cp)


def bn_fold(stats, M, C, gamma, beta, eps=1e-5):
    """Reduce per-row-tile (sum, sumsq) partials and fold train-mode BN into a
    per-channel affine (scale, shift) of length C."""
    tot = jnp.sum(stats, axis=0)                  # (2, Cp)
    mean = tot[0, :C] / M
    # Single-pass biased variance (matches PyTorch train-mode normalize);
    # clamped against f32 cancellation for large M.
    var = jnp.maximum(tot[1, :C] / M - mean * mean, 0.0)
    scale = gamma * lax.rsqrt(var + eps)
    shift = beta - mean * scale
    return scale, shift


# ----------------------------------------------------------------------------
# Forward pass
# ----------------------------------------------------------------------------
def discriminator_forward(x, p):
    """x: (N, 1, 64, 64) float32 -> (N, 1, 1, 1) in (0, 1)."""
    N = x.shape[0]
    x = jnp.transpose(x, (0, 2, 3, 1)).astype(BF16)      # NHWC, bf16 internal

    # conv1 + LeakyReLU (activation fused into the GEMM epilogue)
    y, _, (N, Ho, Wo, C, Cp) = conv_layer(
        x, p["w1"], p["b1"], 2, 1, act="lrelu", with_stats=False, prologue=None)
    x = y[:, :C].reshape(N, Ho, Wo, C)
    prologue = None

    # conv2..conv4: raw conv + bias + fused BN stats.  The BN + LeakyReLU of
    # the previous BN layer is applied as the GEMM input prologue.
    for i in (2, 3, 4):
        y, stats, (N, Ho, Wo, C, Cp) = conv_layer(
            x, p[f"w{i}"], p[f"b{i}"], 2, 1, act="none", with_stats=True,
            prologue=prologue)
        M = N * Ho * Wo
        scale, shift = bn_fold(stats, M, C, p[f"g{i}"], p[f"be{i}"])
        x = y[:, :C].reshape(N, Ho, Wo, C)                # raw (pre-BN) bf16
        prologue = (scale, shift)

    # conv5 + sigmoid: BN4 + LeakyReLU on the tiny layer-4 tensor in XLA, then
    # a degenerate (N, K) x (K, 1) GEMM in plain XLA (MXU >90% idle otherwise).
    scale, shift = prologue
    x = x.astype(F32) * scale.reshape(1, 1, 1, -1) + shift.reshape(1, 1, 1, -1)
    x = jnp.where(x > 0, x, 0.2 * x).astype(BF16)
    patches, Ho, Wo = im2col_nhwc(x, 4, 1, 0)
    w5 = p["w5"].transpose(2, 3, 1, 0).reshape(-1, 1).astype(BF16)
    logit = jnp.dot(patches, w5, preferred_element_type=jnp.float32) + p["b5"]
    out = jax.nn.sigmoid(logit)
    return out.reshape(N, Ho, Wo, 1).transpose(0, 3, 1, 2)


# ----------------------------------------------------------------------------
# Pure-JAX reference (same bf16 matmul precision, f32 accumulation)
# ----------------------------------------------------------------------------
def ref_forward(x, p, eps=1e-5):
    def conv(x, w, b, stride, pad):
        y = lax.conv_general_dilated(
            x.astype(BF16), w.astype(BF16), (stride, stride),
            [(pad, pad), (pad, pad)],
            dimension_numbers=("NCHW", "OIHW", "NCHW"),
            preferred_element_type=jnp.float32)
        return y + b.reshape(1, -1, 1, 1)

    def bn(x, g, be):
        mean = x.mean(axis=(0, 2, 3), keepdims=True)
        var = x.var(axis=(0, 2, 3), keepdims=True)
        return (x - mean) * lax.rsqrt(var + eps) * g.reshape(1, -1, 1, 1) \
            + be.reshape(1, -1, 1, 1)

    lrelu = lambda z: jnp.where(z > 0, z, 0.2 * z)
    x = lrelu(conv(x, p["w1"], p["b1"], 2, 1))
    x = lrelu(bn(conv(x, p["w2"], p["b2"], 2, 1), p["g2"], p["be2"]))
    x = lrelu(bn(conv(x, p["w3"], p["b3"], 2, 1), p["g3"], p["be3"]))
    x = lrelu(bn(conv(x, p["w4"], p["b4"], 2, 1), p["g4"], p["be4"]))
    x = jax.nn.sigmoid(conv(x, p["w5"], p["b5"], 1, 0))
    return x


# ----------------------------------------------------------------------------
# Parameter init (deterministic, DCGAN-style normal(0, 0.02))
# ----------------------------------------------------------------------------
def init_params(key, inplanes=8):
    shapes = {
        "w1": (inplanes, 1, 4, 4),
        "w2": (inplanes * 2, inplanes, 4, 4),
        "w3": (inplanes * 4, inplanes * 2, 4, 4),
        "w4": (inplanes * 8, inplanes * 4, 4, 4),
        "w5": (1, inplanes * 8, 4, 4),
    }
    p = {}
    keys = jax.random.split(key, 10)
    for i, (name, shp) in enumerate(shapes.items()):
        p[name] = 0.02 * jax.random.normal(keys[i], shp, jnp.float32)
        p["b" + name[1:]] = 0.01 * jax.random.normal(keys[5 + i], (shp[0],), jnp.float32)
    for i, c in [(2, inplanes * 2), (3, inplanes * 4), (4, inplanes * 8)]:
        p[f"g{i}"] = jnp.ones((c,), jnp.float32)
        p[f"be{i}"] = jnp.zeros((c,), jnp.float32)
    return p


if __name__ == "__main__":
    key = jax.random.PRNGKey(0)
    kx, kp = jax.random.split(key)

    inplanes = 8          # small synthetic width (PyTorch default is 128)
    N, H, W = 2, 64, 64   # 64x64 input so conv5 (k=4, s=1, p=0) yields 1x1
    x = jax.random.normal(kx, (N, 1, H, W), jnp.float32)
    params = init_params(kp, inplanes)

    fwd = jax.jit(discriminator_forward)
    out = jax.block_until_ready(fwd(x, params))
    assert out.shape == (N, 1, 1, 1), out.shape

    ref = jax.block_until_ready(jax.jit(ref_forward)(x, params))
    assert jnp.allclose(out, ref, rtol=2e-2, atol=2e-2), (out, ref)

    print("KERNEL_OK")
</pallas_src>

<mosaic_0001>
module attributes {stable_mosaic.version = 11 : i64} {
  func.func @_gemm_kernel(%arg0: i32, %arg1: i32, %arg2: i32, %arg3: memref<1024x16xbf16, #tpu.memory_space<vmem>>, %arg4: memref<16x128xbf16, #tpu.memory_space<vmem>>, %arg5: memref<1x128xf32, #tpu.memory_space<vmem>>, %arg6: memref<1024x128xbf16, #tpu.memory_space<vmem>>) attributes {dimension_semantics = [#tpu.dimension_semantics<parallel>, #tpu.dimension_semantics<parallel>, #tpu.dimension_semantics<arbitrary>], iteration_bounds = array<i64: 2, 1, 1>, scalar_prefetch = 0 : i64, scratch_operands = 0 : i64, tpu.core_type = #tpu.core_type<tc>, window_params = [{transform_indices = @transform_0, window_bounds = array<i64: 1024, 16>}, {transform_indices = @transform_1, window_bounds = array<i64: 16, 128>}, {transform_indices = @transform_2, window_bounds = array<i64: 1, 128>}, {transform_indices = @transform_3, window_bounds = array<i64: 1024, 128>}]} {
    %c0 = arith.constant 0 : index
    %c0_0 = arith.constant 0 : index
    %0 = vector.load %arg3[%c0, %c0_0] : memref<1024x16xbf16, #tpu.memory_space<vmem>>, vector<1024x16xbf16>
    %c0_1 = arith.constant 0 : index
    %c0_2 = arith.constant 0 : index
    %1 = vector.load %arg4[%c0_1, %c0_2] : memref<16x128xbf16, #tpu.memory_space<vmem>>, vector<16x128xbf16>
    %cst = arith.constant dense<0.000000e+00> : vector<1024x128xf32>
    %2 = tpu.matmul %0, %1, %cst {dimension_numbers = #tpu.dot_dimension_numbers<[1], [0], [0], [1], [0, 0, 1, 1], [], []>} : vector<1024x16xbf16>, vector<16x128xbf16>, vector<1024x128xf32> -> vector<1024x128xf32>
    %c0_3 = arith.constant 0 : index
    %c0_4 = arith.constant 0 : index
    %3 = vector.load %arg5[%c0_3, %c0_4] : memref<1x128xf32, #tpu.memory_space<vmem>>, vector<1x128xf32>
    %4 = vector.broadcast %3 : vector<1x128xf32> to vector<1024x128xf32>
    %5 = arith.addf %2, %4 : vector<1024x128xf32>
    %cst_5 = arith.constant 0.000000e+00 : f32
    %6 = vector.broadcast %cst_5 : f32 to vector<1024x128xf32>
    %7 = arith.cmpf ogt, %5, %6 : vector<1024x128xf32>
    %cst_6 = arith.constant 2.000000e-01 : f32
    %8 = vector.broadcast %cst_6 : f32 to vector<1024x128xf32>
    %9 = arith.mulf %8, %5 : vector<1024x128xf32>
    %10 = arith.select %7, %5, %9 : vector<1024x128xi1>, vector<1024x128xf32>
    %11 = arith.truncf %10 : vector<1024x128xf32> to vector<1024x128xbf16>
    %c0_7 = arith.constant 0 : index
    %c0_8 = arith.constant 0 : index
    %12 = vector.load %arg6[%c0_7, %c0_8] : memref<1024x128xbf16, #tpu.memory_space<vmem>>, vector<1024x128xbf16>
    tpu.vector_store %arg6[%c0_7, %c0_8], %11 {strides = array<i32>} : memref<1024x128xbf16, #tpu.memory_space<vmem>>, vector<1024x128xbf16>,
    return
  }
  func.func @transform_0(%arg0: i32, %arg1: i32, %arg2: i32) -> (i32, i32) {
    %c0_i32 = arith.constant 0 : i32
    return %arg0, %arg2 : i32, i32
  }
  func.func @transform_1(%arg0: i32, %arg1: i32, %arg2: i32) -> (i32, i32) {
    %c0_i32 = arith.constant 0 : i32
    return %arg2, %arg1 : i32, i32
  }
  func.func @transform_2(%arg0: i32, %arg1: i32, %arg2: i32) -> (i32, i32) {
    %c0_i32 = arith.constant 0 : i32
    %c0_i32_0 = arith.constant 0 : i32
    return %c0_i32, %arg1 : i32, i32
  }
  func.func @transform_3(%arg0: i32, %arg1: i32, %arg2: i32) -> (i32, i32) {
    %c0_i32 = arith.constant 0 : i32
    return %arg0, %arg1 : i32, i32
  }
}

module attributes {stable_mosaic.version = 11 : i64} {
  func.func @_gemm_kernel(%arg0: i32, %arg1: i32, %arg2: i32, %arg3: memref<512x128xbf16, #tpu.memory_space<vmem>>, %arg4: memref<128x128xbf16, #tpu.memory_space<vmem>>, %arg5: memref<1x128xf32, #tpu.memory_space<vmem>>, %arg6: memref<512x128xbf16, #tpu.memory_space<vmem>>, %arg7: memref<1x2x128xf32, #tpu.memory_space<vmem>>) attributes {dimension_semantics = [#tpu.dimension_semantics<parallel>, #tpu.dimension_semantics<parallel>, #tpu.dimension_semantics<arbitrary>], iteration_bounds = array<i64: 1, 1, 1>, scalar_prefetch = 0 : i64, scratch_operands = 0 : i64, tpu.core_type = #tpu.core_type<tc>, window_params = [{transform_indices = @transform_0, window_bounds = array<i64: 512, 128>}, {transform_indices = @transform_1, window_bounds = array<i64: 128, 128>}, {transform_indices = @transform_2, window_bounds = array<i64: 1, 128>}, {transform_indices = @transform_3, window_bounds = array<i64: 512, 128>}, {transform_indices = @transform_4, window_bounds = array<i64: 1, 2, 128>}]} {
    %c0 = arith.constant 0 : index
    %c0_0 = arith.constant 0 : index
    %0 = vector.load %arg3[%c0, %c0_0] : memref<512x128xbf16, #tpu.memory_space<vmem>>, vector<512x128xbf16>
    %c0_1 = arith.constant 0 : index
    %c0_2 = arith.constant 0 : index
    %1 = vector.load %arg4[%c0_1, %c0_2] : memref<128x128xbf16, #tpu.memory_space<vmem>>, vector<128x128xbf16>
    %cst = arith.constant dense<0.000000e+00> : vector<512x128xf32>
    %2 = tpu.matmul %0, %1, %cst {dimension_numbers = #tpu.dot_dimension_numbers<[1], [0], [0], [1], [0, 0, 1, 1], [], []>} : vector<512x128xbf16>, vector<128x128xbf16>, vector<512x128xf32> -> vector<512x128xf32>
    %c0_3 = arith.constant 0 : index
    %c0_4 = arith.constant 0 : index
    %3 = vector.load %arg5[%c0_3, %c0_4] : memref<1x128xf32, #tpu.memory_space<vmem>>, vector<1x128xf32>
    %4 = vector.broadcast %3 : vector<1x128xf32> to vector<512x128xf32>
    %5 = arith.addf %2, %4 : vector<512x128xf32>
    %6 = arith.truncf %5 : vector<512x128xf32> to vector<512x128xbf16>
    %c0_5 = arith.constant 0 : index
    %c0_6 = arith.constant 0 : index
    %7 = vector.load %arg6[%c0_5, %c0_6] : memref<512x128xbf16, #tpu.memory_space<vmem>>, vector<512x128xbf16>
    tpu.vector_store %arg6[%c0_5, %c0_6], %6 {strides = array<i32>} : memref<512x128xbf16, #tpu.memory_space<vmem>>, vector<512x128xbf16>,
    %cst_7 = arith.constant dense<0.000000e+00> : vector<128xf32>
    %8 = vector.multi_reduction <add>, %5, %cst_7 [0] : vector<512x128xf32> to vector<128xf32>
    %9 = vector.shape_cast %8 : vector<128xf32> to vector<1x128xf32>
    %10 = arith.mulf %5, %5 : vector<512x128xf32>
    %cst_8 = arith.constant dense<0.000000e+00> : vector<128xf32>
    %11 = vector.multi_reduction <add>, %10, %cst_8 [0] : vector<512x128xf32> to vector<128xf32>
    %12 = vector.shape_cast %11 : vector<128xf32> to vector<1x128xf32>
    %13 = tpu.concatenate %9, %12 in 0 : vector<1x128xf32>, vector<1x128xf32> -> vector<2x128xf32>
    %14 = vector.shape_cast %13 : vector<2x128xf32> to vector<1x2x128xf32>
    %c0_9 = arith.constant 0 : index
    %c0_10 = arith.constant 0 : index
    %c0_11 = arith.constant 0 : index
    %15 = vector.load %arg7[%c0_9, %c0_10, %c0_11] : memref<1x2x128xf32, #tpu.memory_space<vmem>>, vector<1x2x128xf32>
    tpu.vector_store %arg7[%c0_9, %c0_10, %c0_11], %14 {strides = array<i32>} : memref<1x2x128xf32, #tpu.memory_space<vmem>>, vector<1x2x128xf32>,
    return
  }
  func.func @transform_0(%arg0: i32, %arg1: i32, %arg2: i32) -> (i32, i32) {
    %c0_i32 = arith.constant 0 : i32
    return %arg0, %arg2 : i32, i32
  }
  func.func @transform_1(%arg0: i32, %arg1: i32, %arg2: i32) -> (i32, i32) {
    %c0_i32 = arith.constant 0 : i32
    return %arg2, %arg1 : i32, i32
  }
  func.func @transform_2(%arg0: i32, %arg1: i32, %arg2: i32) -> (i32, i32) {
    %c0_i32 = arith.constant 0 : i32
    %c0_i32_0 = arith.constant 0 : i32
    return %c0_i32, %arg1 : i32, i32
  }
  func.func @transform_3(%arg0: i32, %arg1: i32, %arg2: i32) -> (i32, i32) {
    %c0_i32 = arith.constant 0 : i32
    return %arg0, %arg1 : i32, i32
  }
  func.func @transform_4(%arg0: i32, %arg1: i32, %arg2: i32) -> (i32, i32, i32) {
    %c0_i32 = arith.constant 0 : i32
    %c0_i32_0 = arith.constant 0 : i32
    return %arg0, %c0_i32, %arg1 : i32, i32, i32
  }
}

module attributes {stable_mosaic.version = 11 : i64} {
  func.func @_gemm_kernel(%arg0: i32, %arg1: i32, %arg2: i32, %arg3: memref<1x256xf32, #tpu.memory_space<vmem>>, %arg4: memref<1x256xf32, #tpu.memory_space<vmem>>, %arg5: memref<128x256xbf16, #tpu.memory_space<vmem>>, %arg6: memref<256x128xbf16, #tpu.memory_space<vmem>>, %arg7: memref<1x128xf32, #tpu.memory_space<vmem>>, %arg8: memref<128x128xbf16, #tpu.memory_space<vmem>>, %arg9: memref<1x2x128xf32, #tpu.memory_space<vmem>>) attributes {dimension_semantics = [#tpu.dimension_semantics<parallel>, #tpu.dimension_semantics<parallel>, #tpu.dimension_semantics<arbitrary>], iteration_bounds = array<i64: 1, 1, 1>, scalar_prefetch = 0 : i64, scratch_operands = 0 : i64, tpu.core_type = #tpu.core_type<tc>, window_params = [{transform_indices = @transform_0, window_bounds = array<i64: 1, 256>}, {transform_indices = @transform_1, window_bounds = array<i64: 1, 256>}, {transform_indices = @transform_2, window_bounds = array<i64: 128, 256>}, {transform_indices = @transform_3, window_bounds = array<i64: 256, 128>}, {transform_indices = @transform_4, window_bounds = array<i64: 1, 128>}, {transform_indices = @transform_5, window_bounds = array<i64: 128, 128>}, {transform_indices = @transform_6, window_bounds = array<i64: 1, 2, 128>}]} {
    %c0 = arith.constant 0 : index
    %c0_0 = arith.constant 0 : index
    %0 = vector.load %arg5[%c0, %c0_0] : memref<128x256xbf16, #tpu.memory_space<vmem>>, vector<128x256xbf16>
    %1 = arith.extf %0 : vector<128x256xbf16> to vector<128x256xf32>
    %c0_1 = arith.constant 0 : index
    %c0_2 = arith.constant 0 : index
    %2 = vector.load %arg3[%c0_1, %c0_2] : memref<1x256xf32, #tpu.memory_space<vmem>>, vector<1x256xf32>
    %3 = vector.broadcast %2 : vector<1x256xf32> to vector<128x256xf32>
    %4 = arith.mulf %1, %3 : vector<128x256xf32>
    %c0_3 = arith.constant 0 : index
    %c0_4 = arith.constant 0 : index
    %5 = vector.load %arg4[%c0_3, %c0_4] : memref<1x256xf32, #tpu.memory_space<vmem>>, vector<1x256xf32>
    %6 = vector.broadcast %5 : vector<1x256xf32> to vector<128x256xf32>
    %7 = arith.addf %4, %6 : vector<128x256xf32>
    %cst = arith.constant 0.000000e+00 : f32
    %8 = vector.broadcast %cst : f32 to vector<128x256xf32>
    %9 = arith.cmpf ogt, %7, %8 : vector<128x256xf32>
    %cst_5 = arith.constant 2.000000e-01 : f32
    %10 = vector.broadcast %cst_5 : f32 to vector<128x256xf32>
    %11 = arith.mulf %10, %7 : vector<128x256xf32>
    %12 = arith.select %9, %7, %11 : vector<128x256xi1>, vector<128x256xf32>
    %13 = arith.truncf %12 : vector<128x256xf32> to vector<128x256xbf16>
    %c0_6 = arith.constant 0 : index
    %c0_7 = arith.constant 0 : index
    %14 = vector.load %arg6[%c0_6, %c0_7] : memref<256x128xbf16, #tpu.memory_space<vmem>>, vector<256x128xbf16>
    %cst_8 = arith.constant dense<0.000000e+00> : vector<128x128xf32>
    %15 = tpu.matmul %13, %14, %cst_8 {dimension_numbers = #tpu.dot_dimension_numbers<[1], [0], [0], [1], [0, 0, 1, 1], [], []>} : vector<128x256xbf16>, vector<256x128xbf16>, vector<128x128xf32> -> vector<128x128xf32>
    %c0_9 = arith.constant 0 : index
    %c0_10 = arith.constant 0 : index
    %16 = vector.load %arg7[%c0_9, %c0_10] : memref<1x128xf32, #tpu.memory_space<vmem>>, vector<1x128xf32>
    %17 = vector.broadcast %16 : vector<1x128xf32> to vector<128x128xf32>
    %18 = arith.addf %15, %17 : vector<128x128xf32>
    %19 = arith.truncf %18 : vector<128x128xf32> to vector<128x128xbf16>
    %c0_11 = arith.constant 0 : index
    %c0_12 = arith.constant 0 : index
    %20 = vector.load %arg8[%c0_11, %c0_12] : memref<128x128xbf16, #tpu.memory_space<vmem>>, vector<128x128xbf16>
    tpu.vector_store %arg8[%c0_11, %c0_12], %19 {strides = array<i32>} : memref<128x128xbf16, #tpu.memory_space<vmem>>, vector<128x128xbf16>,
    %cst_13 = arith.constant dense<0.000000e+00> : vector<128xf32>
    %21 = vector.multi_reduction <add>, %18, %cst_13 [0] : vector<128x128xf32> to vector<128xf32>
    %22 = vector.shape_cast %21 : vector<128xf32> to vector<1x128xf32>
    %23 = arith.mulf %18, %18 : vector<128x128xf32>
    %cst_14 = arith.constant dense<0.000000e+00> : vector<128xf32>
    %24 = vector.multi_reduction <add>, %23, %cst_14 [0] : vector<128x128xf32> to vector<128xf32>
    %25 = vector.shape_cast %24 : vector<128xf32> to vector<1x128xf32>
    %26 = tpu.concatenate %22, %25 in 0 : vector<1x128xf32>, vector<1x128xf32> -> vector<2x128xf32>
    %27 = vector.shape_cast %26 : vector<2x128xf32> to vector<1x2x128xf32>
    %c0_15 = arith.constant 0 : index
    %c0_16 = arith.constant 0 : index
    %c0_17 = arith.constant 0 : index
    %28 = vector.load %arg9[%c0_15, %c0_16, %c0_17] : memref<1x2x128xf32, #tpu.memory_space<vmem>>, vector<1x2x128xf32>
    tpu.vector_store %arg9[%c0_15, %c0_16, %c0_17], %27 {strides = array<i32>} : memref<1x2x128xf32, #tpu.memory_space<vmem>>, vector<1x2x128xf32>,
    return
  }
  func.func @transform_0(%arg0: i32, %arg1: i32, %arg2: i32) -> (i32, i32) {
    %c0_i32 = arith.constant 0 : i32
    %c0_i32_0 = arith.constant 0 : i32
    return %c0_i32, %arg2 : i32, i32
  }
  func.func @transform_1(%arg0: i32, %arg1: i32, %arg2: i32) -> (i32, i32) {
    %c0_i32 = arith.constant 0 : i32
    %c0_i32_0 = arith.constant 0 : i32
    return %c0_i32, %arg2 : i32, i32
  }
  func.func @transform_2(%arg0: i32, %arg1: i32, %arg2: i32) -> (i32, i32) {
    %c0_i32 = arith.constant 0 : i32
    return %arg0, %arg2 : i32, i32
  }
  func.func @transform_3(%arg0: i32, %arg1: i32, %arg2: i32) -> (i32, i32) {
    %c0_i32 = arith.constant 0 : i32
    return %arg2, %arg1 : i32, i32
  }
  func.func @transform_4(%arg0: i32, %arg1: i32, %arg2: i32) -> (i32, i32) {
    %c0_i32 = arith.constant 0 : i32
    %c0_i32_0 = arith.constant 0 : i32
    return %c0_i32, %arg1 : i32, i32
  }
  func.func @transform_5(%arg0: i32, %arg1: i32, %arg2: i32) -> (i32, i32) {
    %c0_i32 = arith.constant 0 : i32
    return %arg0, %arg1 : i32, i32
  }
  func.func @transform_6(%arg0: i32, %arg1: i32, %arg2: i32) -> (i32, i32, i32) {
    %c0_i32 = arith.constant 0 : i32
    %c0_i32_0 = arith.constant 0 : i32
    return %arg0, %c0_i32, %arg1 : i32, i32, i32
  }
}

module attributes {stable_mosaic.version = 11 : i64} {
  func.func @_gemm_kernel(%arg0: i32, %arg1: i32, %arg2: i32, %arg3: memref<1x512xf32, #tpu.memory_space<vmem>>, %arg4: memref<1x512xf32, #tpu.memory_space<vmem>>, %arg5: memref<32x512xbf16, #tpu.memory_space<vmem>>, %arg6: memref<512x128xbf16, #tpu.memory_space<vmem>>, %arg7: memref<1x128xf32, #tpu.memory_space<vmem>>, %arg8: memref<32x128xbf16, #tpu.memory_space<vmem>>, %arg9: memref<1x2x128xf32, #tpu.memory_space<vmem>>) attributes {dimension_semantics = [#tpu.dimension_semantics<parallel>, #tpu.dimension_semantics<parallel>, #tpu.dimension_semantics<arbitrary>], iteration_bounds = array<i64: 1, 1, 1>, scalar_prefetch = 0 : i64, scratch_operands = 0 : i64, tpu.core_type = #tpu.core_type<tc>, window_params = [{transform_indices = @transform_0, window_bounds = array<i64: 1, 512>}, {transform_indices = @transform_1, window_bounds = array<i64: 1, 512>}, {transform_indices = @transform_2, window_bounds = array<i64: 32, 512>}, {transform_indices = @transform_3, window_bounds = array<i64: 512, 128>}, {transform_indices = @transform_4, window_bounds = array<i64: 1, 128>}, {transform_indices = @transform_5, window_bounds = array<i64: 32, 128>}, {transform_indices = @transform_6, window_bounds = array<i64: 1, 2, 128>}]} {
    %c0 = arith.constant 0 : index
    %c0_0 = arith.constant 0 : index
    %0 = vector.load %arg5[%c0, %c0_0] : memref<32x512xbf16, #tpu.memory_space<vmem>>, vector<32x512xbf16>
    %1 = arith.extf %0 : vector<32x512xbf16> to vector<32x512xf32>
    %c0_1 = arith.constant 0 : index
    %c0_2 = arith.constant 0 : index
    %2 = vector.load %arg3[%c0_1, %c0_2] : memref<1x512xf32, #tpu.memory_space<vmem>>, vector<1x512xf32>
    %3 = vector.broadcast %2 : vector<1x512xf32> to vector<32x512xf32>
    %4 = arith.mulf %1, %3 : vector<32x512xf32>
    %c0_3 = arith.constant 0 : index
    %c0_4 = arith.constant 0 : index
    %5 = vector.load %arg4[%c0_3, %c0_4] : memref<1x512xf32, #tpu.memory_space<vmem>>, vector<1x512xf32>
    %6 = vector.broadcast %5 : vector<1x512xf32> to vector<32x512xf32>
    %7 = arith.addf %4, %6 : vector<32x512xf32>
    %cst = arith.constant 0.000000e+00 : f32
    %8 = vector.broadcast %cst : f32 to vector<32x512xf32>
    %9 = arith.cmpf ogt, %7, %8 : vector<32x512xf32>
    %cst_5 = arith.constant 2.000000e-01 : f32
    %10 = vector.broadcast %cst_5 : f32 to vector<32x512xf32>
    %11 = arith.mulf %10, %7 : vector<32x512xf32>
    %12 = arith.select %9, %7, %11 : vector<32x512xi1>, vector<32x512xf32>
    %13 = arith.truncf %12 : vector<32x512xf32> to vector<32x512xbf16>
    %c0_6 = arith.constant 0 : index
    %c0_7 = arith.constant 0 : index
    %14 = vector.load %arg6[%c0_6, %c0_7] : memref<512x128xbf16, #tpu.memory_space<vmem>>, vector<512x128xbf16>
    %cst_8 = arith.constant dense<0.000000e+00> : vector<32x128xf32>
    %15 = tpu.matmul %13, %14, %cst_8 {dimension_numbers = #tpu.dot_dimension_numbers<[1], [0], [0], [1], [0, 0, 1, 1], [], []>} : vector<32x512xbf16>, vector<512x128xbf16>, vector<32x128xf32> -> vector<32x128xf32>
    %c0_9 = arith.constant 0 : index
    %c0_10 = arith.constant 0 : index
    %16 = vector.load %arg7[%c0_9, %c0_10] : memref<1x128xf32, #tpu.memory_space<vmem>>, vector<1x128xf32>
    %17 = vector.broadcast %16 : vector<1x128xf32> to vector<32x128xf32>
    %18 = arith.addf %15, %17 : vector<32x128xf32>
    %19 = arith.truncf %18 : vector<32x128xf32> to vector<32x128xbf16>
    %c0_11 = arith.constant 0 : index
    %c0_12 = arith.constant 0 : index
    %20 = vector.load %arg8[%c0_11, %c0_12] : memref<32x128xbf16, #tpu.memory_space<vmem>>, vector<32x128xbf16>
    tpu.vector_store %arg8[%c0_11, %c0_12], %19 {strides = array<i32>} : memref<32x128xbf16, #tpu.memory_space<vmem>>, vector<32x128xbf16>,
    %cst_13 = arith.constant dense<0.000000e+00> : vector<128xf32>
    %21 = vector.multi_reduction <add>, %18, %cst_13 [0] : vector<32x128xf32> to vector<128xf32>
    %22 = vector.shape_cast %21 : vector<128xf32> to vector<1x128xf32>
    %23 = arith.mulf %18, %18 : vector<32x128xf32>
    %cst_14 = arith.constant dense<0.000000e+00> : vector<128xf32>
    %24 = vector.multi_reduction <add>, %23, %cst_14 [0] : vector<32x128xf32> to vector<128xf32>
    %25 = vector.shape_cast %24 : vector<128xf32> to vector<1x128xf32>
    %26 = tpu.concatenate %22, %25 in 0 : vector<1x128xf32>, vector<1x128xf32> -> vector<2x128xf32>
    %27 = vector.shape_cast %26 : vector<2x128xf32> to vector<1x2x128xf32>
    %c0_15 = arith.constant 0 : index
    %c0_16 = arith.constant 0 : index
    %c0_17 = arith.constant 0 : index
    %28 = vector.load %arg9[%c0_15, %c0_16, %c0_17] : memref<1x2x128xf32, #tpu.memory_space<vmem>>, vector<1x2x128xf32>
    tpu.vector_store %arg9[%c0_15, %c0_16, %c0_17], %27 {strides = array<i32>} : memref<1x2x128xf32, #tpu.memory_space<vmem>>, vector<1x2x128xf32>,
    return
  }
  func.func @transform_0(%arg0: i32, %arg1: i32, %arg2: i32) -> (i32, i32) {
    %c0_i32 = arith.constant 0 : i32
    %c0_i32_0 = arith.constant 0 : i32
    return %c0_i32, %arg2 : i32, i32
  }
  func.func @transform_1(%arg0: i32, %arg1: i32, %arg2: i32) -> (i32, i32) {
    %c0_i32 = arith.constant 0 : i32
    %c0_i32_0 = arith.constant 0 : i32
    return %c0_i32, %arg2 : i32, i32
  }
  func.func @transform_2(%arg0: i32, %arg1: i32, %arg2: i32) -> (i32, i32) {
    %c0_i32 = arith.constant 0 : i32
    return %arg0, %arg2 : i32, i32
  }
  func.func @transform_3(%arg0: i32, %arg1: i32, %arg2: i32) -> (i32, i32) {
    %c0_i32 = arith.constant 0 : i32
    return %arg2, %arg1 : i32, i32
  }
  func.func @transform_4(%arg0: i32, %arg1: i32, %arg2: i32) -> (i32, i32) {
    %c0_i32 = arith.constant 0 : i32
    %c0_i32_0 = arith.constant 0 : i32
    return %c0_i32, %arg1 : i32, i32
  }
  func.func @transform_5(%arg0: i32, %arg1: i32, %arg2: i32) -> (i32, i32) {
    %c0_i32 = arith.constant 0 : i32
    return %arg0, %arg1 : i32, i32
  }
  func.func @transform_6(%arg0: i32, %arg1: i32, %arg2: i32) -> (i32, i32, i32) {
    %c0_i32 = arith.constant 0 : i32
    %c0_i32_0 = arith.constant 0 : i32
    return %arg0, %c0_i32, %arg1 : i32, i32, i32
  }
}

</mosaic_0001>

<bundles_post_ra>
// kernel: discriminator_forward.4
= control target key start
LH: loop header
LB: loop body
LE: loop exit
PB: predicated region body
PF: predicated region fallthrough
CT: control target
= control target key end

     0   :  { %s3709_s12 = smov 0   ;;  %s3711_s13 = smov 0   ;;  %s4240_s0 = inlined_call_operand.vmem [shape: bf16[2048,16], index: 0, kind: input, shape index: {}]   ;;  %s4241_s1 = inlined_call_operand.vmem [shape: bf16[16,128], index: 1, kind: input, shape index: {}]   ;;  %s4242_s2 = inlined_call_operand.vmem [shape: f32[1,128], index: 2, kind: input, shape index: {}]   ;;  %s4243_s3 = inlined_call_operand.vmem [shape: bf16[2048,128], index: 3, kind: output, shape index: {}]  }
   0x1   :  { %s3713_s14 = smov 0  }
   0x2 LB: > { %s32_s15 = sadd.s32 1, %s3683_s13  ;;  %p2602_p0 = scmp.ge.s32.totalorder %s3687_s14, 1  ;;  %s3687_s14 = sphi %s3713_s14, %s13_s14   ;;  %s3683_s13 = sphi %s3711_s13, %s4245_s13   ;;  %s3679_s12 = sphi %s3709_s12, %s4244_s12  }
   0x3   : > { %p34_p1 = scmp.ge.s32.totalorder %s32_s15, 2  ;;  %p188_p2 = scmp.lt.s32.totalorder %s3687_s14, 3 }
   0x5   : > { %s4247_s15 = smov (%p34_p1, %s32_s15), 0  ;;  %p189_p3 = pnand %p2602_p0, %p188_p2 }
   0x6   : > { %v3599_v0 = vld [vmem:[%s4241_s1] sm:$0xff] (!%p189_p3)   ;;  %s2603_s18 = sshll.u32 (!%p189_p3), %s3679_s12, 7  ;;  %vm723_vm0 = vcmask (!%p189_p3), 130048  }
   0x7   : > { %192 = sbr.rel (%p189_p3) target bundleno = 380 (0x17c), region = 32  ;;  %p230_p4 = scmp.lt.s32.totalorder (!%p189_p3), %s2603_s18, 255  ;;  %3443 = vmatprep.subr.bf16.mxu0 (!%p189_p3), %v3599_v0  ;;  %3573 = vmatprep.subr.bf16.mxu1 (!%p189_p3), %v3599_v0 }
   0x8   : > { %3444 = vmatpush3.bf16.msra.mxu0 (!%p189_p3), %v3599_v0  ;;  %3574 = vmatpush3.bf16.msra.mxu1 (!%p189_p3), %v3599_v0 }
   0xe   : > { %s4249_s18 = smov (!%p230_p4, %s2603_s18), 255 }
   0xf   : > { %s2604_s19 = sshll.u32 %s4249_s18, 2 }
  0x10   : > { %s3738_s22 = scalar_lea.vmem %s4240_s0, %s2604_s19  ;;  %s3886_s27 = scalar_lea.vmem %s4243_s3, %s2604_s19 }
  0x11   : > { %v3600_v1 = vld [vmem:[%s3738_s22] sm:$0xff]   ;;  %v3602_v3 = vld [vmem:[%s3738_s22 + $0x8] sm:$0xff]   ;;  %v3604_v5 = vld [vmem:[%s3738_s22 + $0x10] sm:$0xff]  }
  0x12   : > { %v3601_v2 = vld [vmem:[%s3738_s22 + $0x100] sm:$0xff]   ;;  %3445 = vmatprep.mubr.msk.bf16.mxu0 %vm723_vm0, %v3600_v1  ;;  %v3603_v4 = vld [vmem:[%s3738_s22 + $0x108] sm:$0xff]   ;;  %v3605_v6 = vld [vmem:[%s3738_s22 + $0x110] sm:$0xff]  }
  0x13   : > { %3509 = vmatprep.mubr.msk.bf16.mxu1 %vm723_vm0, %v3601_v2  ;;  %3446 = vmatmul.mubr.msk.bf16.vlgmr.msra.gmra.mrb[0].mxu0 %vm723_vm0, %v3602_v3  ;;  %v3606_v7 = vld [vmem:[%s3738_s22 + $0x18] sm:$0xff]   ;;  %v3608_v9 = vld [vmem:[%s3738_s22 + $0x20] sm:$0xff]   ;;  %v3610_v11 = vld [vmem:[%s3738_s22 + $0x28] sm:$0xff]  }
  0x14   : > { %3510 = vmatmul.mubr.msk.bf16.vlgmr.msra.gmra.mrb[0].mxu1 %vm723_vm0, %v3603_v4  ;;  %3449 = vmatprep.mubr.msk.bf16.mxu0 %vm723_vm0, %v3604_v5  ;;  %v3607_v8 = vld [vmem:[%s3738_s22 + $0x118] sm:$0xff]   ;;  %v3609_v10 = vld [vmem:[%s3738_s22 + $0x120] sm:$0xff]   ;;  %v3611_v12 = vld [vmem:[%s3738_s22 + $0x128] sm:$0xff]  }
  0x15   : > { %3513 = vmatprep.mubr.msk.bf16.mxu1 %vm723_vm0, %v3605_v6  ;;  %v3612_v13 = vld [vmem:[%s3738_s22 + $0x30] sm:$0xff]   ;;  %v3614_v15 = vld [vmem:[%s3738_s22 + $0x38] sm:$0xff]   ;;  %v3616_v17 = vld [vmem:[%s3738_s22 + $0x40] sm:$0xff]  }
  0x16   : > { %v3613_v14 = vld [vmem:[%s3738_s22 + $0x130] sm:$0xff]   ;;  %v3615_v16 = vld [vmem:[%s3738_s22 + $0x138] sm:$0xff]   ;;  %v3617_v18 = vld [vmem:[%s3738_s22 + $0x140] sm:$0xff]  }
  0x17   : > { %v3618_v19 = vld [vmem:[%s3738_s22 + $0x48] sm:$0xff]   ;;  %v3620_v21 = vld [vmem:[%s3738_s22 + $0x50] sm:$0xff]   ;;  %v3622_v23 = vld [vmem:[%s3738_s22 + $0x58] sm:$0xff]  }
  0x18   : > { %v3619_v20 = vld [vmem:[%s3738_s22 + $0x148] sm:$0xff]   ;;  %v3621_v22 = vld [vmem:[%s3738_s22 + $0x150] sm:$0xff]   ;;  %v3623_v24 = vld [vmem:[%s3738_s22 + $0x158] sm:$0xff]  }
  0x19   : > { %v3624_v25 = vld [vmem:[%s3738_s22 + $0x60] sm:$0xff]   ;;  %v3626_v27 = vld [vmem:[%s3738_s22 + $0x68] sm:$0xff]   ;;  %v3628_v29 = vld [vmem:[%s3738_s22 + $0x70] sm:$0xff]  }
  0x1a   : > { %v3625_v26 = vld [vmem:[%s3738_s22 + $0x160] sm:$0xff]   ;;  %v3627_v28 = vld [vmem:[%s3738_s22 + $0x168] sm:$0xff]   ;;  %v3629_v30 = vld [vmem:[%s3738_s22 + $0x170] sm:$0xff]  }
  0x1b   : > { %3450 = vmatmul.mubr.msk.bf16.gmra.mrb[4].mxu0 %vm723_vm0, %v3606_v7  ;;  %v3630_v31 = vld [vmem:[%s3738_s22 + $0x78] sm:$0xff]   ;;  %v3632_v33 = vld [vmem:[%s3738_s22 + $0x80] sm:$0xff]   ;;  %v3634_v35 = vld [vmem:[%s3738_s22 + $0x88] sm:$0xff]  }
  0x1c   : > { %3514 = vmatmul.mubr.msk.bf16.gmra.mrb[4].mxu1 %vm723_vm0, %v3607_v8  ;;  %3453 = vmatprep.mubr.msk.bf16.mxu0 %vm723_vm0, %v3608_v9  ;;  %v3631_v32 = vld [vmem:[%s3738_s22 + $0x178] sm:$0xff]   ;;  %v3633_v34 = vld [vmem:[%s3738_s22 + $0x180] sm:$0xff]   ;;  %v3635_v36 = vld [vmem:[%s3738_s22 + $0x188] sm:$0xff]  }
  0x1d   : > { %3517 = vmatprep.mubr.msk.bf16.mxu1 %vm723_vm0, %v3609_v10  ;;  %v3636_v37 = vld [vmem:[%s3738_s22 + $0x90] sm:$0xff]   ;;  %v3638_v39 = vld [vmem:[%s3738_s22 + $0x98] sm:$0xff]   ;;  %v3640_v41 = vld [vmem:[%s3738_s22 + $0xa0] sm:$0xff]  }
  0x1e   : > { %v3637_v38 = vld [vmem:[%s3738_s22 + $0x190] sm:$0xff]   ;;  %v3639_v40 = vld [vmem:[%s3738_s22 + $0x198] sm:$0xff]   ;;  %v3641_v42 = vld [vmem:[%s3738_s22 + $0x1a0] sm:$0xff]  }
  0x1f   : > { %v3642_v43 = vld [vmem:[%s3738_s22 + $0xa8] sm:$0xff]   ;;  %v3644_v45 = vld [vmem:[%s3738_s22 + $0xb0] sm:$0xff]   ;;  %v3646_v47 = vld [vmem:[%s3738_s22 + $0xb8] sm:$0xff]  }
  0x20   : > { %v3643_v44 = vld [vmem:[%s3738_s22 + $0x1a8] sm:$0xff]   ;;  %v3645_v46 = vld [vmem:[%s3738_s22 + $0x1b0] sm:$0xff]   ;;  %v3647_v48 = vld [vmem:[%s3738_s22 + $0x1b8] sm:$0xff]  }
  0x21   : > { %v3648_v49 = vld [vmem:[%s3738_s22 + $0xc0] sm:$0xff]   ;;  %v3650_v51 = vld [vmem:[%s3738_s22 + $0xc8] sm:$0xff]   ;;  %v3652_v53 = vld [vmem:[%s3738_s22 + $0xd0] sm:$0xff]  }
  0x22   : > { %v3649_v50 = vld [vmem:[%s3738_s22 + $0x1c0] sm:$0xff]   ;;  %v3651_v52 = vld [vmem:[%s3738_s22 + $0x1c8] sm:$0xff]   ;;  %v3653_v54 = vld [vmem:[%s3738_s22 + $0x1d0] sm:$0xff]  }
  0x23   : > { %3454 = vmatmul.mubr.msk.bf16.gmra.mrb[8].mxu0 %vm723_vm0, %v3610_v11  ;;  %v3654_v55 = vld [vmem:[%s3738_s22 + $0xd8] sm:$0xff]   ;;  %v3656_v57 = vld [vmem:[%s3738_s22 + $0xe0] sm:$0xff]   ;;  %v3658_v59 = vld [vmem:[%s3738_s22 + $0xe8] sm:$0xff]  }
  0x24   : > { %3518 = vmatmul.mubr.msk.bf16.gmra.mrb[8].mxu1 %vm723_vm0, %v3611_v12  ;;  %3457 = vmatprep.mubr.msk.bf16.mxu0 %vm723_vm0, %v3612_v13  ;;  %v3655_v56 = vld [vmem:[%s3738_s22 + $0x1d8] sm:$0xff]   ;;  %v3657_v58 = vld [vmem:[%s3738_s22 + $0x1e0] sm:$0xff]   ;;  %v3659_v60 = vld [vmem:[%s3738_s22 + $0x1e8] sm:$0xff]  }
  0x25   : > { %3521 = vmatprep.mubr.msk.bf16.mxu1 %vm723_vm0, %v3613_v14  ;;  %v3660_v61 = vld [vmem:[%s3738_s22 + $0xf0] sm:$0xff]   ;;  %v3662_v63 = vld [vmem:[%s3738_s22 + $0xf8] sm:$0xff]   ;;  %v3871_v1 = vld [vmem:[%s4242_s2] ss:$0 sm:$0xff] }
  0x26   : > { %v3661_v62 = vld [vmem:[%s3738_s22 + $0x1f0] sm:$0xff]   ;;  %v3663_v0 = vld [vmem:[%s3738_s22 + $0x1f8] sm:$0xff]  }
  0x2b   : > { %3458 = vmatmul.mubr.msk.bf16.gmra.mrb[12].mxu0 %vm723_vm0, %v3614_v15 }
  0x2c   : > { %3522 = vmatmul.mubr.msk.bf16.gmra.mrb[12].mxu1 %vm723_vm0, %v3615_v16  ;;  %3461 = vmatprep.mubr.msk.bf16.mxu0 %vm723_vm0, %v3616_v17 }
  0x2d   : > { %3525 = vmatprep.mubr.msk.bf16.mxu1 %vm723_vm0, %v3617_v18 }
  0x33   : > { %3462 = vmatmul.mubr.msk.bf16.gmra.mrb[16].mxu0 %vm723_vm0, %v3618_v19 }
  0x34   : > { %3526 = vmatmul.mubr.msk.bf16.gmra.mrb[16].mxu1 %vm723_vm0, %v3619_v20  ;;  %3465 = vmatprep.mubr.msk.bf16.mxu0 %vm723_vm0, %v3620_v21 }
  0x35   : > { %3529 = vmatprep.mubr.msk.bf16.mxu1 %vm723_vm0, %v3621_v22 }
  0x3b   : > { %3466 = vmatmul.mubr.msk.bf16.gmra.mrb[20].mxu0 %vm723_vm0, %v3622_v23 }
  0x3c   : > { %3530 = vmatmul.mubr.msk.bf16.gmra.mrb[20].mxu1 %vm723_vm0, %v3623_v24  ;;  %3469 = vmatprep.mubr.msk.bf16.mxu0 %vm723_vm0, %v3624_v25 }
  0x3d   : > { %3533 = vmatprep.mubr.msk.bf16.mxu1 %vm723_vm0, %v3625_v26 }
  0x43   : > { %3470 = vmatmul.mubr.msk.bf16.gmra.mrb[24].mxu0 %vm723_vm0, %v3626_v27 }
  0x44   : > { %3534 = vmatmul.mubr.msk.bf16.gmra.mrb[24].mxu1 %vm723_vm0, %v3627_v28  ;;  %3473 = vmatprep.mubr.msk.bf16.mxu0 %vm723_vm0, %v3628_v29 }
  0x45   : > { %3537 = vmatprep.mubr.msk.bf16.mxu1 %vm723_vm0, %v3629_v30 }
  0x4b   : > { %3474 = vmatmul.mubr.msk.bf16.gmra.mrb[28].mxu0 %vm723_vm0, %v3630_v31 }
  0x4c   : > { %3538 = vmatmul.mubr.msk.bf16.gmra.mrb[28].mxu1 %vm723_vm0, %v3631_v32  ;;  %3477 = vmatprep.mubr.msk.bf16.mxu0 %vm723_vm0, %v3632_v33 }
  0x4d   : > { %3541 = vmatprep.mubr.msk.bf16.mxu1 %vm723_vm0, %v3633_v34 }
  0x53   : > { %3478 = vmatmul.mubr.msk.bf16.gmra.mrb[32].mxu0 %vm723_vm0, %v3634_v35 }
  0x54   : > { %3542 = vmatmul.mubr.msk.bf16.gmra.mrb[32].mxu1 %vm723_vm0, %v3635_v36  ;;  %3481 = vmatprep.mubr.msk.bf16.mxu0 %vm723_vm0, %v3636_v37 }
  0x55   : > { %3545 = vmatprep.mubr.msk.bf16.mxu1 %vm723_vm0, %v3637_v38 }
  0x5b   : > { %3482 = vmatmul.mubr.msk.bf16.gmra.mrb[36].mxu0 %vm723_vm0, %v3638_v39 }
  0x5c   : > { %3546 = vmatmul.mubr.msk.bf16.gmra.mrb[36].mxu1 %vm723_vm0, %v3639_v40  ;;  %3485 = vmatprep.mubr.msk.bf16.mxu0 %vm723_vm0, %v3640_v41 }
  0x5d   : > { %3549 = vmatprep.mubr.msk.bf16.mxu1 %vm723_vm0, %v3641_v42 }
  0x63   : > { %3486 = vmatmul.mubr.msk.bf16.gmra.mrb[40].mxu0 %vm723_vm0, %v3642_v43 }
  0x64   : > { %3550 = vmatmul.mubr.msk.bf16.gmra.mrb[40].mxu1 %vm723_vm0, %v3643_v44  ;;  %3489 = vmatprep.mubr.msk.bf16.mxu0 %vm723_vm0, %v3644_v45 }
  0x65   : > { %3553 = vmatprep.mubr.msk.bf16.mxu1 %vm723_vm0, %v3645_v46 }
  0x6b   : > { %3490 = vmatmul.mubr.msk.bf16.gmra.mrb[44].mxu0 %vm723_vm0, %v3646_v47 }
  0x6c   : > { %3554 = vmatmul.mubr.msk.bf16.gmra.mrb[44].mxu1 %vm723_vm0, %v3647_v48  ;;  %3493 = vmatprep.mubr.msk.bf16.mxu0 %vm723_vm0, %v3648_v49 }
  0x6d   : > { %3557 = vmatprep.mubr.msk.bf16.mxu1 %vm723_vm0, %v3649_v50 }
  0x73   : > { %3494 = vmatmul.mubr.msk.bf16.gmra.mrb[48].mxu0 %vm723_vm0, %v3650_v51 }
  0x74   : > { %3558 = vmatmul.mubr.msk.bf16.gmra.mrb[48].mxu1 %vm723_vm0, %v3651_v52  ;;  %3497 = vmatprep.mubr.msk.bf16.mxu0 %vm723_vm0, %v3652_v53 }
  0x75   : > { %3561 = vmatprep.mubr.msk.bf16.mxu1 %vm723_vm0, %v3653_v54 }
  0x7b   : > { %3498 = vmatmul.mubr.msk.bf16.gmra.mrb[52].mxu0 %vm723_vm0, %v3654_v55 }
  0x7c   : > { %3562 = vmatmul.mubr.msk.bf16.gmra.mrb[52].mxu1 %vm723_vm0, %v3655_v56  ;;  %3501 = vmatprep.mubr.msk.bf16.mxu0 %vm723_vm0, %v3656_v57 }
  0x7d   : > { %3565 = vmatprep.mubr.msk.bf16.mxu1 %vm723_vm0, %v3657_v58 }
  0x83   : > { %3502 = vmatmul.mubr.msk.bf16.gmra.mrb[56].mxu0 %vm723_vm0, %v3658_v59 }
  0x84   : > { %3566 = vmatmul.mubr.msk.bf16.gmra.mrb[56].mxu1 %vm723_vm0, %v3659_v60  ;;  %3505 = vmatprep.mubr.msk.bf16.mxu0 %vm723_vm0, %v3660_v61 }
  0x85   : > { %3569 = vmatprep.mubr.msk.bf16.mxu1 %vm723_vm0, %v3661_v62 }
  0x8b   : > { %3506 = vmatmul.mubr.msk.bf16.gmra.mrb[60].mxu0 %vm723_vm0, %v3662_v63 }
  0x8c   : > { %3570 = vmatmul.mubr.msk.bf16.gmra.mrb[60].mxu1 %vm723_vm0, %v3663_v0 }
  0xe6   : > { %v3447_v2 = vpop.f32.mrb[0].mxu0 }
  0xe7   : > { %v959_v3 = vadd.f32 %v3447_v2, %v3871_v1  ;;  %v3511_v4 = vpop.f32.mrb[0].mxu1  ;;  %v950_v5 = vpop.f32.mrb[1].mxu0 }
  0xe8   : > { %v1215_v6 = vadd.f32 %v3511_v4, %v3871_v1  ;;  %v951_v7 = vadd.f32 %v3871_v1, %v950_v5  ;;  %v1206_v8 = vpop.f32.mrb[1].mxu1  ;;  %v3448_v9 = vpop.f32.mrb[2].mxu0 }
  0xe9   : > { %vm1463_vm1 = vcmp.gt.f32.partialorder %v959_v3, 0.0  ;;  %v1591_v10 = vmul.f32 0.2, %v959_v3  ;;  %v1207_v11 = vadd.f32 %v3871_v1, %v1206_v8  ;;  %v962_v12 = vadd.f32 %v3448_v9, %v3871_v1  ;;  %v3512_v13 = vpop.f32.mrb[2].mxu1  ;;  %v953_v14 = vpop.f32.mrb[3].mxu0 }
  0xea   : > { %vm1527_vm2 = vcmp.gt.f32.partialorder %v1215_v6, 0.0  ;;  %v1655_v15 = vmul.f32 0.2, %v1215_v6  ;;  %vm1461_vm3 = vcmp.gt.f32.partialorder %v951_v7, 0.0  ;;  %v1589_v16 = vmul.f32 0.2, %v951_v7 }
  0xeb   : > { %vm1525_vm4 = vcmp.gt.f32.partialorder %v1207_v11, 0.0  ;;  %v1653_v17 = vmul.f32 0.2, %v1207_v11  ;;  %vm1464_vm5 = vcmp.gt.f32.partialorder %v962_v12, 0.0  ;;  %v1209_v18 = vpop.f32.mrb[3].mxu1  ;;  %v1719_v19 = vsel %vm1463_vm1, %v959_v3, %v1591_v10 }
  0xec   : > { %v1592_v20 = vmul.f32 0.2, %v962_v12  ;;  %v1218_v21 = vadd.f32 %v3512_v13, %v3871_v1  ;;  %v1783_v22 = vsel %vm1527_vm2, %v1215_v6, %v1655_v15  ;;  %v1717_v23 = vsel %vm1461_vm3, %v951_v7, %v1589_v16 }
  0xed   : > { %v954_v24 = vadd.f32 %v3871_v1, %v953_v14  ;;  %v1210_v25 = vadd.f32 %v3871_v1, %v1209_v18  ;;  %v1781_v26 = vsel %vm1525_vm4, %v1207_v11, %v1653_v17 }
  0xee   : > { %v1720_v27 = vsel %vm1464_vm5, %v962_v12, %v1592_v20  ;;  %vm1528_vm6 = vcmp.gt.f32.partialorder %v1218_v21, 0.0  ;;  %v1656_v28 = vmul.f32 0.2, %v1218_v21  ;;  %v3451_v29 = vpop.f32.mrb[4].mxu0 }
  0xef   : > { %v3003_v30 = vpack.c.bf16 %v1720_v27, %v1719_v19  ;;  %vm1462_vm7 = vcmp.gt.f32.partialorder %v954_v24, 0.0  ;;  %v1590_v31 = vmul.f32 0.2, %v954_v24  ;;  %vm1526_vm8 = vcmp.gt.f32.partialorder %v1210_v25, 0.0  ;;  %v3515_v32 = vpop.f32.mrb[4].mxu1  ;;  %v966_v33 = vpop.f32.mrb[5].mxu0 }
  0xf0   : > { %v1784_v34 = vsel %vm1528_vm6, %v1218_v21, %v1656_v28  ;;  %v1654_v35 = vmul.f32 0.2, %v1210_v25  ;;  %v975_v36 = vadd.f32 %v3451_v29, %v3871_v1  ;;  %v1231_v37 = vadd.f32 %v3515_v32, %v3871_v1  ;;  %v1222_v38 = vpop.f32.mrb[5].mxu1  ;;  %v3452_v39 = vpop.f32.mrb[6].mxu0 }
  0xf1   : > { %3315 = vst [vmem:[%s3886_s27 + $0x8] sm:$0xff] %v3003_v30   ;;  %v3163_v40 = vpack.c.bf16 %v1784_v34, %v1783_v22  ;;  %v1718_v41 = vsel %vm1462_vm7, %v954_v24, %v1590_v31  ;;  %v967_v42 = vadd.f32 %v3871_v1, %v966_v33  ;;  %v1223_v43 = vadd.f32 %v3871_v1, %v1222_v38  ;;  %v3516_v44 = vpop.f32.mrb[6].mxu1  ;;  %v969_v45 = vpop.f32.mrb[7].mxu0 }
  0xf2   : > { %v2998_v46 = vpack.c.bf16 %v1718_v41, %v1717_v23  ;;  %v1782_v47 = vsel %vm1526_vm8, %v1210_v25, %v1654_v35  ;;  %vm1467_vm9 = vcmp.gt.f32.partialorder %v975_v36, 0.0  ;;  %v1595_v48 = vmul.f32 0.2, %v975_v36  ;;  %v1225_v49 = vpop.f32.mrb[7].mxu1 }
  0xf3   : > { %3347 = vst [vmem:[%s3886_s27 + $0x108] sm:$0xff] %v3163_v40   ;;  %v3158_v50 = vpack.c.bf16 %v1782_v47, %v1781_v26  ;;  %vm1531_vm10 = vcmp.gt.f32.partialorder %v1231_v37, 0.0  ;;  %v1659_v51 = vmul.f32 0.2, %v1231_v37  ;;  %vm1465_vm11 = vcmp.gt.f32.partialorder %v967_v42, 0.0 }
  0xf4   : > { %2999 = vst [vmem:[%s3886_s27] sm:$0xff] %v2998_v46   ;;  %v1723_v52 = vsel %vm1467_vm9, %v975_v36, %v1595_v48  ;;  %v1593_v53 = vmul.f32 0.2, %v967_v42  ;;  %v1657_v54 = vmul.f32 0.2, %v1223_v43  ;;  %v978_v55 = vadd.f32 %v3452_v39, %v3871_v1 }
  0xf5   : > { %3346 = vst [vmem:[%s3886_s27 + $0x100] sm:$0xff] %v3158_v50   ;;  %v1234_v56 = vadd.f32 %v3516_v44, %v3871_v1  ;;  %v970_v57 = vadd.f32 %v3871_v1, %v969_v45  ;;  %v1787_v58 = vsel %vm1531_vm10, %v1231_v37, %v1659_v51  ;;  %vm1529_vm12 = vcmp.gt.f32.partialorder %v1223_v43, 0.0 }
  0xf6   : > { %v1721_v59 = vsel %vm1465_vm11, %v967_v42, %v1593_v53  ;;  %v1226_v60 = vadd.f32 %v3871_v1, %v1225_v49  ;;  %v3455_v61 = vpop.f32.mrb[8].mxu0  ;;  %vm1468_vm13 = vcmp.gt.f32.partialorder %v978_v55, 0.0  ;;  %v1596_v62 = vmul.f32 0.2, %v978_v55 }
  0xf7   : > { %vm1532_vm14 = vcmp.gt.f32.partialorder %v1234_v56, 0.0  ;;  %v1660_v63 = vmul.f32 0.2, %v1234_v56  ;;  %vm1466_vm15 = vcmp.gt.f32.partialorder %v970_v57, 0.0  ;;  %v1594_v0 = vmul.f32 0.2, %v970_v57 }
  0xf8   : > { %vm1530_vm0 = vcmp.gt.f32.partialorder %v1226_v60, 0.0  ;;  %v1658_v2 = vmul.f32 0.2, %v1226_v60  ;;  %v1785_v3 = vsel %vm1529_vm12, %v1223_v43, %v1657_v54  ;;  %v1724_v4 = vsel %vm1468_vm13, %v978_v55, %v1596_v62  ;;  %v3519_v7 = vpop.f32.mrb[8].mxu1  ;;  %v982_v8 = vpop.f32.mrb[9].mxu0 }
  0xf9   : > { %v1788_v5 = vsel %vm1532_vm14, %v1234_v56, %v1660_v63  ;;  %v991_v6 = vadd.f32 %v3455_v61, %v3871_v1  ;;  %v3013_v9 = vpack.c.bf16 %v1724_v4, %v1723_v52  ;;  %v1722_v11 = vsel %vm1466_vm15, %v970_v57, %v1594_v0  ;;  %v1238_v13 = vpop.f32.mrb[9].mxu1  ;;  %v3456_v14 = vpop.f32.mrb[10].mxu0 }
  0xfa   : > { %v3173_v10 = vpack.c.bf16 %v1788_v5, %v1787_v58  ;;  %v1786_v12 = vsel %vm1530_vm0, %v1226_v60, %v1658_v2  ;;  %v3008_v15 = vpack.c.bf16 %v1722_v11, %v1721_v59  ;;  %v3520_v18 = vpop.f32.mrb[10].mxu1  ;;  %v985_v19 = vpop.f32.mrb[11].mxu0  ;;  %v1247_v20 = vadd.f32 %v3519_v7, %v3871_v1 }
  0xfb   : > { %v3168_v16 = vpack.c.bf16 %v1786_v12, %v1785_v3  ;;  %vm1471_vm1 = vcmp.gt.f32.partialorder %v991_v6, 0.0  ;;  %v1599_v17 = vmul.f32 0.2, %v991_v6  ;;  %3317 = vst [vmem:[%s3886_s27 + $0x18] sm:$0xff] %v3013_v9   ;;  %v983_v21 = vadd.f32 %v3871_v1, %v982_v8  ;;  %v1241_v24 = vpop.f32.mrb[11].mxu1 }
  0xfc   : > { %3349 = vst [vmem:[%s3886_s27 + $0x118] sm:$0xff] %v3173_v10   ;;  %v1239_v22 = vadd.f32 %v3871_v1, %v1238_v13  ;;  %v994_v23 = vadd.f32 %v3456_v14, %v3871_v1  ;;  %3316 = vst [vmem:[%s3886_s27 + $0x10] sm:$0xff] %v3008_v15   ;;  %v1250_v26 = vadd.f32 %v3520_v18, %v3871_v1  ;;  %vm1535_vm2 = vcmp.gt.f32.partialorder %v1247_v20, 0.0 }
  0xfd   : > { %3348 = vst [vmem:[%s3886_s27 + $0x110] sm:$0xff] %v3168_v16   ;;  %v1727_v25 = vsel %vm1471_vm1, %v991_v6, %v1599_v17  ;;  %v986_v27 = vadd.f32 %v3871_v1, %v985_v19  ;;  %v1242_v28 = vadd.f32 %v3871_v1, %v1241_v24  ;;  %v1663_v29 = vmul.f32 0.2, %v1247_v20 }
  0xfe   : > { %vm1469_vm3 = vcmp.gt.f32.partialorder %v983_v21, 0.0  ;;  %v1597_v30 = vmul.f32 0.2, %v983_v21  ;;  %vm1533_vm4 = vcmp.gt.f32.partialorder %v1239_v22, 0.0  ;;  %v1661_v31 = vmul.f32 0.2, %v1239_v22 }
  0xff   : > { %vm1472_vm5 = vcmp.gt.f32.partialorder %v994_v23, 0.0  ;;  %v1600_v32 = vmul.f32 0.2, %v994_v23  ;;  %v1791_v33 = vsel %vm1535_vm2, %v1247_v20, %v1663_v29  ;;  %vm1536_vm6 = vcmp.gt.f32.partialorder %v1250_v26, 0.0  ;;  %v3459_v36 = vpop.f32.mrb[12].mxu0  ;;  %v3523_v37 = vpop.f32.mrb[12].mxu1 }
 0x100   : > { %v1725_v34 = vsel %vm1469_vm3, %v983_v21, %v1597_v30  ;;  %v1664_v35 = vmul.f32 0.2, %v1250_v26  ;;  %v1789_v38 = vsel %vm1533_vm4, %v1239_v22, %v1661_v31  ;;  %vm1470_vm7 = vcmp.gt.f32.partialorder %v986_v27, 0.0  ;;  %v998_v41 = vpop.f32.mrb[13].mxu0  ;;  %v1254_v42 = vpop.f32.mrb[13].mxu1 }
 0x101   : > { %v1728_v39 = vsel %vm1472_vm5, %v994_v23, %v1600_v32  ;;  %v1598_v40 = vmul.f32 0.2, %v986_v27  ;;  %vm1534_vm8 = vcmp.gt.f32.partialorder %v1242_v28, 0.0  ;;  %v1662_v45 = vmul.f32 0.2, %v1242_v28  ;;  %v3460_v46 = vpop.f32.mrb[14].mxu0 }
 0x102   : > { %v3023_v43 = vpack.c.bf16 %v1728_v39, %v1727_v25  ;;  %v1792_v44 = vsel %vm1536_vm6, %v1250_v26, %v1664_v35  ;;  %v3524_v47 = vpop.f32.mrb[14].mxu1  ;;  %v1007_v50 = vadd.f32 %v3459_v36, %v3871_v1  ;;  %v1263_v51 = vadd.f32 %v3523_v37, %v3871_v1  ;;  %v1001_v52 = vpop.f32.mrb[15].mxu0 }
 0x103   : > { %v3183_v48 = vpack.c.bf16 %v1792_v44, %v1791_v33  ;;  %v1726_v49 = vsel %vm1470_vm7, %v986_v27, %v1598_v40  ;;  %v1257_v53 = vpop.f32.mrb[15].mxu1  ;;  %v1790_v55 = vsel %vm1534_vm8, %v1242_v28, %v1662_v45  ;;  %v999_v56 = vadd.f32 %v3871_v1, %v998_v41 }
 0x104   : > { %3319 = vst [vmem:[%s3886_s27 + $0x28] sm:$0xff] %v3023_v43   ;;  %v3018_v54 = vpack.c.bf16 %v1726_v49, %v1725_v34  ;;  %v1255_v57 = vadd.f32 %v3871_v1, %v1254_v42  ;;  %v3178_v58 = vpack.c.bf16 %v1790_v55, %v1789_v38  ;;  %vm1475_vm9 = vcmp.gt.f32.partialorder %v1007_v50, 0.0 }
 0x105   : > { %3351 = vst [vmem:[%s3886_s27 + $0x128] sm:$0xff] %v3183_v48   ;;  %v1603_v59 = vmul.f32 0.2, %v1007_v50  ;;  %vm1539_vm10 = vcmp.gt.f32.partialorder %v1263_v51, 0.0  ;;  %v1667_v60 = vmul.f32 0.2, %v1263_v51  ;;  %v1010_v0 = vadd.f32 %v3460_v46, %v3871_v1 }
 0x106   : > { %3318 = vst [vmem:[%s3886_s27 + $0x20] sm:$0xff] %v3018_v54   ;;  %vm1473_vm11 = vcmp.gt.f32.partialorder %v999_v56, 0.0  ;;  %v1601_v61 = vmul.f32 0.2, %v999_v56  ;;  %vm1537_vm12 = vcmp.gt.f32.partialorder %v1255_v57, 0.0  ;;  %3350 = vst [vmem:[%s3886_s27 + $0x120] sm:$0xff] %v3178_v58   ;;  %v1266_v2 = vadd.f32 %v3524_v47, %v3871_v1 }
 0x107   : > { %v1731_v62 = vsel %vm1475_vm9, %v1007_v50, %v1603_v59  ;;  %v1665_v63 = vmul.f32 0.2, %v1255_v57  ;;  %v3463_v3 = vpop.f32.mrb[16].mxu0  ;;  %v3527_v4 = vpop.f32.mrb[16].mxu1  ;;  %v1795_v5 = vsel %vm1539_vm10, %v1263_v51, %v1667_v60  ;;  %v1002_v7 = vadd.f32 %v3871_v1, %v1001_v52 }
 0x108   : > { %v1729_v6 = vsel %vm1473_vm11, %v999_v56, %v1601_v61  ;;  %v1258_v8 = vadd.f32 %v3871_v1, %v1257_v53  ;;  %v1014_v9 = vpop.f32.mrb[17].mxu0  ;;  %v1270_v10 = vpop.f32.mrb[17].mxu1  ;;  %vm1476_vm13 = vcmp.gt.f32.partialorder %v1010_v0, 0.0  ;;  %v1604_v12 = vmul.f32 0.2, %v1010_v0 }
 0x109   : > { %v1793_v11 = vsel %vm1537_vm12, %v1255_v57, %v1665_v63  ;;  %vm1540_vm14 = vcmp.gt.f32.partialorder %v1266_v2, 0.0  ;;  %v3464_v13 = vpop.f32.mrb[18].mxu0  ;;  %v3528_v14 = vpop.f32.mrb[18].mxu1  ;;  %v1668_v15 = vmul.f32 0.2, %v1266_v2  ;;  %vm1474_vm15 = vcmp.gt.f32.partialorder %v1002_v7, 0.0 }
 0x10a   : > { %v1602_v16 = vmul.f32 0.2, %v1002_v7  ;;  %vm1538_vm0 = vcmp.gt.f32.partialorder %v1258_v8, 0.0  ;;  %v1732_v17 = vsel %vm1476_vm13, %v1010_v0, %v1604_v12  ;;  %v1666_v18 = vmul.f32 0.2, %v1258_v8  ;;  %v1017_v21 = vpop.f32.mrb[19].mxu0 }
 0x10b   : > { %v1023_v19 = vadd.f32 %v3463_v3, %v3871_v1  ;;  %v1279_v20 = vadd.f32 %v3527_v4, %v3871_v1  ;;  %v1273_v22 = vpop.f32.mrb[19].mxu1  ;;  %v3033_v23 = vpack.c.bf16 %v1732_v17, %v1731_v62  ;;  %v1796_v24 = vsel %vm1540_vm14, %v1266_v2, %v1668_v15 }
 0x10c   : > { %v1730_v25 = vsel %vm1474_vm15, %v1002_v7, %v1602_v16  ;;  %v1015_v26 = vadd.f32 %v3871_v1, %v1014_v9  ;;  %v3193_v27 = vpack.c.bf16 %v1796_v24, %v1795_v5  ;;  %v1794_v29 = vsel %vm1538_vm0, %v1258_v8, %v1666_v18 }
 0x10d   : > { %v3028_v28 = vpack.c.bf16 %v1730_v25, %v1729_v6  ;;  %vm1479_vm1 = vcmp.gt.f32.partialorder %v1023_v19, 0.0  ;;  %3321 = vst [vmem:[%s3886_s27 + $0x38] sm:$0xff] %v3033_v23   ;;  %v3188_v30 = vpack.c.bf16 %v1794_v29, %v1793_v11  ;;  %v1607_v31 = vmul.f32 0.2, %v1023_v19 }
 0x10e   : > { %vm1543_vm2 = vcmp.gt.f32.partialorder %v1279_v20, 0.0  ;;  %v1671_v32 = vmul.f32 0.2, %v1279_v20  ;;  %v3467_v33 = vpop.f32.mrb[20].mxu0  ;;  %3353 = vst [vmem:[%s3886_s27 + $0x138] sm:$0xff] %v3193_v27   ;;  %vm1477_vm3 = vcmp.gt.f32.partialorder %v1015_v26, 0.0  ;;  %v1271_v35 = vadd.f32 %v3871_v1, %v1270_v10 }
 0x10f   : > { %3320 = vst [vmem:[%s3886_s27 + $0x30] sm:$0xff] %v3028_v28   ;;  %v1605_v34 = vmul.f32 0.2, %v1015_v26  ;;  %v1026_v36 = vadd.f32 %v3464_v13, %v3871_v1  ;;  %v3531_v37 = vpop.f32.mrb[20].mxu1  ;;  %v1030_v38 = vpop.f32.mrb[21].mxu0  ;;  %3352 = vst [vmem:[%s3886_s27 + $0x130] sm:$0xff] %v3188_v30   ;;  %v1735_v39 = vsel %vm1479_vm1, %v1023_v19, %v1607_v31  ;;  %v1282_v41 = vadd.f32 %v3528_v14, %v3871_v1 }
 0x110   : > { %v1799_v40 = vsel %vm1543_vm2, %v1279_v20, %v1671_v32  ;;  %v1018_v42 = vadd.f32 %v3871_v1, %v1017_v21  ;;  %v1286_v43 = vpop.f32.mrb[21].mxu1  ;;  %v3468_v44 = vpop.f32.mrb[22].mxu0  ;;  %vm1541_vm4 = vcmp.gt.f32.partialorder %v1271_v35, 0.0  ;;  %v1669_v46 = vmul.f32 0.2, %v1271_v35 }
 0x111   : > { %v1733_v45 = vsel %vm1477_vm3, %v1015_v26, %v1605_v34  ;;  %vm1480_vm5 = vcmp.gt.f32.partialorder %v1026_v36, 0.0  ;;  %v3532_v47 = vpop.f32.mrb[22].mxu1  ;;  %v1033_v48 = vpop.f32.mrb[23].mxu0  ;;  %v1608_v49 = vmul.f32 0.2, %v1026_v36  ;;  %vm1544_vm6 = vcmp.gt.f32.partialorder %v1282_v41, 0.0 }
 0x112   : > { %v1672_v50 = vmul.f32 0.2, %v1282_v41  ;;  %vm1478_vm7 = vcmp.gt.f32.partialorder %v1018_v42, 0.0  ;;  %v1797_v51 = vsel %vm1541_vm4, %v1271_v35, %v1669_v46  ;;  %v1606_v52 = vmul.f32 0.2, %v1018_v42  ;;  %v1289_v55 = vpop.f32.mrb[23].mxu1 }
 0x113   : > { %v1274_v53 = vadd.f32 %v3871_v1, %v1273_v22  ;;  %v1039_v54 = vadd.f32 %v3467_v33, %v3871_v1  ;;  %v1736_v56 = vsel %vm1480_vm5, %v1026_v36, %v1608_v49  ;;  %v1295_v58 = vadd.f32 %v3531_v37, %v3871_v1 }
 0x114   : > { %v1800_v57 = vsel %vm1544_vm6, %v1282_v41, %v1672_v50  ;;  %v1031_v59 = vadd.f32 %v3871_v1, %v1030_v38  ;;  %v3043_v60 = vpack.c.bf16 %v1736_v56, %v1735_v39  ;;  %v1734_v62 = vsel %vm1478_vm7, %v1018_v42, %v1606_v52 }
 0x115   : > { %v3203_v61 = vpack.c.bf16 %v1800_v57, %v1799_v40  ;;  %vm1542_vm8 = vcmp.gt.f32.partialorder %v1274_v53, 0.0  ;;  %v3038_v63 = vpack.c.bf16 %v1734_v62, %v1733_v45  ;;  %v1670_v0 = vmul.f32 0.2, %v1274_v53 }
 0x116   : > { %vm1483_vm9 = vcmp.gt.f32.partialorder %v1039_v54, 0.0  ;;  %v1611_v2 = vmul.f32 0.2, %v1039_v54  ;;  %v3471_v3 = vpop.f32.mrb[24].mxu0  ;;  %3323 = vst [vmem:[%s3886_s27 + $0x48] sm:$0xff] %v3043_v60   ;;  %vm1547_vm10 = vcmp.gt.f32.partialorder %v1295_v58, 0.0  ;;  %v1287_v8 = vadd.f32 %v3871_v1, %v1286_v43 }
 0x117   : > { %3355 = vst [vmem:[%s3886_s27 + $0x148] sm:$0xff] %v3203_v61   ;;  %v1675_v4 = vmul.f32 0.2, %v1295_v58  ;;  %vm1481_vm11 = vcmp.gt.f32.partialorder %v1031_v59, 0.0  ;;  %v1609_v5 = vmul.f32 0.2, %v1031_v59  ;;  %v1798_v6 = vsel %vm1542_vm8, %v1274_v53, %v1670_v0 }
 0x118   : > { %3322 = vst [vmem:[%s3886_s27 + $0x40] sm:$0xff] %v3038_v63   ;;  %v1739_v7 = vsel %vm1483_vm9, %v1039_v54, %v1611_v2  ;;  %v1042_v9 = vadd.f32 %v3468_v44, %v3871_v1  ;;  %v3535_v10 = vpop.f32.mrb[24].mxu1  ;;  %v1046_v11 = vpop.f32.mrb[25].mxu0  ;;  %v3198_v12 = vpack.c.bf16 %v1798_v6, %v1797_v51  ;;  %v1298_v15 = vadd.f32 %v3532_v47, %v3871_v1 }
 0x119   : > { %v1803_v13 = vsel %vm1547_vm10, %v1295_v58, %v1675_v4  ;;  %v1737_v14 = vsel %vm1481_vm11, %v1031_v59, %v1609_v5  ;;  %v1302_v16 = vpop.f32.mrb[25].mxu1  ;;  %v3472_v17 = vpop.f32.mrb[26].mxu0  ;;  %vm1545_vm12 = vcmp.gt.f32.partialorder %v1287_v8, 0.0  ;;  %v1673_v18 = vmul.f32 0.2, %v1287_v8 }
 0x11a   : > { %vm1484_vm13 = vcmp.gt.f32.partialorder %v1042_v9, 0.0  ;;  %v1612_v19 = vmul.f32 0.2, %v1042_v9  ;;  %3354 = vst [vmem:[%s3886_s27 + $0x140] sm:$0xff] %v3198_v12   ;;  %vm1548_vm14 = vcmp.gt.f32.partialorder %v1298_v15, 0.0  ;;  %v1034_v21 = vadd.f32 %v3871_v1, %v1033_v48  ;;  %v3536_v23 = vpop.f32.mrb[26].mxu1 }
 0x11b   : > { %v1676_v20 = vmul.f32 0.2, %v1298_v15  ;;  %v1290_v22 = vadd.f32 %v3871_v1, %v1289_v55  ;;  %v1049_v24 = vpop.f32.mrb[27].mxu0  ;;  %v1801_v25 = vsel %vm1545_vm12, %v1287_v8, %v1673_v18  ;;  %v1055_v27 = vadd.f32 %v3471_v3, %v3871_v1  ;;  %v1305_v29 = vpop.f32.mrb[27].mxu1 }
 0x11c   : > { %v1740_v26 = vsel %vm1484_vm13, %v1042_v9, %v1612_v19  ;;  %v1311_v28 = vadd.f32 %v3535_v10, %v3871_v1  ;;  %vm1482_vm15 = vcmp.gt.f32.partialorder %v1034_v21, 0.0  ;;  %v1610_v32 = vmul.f32 0.2, %v1034_v21 }
 0x11d   : > { %v3053_v30 = vpack.c.bf16 %v1740_v26, %v1739_v7  ;;  %v1804_v31 = vsel %vm1548_vm14, %v1298_v15, %v1676_v20  ;;  %vm1546_vm0 = vcmp.gt.f32.partialorder %v1290_v22, 0.0  ;;  %v1674_v34 = vmul.f32 0.2, %v1290_v22 }
 0x11e   : > { %v3213_v33 = vpack.c.bf16 %v1804_v31, %v1803_v13  ;;  %vm1487_vm1 = vcmp.gt.f32.partialorder %v1055_v27, 0.0  ;;  %v3475_v35 = vpop.f32.mrb[28].mxu0  ;;  %v1738_v36 = vsel %vm1482_vm15, %v1034_v21, %v1610_v32  ;;  %v1615_v37 = vmul.f32 0.2, %v1055_v27 }
 0x11f   : > { %3325 = vst [vmem:[%s3886_s27 + $0x58] sm:$0xff] %v3053_v30   ;;  %vm1551_vm2 = vcmp.gt.f32.partialorder %v1311_v28, 0.0  ;;  %v1679_v38 = vmul.f32 0.2, %v1311_v28  ;;  %v3539_v39 = vpop.f32.mrb[28].mxu1  ;;  %v3048_v40 = vpack.c.bf16 %v1738_v36, %v1737_v14  ;;  %v1802_v41 = vsel %vm1546_vm0, %v1290_v22, %v1674_v34  ;;  %v1062_v44 = vpop.f32.mrb[29].mxu0 }
 0x120   : > { %3357 = vst [vmem:[%s3886_s27 + $0x158] sm:$0xff] %v3213_v33   ;;  %v1047_v42 = vadd.f32 %v3871_v1, %v1046_v11  ;;  %v1303_v43 = vadd.f32 %v3871_v1, %v1302_v16  ;;  %v1318_v45 = vpop.f32.mrb[29].mxu1  ;;  %v3208_v46 = vpack.c.bf16 %v1802_v41, %v1801_v25  ;;  %v1743_v47 = vsel %vm1487_vm1, %v1055_v27, %v1615_v37  ;;  %v3476_v50 = vpop.f32.mrb[30].mxu0 }
 0x121   : > { %v1807_v48 = vsel %vm1551_vm2, %v1311_v28, %v1679_v38  ;;  %v1058_v49 = vadd.f32 %v3472_v17, %v3871_v1  ;;  %v3540_v51 = vpop.f32.mrb[30].mxu1  ;;  %3324 = vst [vmem:[%s3886_s27 + $0x50] sm:$0xff] %v3048_v40   ;;  %v1314_v55 = vadd.f32 %v3536_v23, %v3871_v1  ;;  %v1050_v56 = vadd.f32 %v3871_v1, %v1049_v24  ;;  %v1065_v57 = vpop.f32.mrb[31].mxu0 }
 0x122   : > { %vm1485_vm3 = vcmp.gt.f32.partialorder %v1047_v42, 0.0  ;;  %v1613_v52 = vmul.f32 0.2, %v1047_v42  ;;  %vm1549_vm4 = vcmp.gt.f32.partialorder %v1303_v43, 0.0  ;;  %v1677_v53 = vmul.f32 0.2, %v1303_v43 }
 0x123   : > { %3356 = vst [vmem:[%s3886_s27 + $0x150] sm:$0xff] %v3208_v46   ;;  %vm1488_vm5 = vcmp.gt.f32.partialorder %v1058_v49, 0.0  ;;  %v1616_v54 = vmul.f32 0.2, %v1058_v49  ;;  %v1321_v58 = vpop.f32.mrb[31].mxu1  ;;  %v1306_v61 = vadd.f32 %v3871_v1, %v1305_v29  ;;  %v1071_v62 = vadd.f32 %v3475_v35, %v3871_v1 }
 0x124   : > { %v1741_v59 = vsel %vm1485_vm3, %v1047_v42, %v1613_v52  ;;  %v1805_v60 = vsel %vm1549_vm4, %v1303_v43, %v1677_v53  ;;  %vm1552_vm6 = vcmp.gt.f32.partialorder %v1314_v55, 0.0  ;;  %v1680_v0 = vmul.f32 0.2, %v1314_v55 }
 0x125   : > { %v1744_v63 = vsel %vm1488_vm5, %v1058_v49, %v1616_v54  ;;  %vm1486_vm7 = vcmp.gt.f32.partialorder %v1050_v56, 0.0  ;;  %v1614_v3 = vmul.f32 0.2, %v1050_v56  ;;  %vm1550_vm8 = vcmp.gt.f32.partialorder %v1306_v61, 0.0 }
 0x126   : > { %v3063_v2 = vpack.c.bf16 %v1744_v63, %v1743_v47  ;;  %v1678_v4 = vmul.f32 0.2, %v1306_v61  ;;  %v3479_v5 = vpop.f32.mrb[32].mxu0  ;;  %v1808_v6 = vsel %vm1552_vm6, %v1314_v55, %v1680_v0  ;;  %vm1491_vm9 = vcmp.gt.f32.partialorder %v1071_v62, 0.0 }
 0x127   : > { %v1619_v7 = vmul.f32 0.2, %v1071_v62  ;;  %v1327_v8 = vadd.f32 %v3539_v39, %v3871_v1  ;;  %v3543_v9 = vpop.f32.mrb[32].mxu1  ;;  %v1078_v10 = vpop.f32.mrb[33].mxu0  ;;  %v3223_v11 = vpack.c.bf16 %v1808_v6, %v1807_v48  ;;  %v1742_v12 = vsel %vm1486_vm7, %v1050_v56, %v1614_v3 }
 0x128   : > { %3327 = vst [vmem:[%s3886_s27 + $0x68] sm:$0xff] %v3063_v2   ;;  %v1806_v13 = vsel %vm1550_vm8, %v1306_v61, %v1678_v4  ;;  %v1063_v14 = vadd.f32 %v3871_v1, %v1062_v44  ;;  %v1334_v15 = vpop.f32.mrb[33].mxu1  ;;  %v3480_v16 = vpop.f32.mrb[34].mxu0  ;;  %v3058_v17 = vpack.c.bf16 %v1742_v12, %v1741_v59  ;;  %v1319_v24 = vadd.f32 %v3871_v1, %v1318_v45 }
 0x129   : > { %v3218_v18 = vpack.c.bf16 %v1806_v13, %v1805_v60  ;;  %v1747_v19 = vsel %vm1491_vm9, %v1071_v62, %v1619_v7  ;;  %vm1555_vm10 = vcmp.gt.f32.partialorder %v1327_v8, 0.0  ;;  %v3544_v20 = vpop.f32.mrb[34].mxu1  ;;  %v1081_v21 = vpop.f32.mrb[35].mxu0  ;;  %3359 = vst [vmem:[%s3886_s27 + $0x168] sm:$0xff] %v3223_v11   ;;  %v1683_v22 = vmul.f32 0.2, %v1327_v8 }
 0x12a   : > { %vm1489_vm11 = vcmp.gt.f32.partialorder %v1063_v14, 0.0  ;;  %v1617_v23 = vmul.f32 0.2, %v1063_v14  ;;  %v3969_v25 = vpop.f32.mrb[35].mxu1  ;;  %3326 = vst [vmem:[%s3886_s27 + $0x60] sm:$0xff] %v3058_v17   ;;  %v1074_v26 = vadd.f32 %v3476_v50, %v3871_v1  ;;  %v1330_v27 = vadd.f32 %v3540_v51, %v3871_v1 }
 0x12b   : > { %3358 = vst [vmem:[%s3886_s27 + $0x160] sm:$0xff] %v3218_v18   ;;  %v1066_v28 = vadd.f32 %v3871_v1, %v1065_v57  ;;  %v1322_v29 = vadd.f32 %v3871_v1, %v1321_v58  ;;  %v1811_v30 = vsel %vm1555_vm10, %v1327_v8, %v1683_v22  ;;  %vm1553_vm12 = vcmp.gt.f32.partialorder %v1319_v24, 0.0 }
 0x12c   : > { %v1745_v31 = vsel %vm1489_vm11, %v1063_v14, %v1617_v23  ;;  %v1681_v32 = vmul.f32 0.2, %v1319_v24  ;;  %vm1492_vm13 = vcmp.gt.f32.partialorder %v1074_v26, 0.0  ;;  %v1620_v33 = vmul.f32 0.2, %v1074_v26 }
 0x12d   : > { %vm1556_vm14 = vcmp.gt.f32.partialorder %v1330_v27, 0.0  ;;  %v1684_v34 = vmul.f32 0.2, %v1330_v27  ;;  %vm1490_vm15 = vcmp.gt.f32.partialorder %v1066_v28, 0.0  ;;  %v1618_v36 = vmul.f32 0.2, %v1066_v28 }
 0x12e   : > { %v1809_v35 = vsel %vm1553_vm12, %v1319_v24, %v1681_v32  ;;  %vm1554_vm0 = vcmp.gt.f32.partialorder %v1322_v29, 0.0  ;;  %v3483_v37 = vpop.f32.mrb[36].mxu0  ;;  %v1748_v38 = vsel %vm1492_vm13, %v1074_v26, %v1620_v33  ;;  %v1682_v40 = vmul.f32 0.2, %v1322_v29 }
 0x12f   : > { %v1812_v39 = vsel %vm1556_vm14, %v1330_v27, %v1684_v34  ;;  %v1087_v41 = vadd.f32 %v3479_v5, %v3871_v1  ;;  %v3547_v42 = vpop.f32.mrb[36].mxu1  ;;  %v3978_v43 = vpop.f32.mrb[37].mxu0  ;;  %v3073_v44 = vpack.c.bf16 %v1748_v38, %v1747_v19  ;;  %v1746_v46 = vsel %vm1490_vm15, %v1066_v28, %v1618_v36 }
 0x130   : > { %v3233_v45 = vpack.c.bf16 %v1812_v39, %v1811_v30  ;;  %v1343_v47 = vadd.f32 %v3543_v9, %v3871_v1  ;;  %v1350_v48 = vpop.f32.mrb[37].mxu1  ;;  %v3981_v49 = vpop.f32.mrb[38].mxu0  ;;  %v3068_v50 = vpack.c.bf16 %v1746_v46, %v1745_v31  ;;  %v1810_v51 = vsel %vm1554_vm0, %v1322_v29, %v1682_v40 }
 0x131   : > { %vm1495_vm1 = vcmp.gt.f32.partialorder %v1087_v41, 0.0  ;;  %v1623_v52 = vmul.f32 0.2, %v1087_v41  ;;  %v3548_v53 = vpop.f32.mrb[38].mxu1  ;;  %v3983_v54 = vpop.f32.mrb[39].mxu0  ;;  %3329 = vst [vmem:[%s3886_s27 + $0x78] sm:$0xff] %v3073_v44   ;;  %v3228_v55 = vpack.c.bf16 %v1810_v51, %v1809_v35  ;;  %v1079_v57 = vadd.f32 %v3871_v1, %v1078_v10 }
 0x132   : > { %3361 = vst [vmem:[%s3886_s27 + $0x178] sm:$0xff] %v3233_v45   ;;  %vm1559_vm2 = vcmp.gt.f32.partialorder %v1343_v47, 0.0  ;;  %v1687_v56 = vmul.f32 0.2, %v1343_v47  ;;  %v3988_v58 = vpop.f32.mrb[39].mxu1  ;;  %3328 = vst [vmem:[%s3886_s27 + $0x70] sm:$0xff] %v3068_v50   ;;  %v1335_v60 = vadd.f32 %v3871_v1, %v1334_v15  ;;  %v1090_v61 = vadd.f32 %v3480_v16, %v3871_v1 }
 0x133   : > { %v1751_v59 = vsel %vm1495_vm1, %v1087_v41, %v1623_v52  ;;  %v1346_v62 = vadd.f32 %v3544_v20, %v3871_v1  ;;  %3360 = vst [vmem:[%s3886_s27 + $0x170] sm:$0xff] %v3228_v55   ;;  %vm1493_vm3 = vcmp.gt.f32.partialorder %v1079_v57, 0.0  ;;  %v1621_v0 = vmul.f32 0.2, %v1079_v57 }
 0x134   : > { %v1815_v63 = vsel %vm1559_vm2, %v1343_v47, %v1687_v56  ;;  %v1082_v2 = vadd.f32 %v3871_v1, %v1081_v21  ;;  %vm1557_vm4 = vcmp.gt.f32.partialorder %v1335_v60, 0.0  ;;  %v1685_v3 = vmul.f32 0.2, %v1335_v60 }
 0x135   : > { %vm1496_vm5 = vcmp.gt.f32.partialorder %v1090_v61, 0.0  ;;  %v1624_v4 = vmul.f32 0.2, %v1090_v61  ;;  %v1749_v5 = vsel %vm1493_vm3, %v1079_v57, %v1621_v0  ;;  %vm1560_vm6 = vcmp.gt.f32.partialorder %v1346_v62, 0.0 }
 0x136   : > { %v1688_v6 = vmul.f32 0.2, %v1346_v62  ;;  %vm1494_vm7 = vcmp.gt.f32.partialorder %v1082_v2, 0.0  ;;  %v3487_v7 = vpop.f32.mrb[40].mxu0  ;;  %v1813_v8 = vsel %vm1557_vm4, %v1335_v60, %v1685_v3  ;;  %v1622_v10 = vmul.f32 0.2, %v1082_v2 }
 0x137   : > { %v1752_v9 = vsel %vm1496_vm5, %v1090_v61, %v1624_v4  ;;  %v1338_v11 = vadd.f32 %v3871_v1, %v3969_v25  ;;  %v3551_v12 = vpop.f32.mrb[40].mxu1  ;;  %v3998_v13 = vpop.f32.mrb[41].mxu0  ;;  %v1103_v16 = vadd.f32 %v3483_v37, %v3871_v1  ;;  %v1359_v17 = vadd.f32 %v3547_v42, %v3871_v1 }
 0x138   : > { %v3083_v14 = vpack.c.bf16 %v1752_v9, %v1751_v59  ;;  %v1816_v15 = vsel %vm1560_vm6, %v1346_v62, %v1688_v6  ;;  %v4002_v18 = vpop.f32.mrb[41].mxu1  ;;  %v4004_v19 = vpop.f32.mrb[42].mxu0  ;;  %v1750_v21 = vsel %vm1494_vm7, %v1082_v2, %v1622_v10  ;;  %v1095_v30 = vadd.f32 %v3871_v1, %v3978_v43 }
 0x139   : > { %v3243_v20 = vpack.c.bf16 %v1816_v15, %v1815_v63  ;;  %vm1558_vm8 = vcmp.gt.f32.partialorder %v1338_v11, 0.0  ;;  %v1686_v22 = vmul.f32 0.2, %v1338_v11  ;;  %v4006_v23 = vpop.f32.mrb[42].mxu1  ;;  %v4008_v24 = vpop.f32.mrb[43].mxu0  ;;  %v3078_v25 = vpack.c.bf16 %v1750_v21, %v1749_v5 }
 0x13a   : > { %3331 = vst [vmem:[%s3886_s27 + $0x88] sm:$0xff] %v3083_v14   ;;  %vm1499_vm9 = vcmp.gt.f32.partialorder %v1103_v16, 0.0  ;;  %v1627_v26 = vmul.f32 0.2, %v1103_v16  ;;  %vm1563_vm10 = vcmp.gt.f32.partialorder %v1359_v17, 0.0  ;;  %v4011_v27 = vpop.f32.mrb[43].mxu1  ;;  %v1351_v31 = vadd.f32 %v3871_v1, %v1350_v48 }
 0x13b   : > { %3363 = vst [vmem:[%s3886_s27 + $0x188] sm:$0xff] %v3243_v20   ;;  %v1814_v28 = vsel %vm1558_vm8, %v1338_v11, %v1686_v22  ;;  %v1691_v29 = vmul.f32 0.2, %v1359_v17  ;;  %3330 = vst [vmem:[%s3886_s27 + $0x80] sm:$0xff] %v3078_v25   ;;  %v1106_v34 = vadd.f32 %v3981_v49, %v3871_v1  ;;  %v1362_v35 = vadd.f32 %v3548_v53, %v3871_v1 }
 0x13c   : > { %v3238_v32 = vpack.c.bf16 %v1814_v28, %v1813_v8  ;;  %v1755_v33 = vsel %vm1499_vm9, %v1103_v16, %v1627_v26  ;;  %vm1497_vm11 = vcmp.gt.f32.partialorder %v1095_v30, 0.0  ;;  %v1625_v37 = vmul.f32 0.2, %v1095_v30 }
 0x13d   : > { %v1819_v36 = vsel %vm1563_vm10, %v1359_v17, %v1691_v29  ;;  %vm1561_vm12 = vcmp.gt.f32.partialorder %v1351_v31, 0.0  ;;  %v1689_v38 = vmul.f32 0.2, %v1351_v31  ;;  %vm1500_vm13 = vcmp.gt.f32.partialorder %v1106_v34, 0.0 }
 0x13e   : > { %3362 = vst [vmem:[%s3886_s27 + $0x180] sm:$0xff] %v3238_v32   ;;  %v1628_v39 = vmul.f32 0.2, %v1106_v34  ;;  %vm1564_vm14 = vcmp.gt.f32.partialorder %v1362_v35, 0.0  ;;  %v1753_v40 = vsel %vm1497_vm11, %v1095_v30, %v1625_v37  ;;  %v1692_v41 = vmul.f32 0.2, %v1362_v35 }
 0x13f   : > { %v1098_v42 = vadd.f32 %v3871_v1, %v3983_v54  ;;  %v1354_v43 = vadd.f32 %v3871_v1, %v3988_v58  ;;  %v3491_v44 = vpop.f32.mrb[44].mxu0  ;;  %v4026_v45 = vpop.f32.mrb[44].mxu1  ;;  %v1817_v46 = vsel %vm1561_vm12, %v1351_v31, %v1689_v38  ;;  %v1119_v48 = vadd.f32 %v3487_v7, %v3871_v1 }
 0x140   : > { %v1756_v47 = vsel %vm1500_vm13, %v1106_v34, %v1628_v39  ;;  %v1375_v49 = vadd.f32 %v3551_v12, %v3871_v1  ;;  %v4030_v50 = vpop.f32.mrb[45].mxu0  ;;  %v4032_v51 = vpop.f32.mrb[45].mxu1  ;;  %v1820_v53 = vsel %vm1564_vm14, %v1362_v35, %v1692_v41  ;;  %v1111_v3 = vadd.f32 %v3871_v1, %v3998_v13  ;;  %v4055_v12 = vld [vmem:[%s4242_s2] ss:$0 sm:$0xff] }
 0x141   : > { %v3093_v52 = vpack.c.bf16 %v1756_v47, %v1755_v33  ;;  %vm1498_vm15 = vcmp.gt.f32.partialorder %v1098_v42, 0.0  ;;  %v1626_v54 = vmul.f32 0.2, %v1098_v42  ;;  %v4034_v55 = vpop.f32.mrb[46].mxu0  ;;  %v4036_v56 = vpop.f32.mrb[46].mxu1  ;;  %v3253_v57 = vpack.c.bf16 %v1820_v53, %v1819_v36 }
 0x142   : > { %vm1562_vm0 = vcmp.gt.f32.partialorder %v1354_v43, 0.0  ;;  %v1690_v58 = vmul.f32 0.2, %v1354_v43  ;;  %vm1503_vm1 = vcmp.gt.f32.partialorder %v1119_v48, 0.0  ;;  %v4038_v59 = vpop.f32.mrb[47].mxu0  ;;  %v4040_v60 = vpop.f32.mrb[47].mxu1  ;;  %v1367_v4 = vadd.f32 %v3871_v1, %v4002_v18 }
 0x143   : > { %3333 = vst [vmem:[%s3886_s27 + $0x98] sm:$0xff] %v3093_v52   ;;  %v1754_v61 = vsel %vm1498_vm15, %v1098_v42, %v1626_v54  ;;  %v1631_v62 = vmul.f32 0.2, %v1119_v48  ;;  %vm1567_vm2 = vcmp.gt.f32.partialorder %v1375_v49, 0.0  ;;  %v1695_v63 = vmul.f32 0.2, %v1375_v49 }
 0x144   : > { %3365 = vst [vmem:[%s3886_s27 + $0x198] sm:$0xff] %v3253_v57   ;;  %v3088_v0 = vpack.c.bf16 %v1754_v61, %v1753_v40  ;;  %v1818_v2 = vsel %vm1562_vm0, %v1354_v43, %v1690_v58  ;;  %v1122_v8 = vadd.f32 %v4004_v19, %v3871_v1  ;;  %vm1501_vm3 = vcmp.gt.f32.partialorder %v1111_v3, 0.0 }
 0x145   : > { %v3248_v5 = vpack.c.bf16 %v1818_v2, %v1817_v46  ;;  %v1759_v6 = vsel %vm1503_vm1, %v1119_v48, %v1631_v62  ;;  %v1823_v7 = vsel %vm1567_vm2, %v1375_v49, %v1695_v63  ;;  %v1629_v9 = vmul.f32 0.2, %v1111_v3 }
 0x146   : > { %3332 = vst [vmem:[%s3886_s27 + $0x90] sm:$0xff] %v3088_v0   ;;  %vm1565_vm4 = vcmp.gt.f32.partialorder %v1367_v4, 0.0  ;;  %v1693_v10 = vmul.f32 0.2, %v1367_v4  ;;  %vm1504_vm5 = vcmp.gt.f32.partialorder %v1122_v8, 0.0  ;;  %v1378_v13 = vadd.f32 %v4055_v12, %v4006_v23  ;;  %v4061_v1 = vpop.f32.mrb[48].mxu0 }
 0x147   : > { %3364 = vst [vmem:[%s3886_s27 + $0x190] sm:$0xff] %v3248_v5   ;;  %v1632_v11 = vmul.f32 0.2, %v1122_v8  ;;  %v1114_v14 = vadd.f32 %v4055_v12, %v4008_v24  ;;  %v4063_v15 = vpop.f32.mrb[48].mxu1  ;;  %v1757_v16 = vsel %vm1501_vm3, %v1111_v3, %v1629_v9  ;;  %v1370_v18 = vadd.f32 %v4055_v12, %v4011_v27  ;;  %v4068_v20 = vpop.f32.mrb[49].mxu0 }
 0x148   : > { %v1821_v17 = vsel %vm1565_vm4, %v1367_v4, %v1693_v10  ;;  %v1135_v19 = vadd.f32 %v4055_v12, %v3491_v44  ;;  %v4070_v21 = vpop.f32.mrb[49].mxu1  ;;  %vm1568_vm6 = vcmp.gt.f32.partialorder %v1378_v13, 0.0  ;;  %v1696_v23 = vmul.f32 0.2, %v1378_v13  ;;  %v4072_v24 = vpop.f32.mrb[50].mxu0 }
 0x149   : > { %v1760_v22 = vsel %vm1504_vm5, %v1122_v8, %v1632_v11  ;;  %vm1502_vm7 = vcmp.gt.f32.partialorder %v1114_v14, 0.0  ;;  %v4074_v25 = vpop.f32.mrb[50].mxu1  ;;  %v1630_v28 = vmul.f32 0.2, %v1114_v14  ;;  %vm1566_vm8 = vcmp.gt.f32.partialorder %v1370_v18, 0.0  ;;  %v4076_v27 = vpop.f32.mrb[51].mxu0 }
 0x14a   : > { %v3103_v26 = vpack.c.bf16 %v1760_v22, %v1759_v6  ;;  %v1694_v29 = vmul.f32 0.2, %v1370_v18  ;;  %v1824_v30 = vsel %vm1568_vm6, %v1378_v13, %v1696_v23  ;;  %vm1507_vm9 = vcmp.gt.f32.partialorder %v1135_v19, 0.0  ;;  %v4080_v33 = vpop.f32.mrb[51].mxu1 }
 0x14b   : > { %v1635_v31 = vmul.f32 0.2, %v1135_v19  ;;  %v1391_v32 = vadd.f32 %v4055_v12, %v4026_v45  ;;  %v3263_v34 = vpack.c.bf16 %v1824_v30, %v1823_v7  ;;  %v1758_v35 = vsel %vm1502_vm7, %v1114_v14, %v1630_v28 }
 0x14c   : > { %3335 = vst [vmem:[%s3886_s27 + $0xa8] sm:$0xff] %v3103_v26   ;;  %v1822_v36 = vsel %vm1566_vm8, %v1370_v18, %v1694_v29  ;;  %v1127_v37 = vadd.f32 %v4055_v12, %v4030_v50  ;;  %v3098_v38 = vpack.c.bf16 %v1758_v35, %v1757_v16  ;;  %v1383_v43 = vadd.f32 %v4055_v12, %v4032_v51 }
 0x14d   : > { %v3258_v39 = vpack.c.bf16 %v1822_v36, %v1821_v17  ;;  %v1763_v40 = vsel %vm1507_vm9, %v1135_v19, %v1635_v31  ;;  %vm1571_vm10 = vcmp.gt.f32.partialorder %v1391_v32, 0.0  ;;  %3367 = vst [vmem:[%s3886_s27 + $0x1a8] sm:$0xff] %v3263_v34   ;;  %v1699_v41 = vmul.f32 0.2, %v1391_v32 }
 0x14e   : > { %vm1505_vm11 = vcmp.gt.f32.partialorder %v1127_v37, 0.0  ;;  %v1633_v42 = vmul.f32 0.2, %v1127_v37  ;;  %v4088_v44 = vpop.f32.mrb[52].mxu0  ;;  %3334 = vst [vmem:[%s3886_s27 + $0xa0] sm:$0xff] %v3098_v38   ;;  %v1138_v45 = vadd.f32 %v4055_v12, %v4034_v55  ;;  %v1394_v46 = vadd.f32 %v4055_v12, %v4036_v56 }
 0x14f   : > { %3366 = vst [vmem:[%s3886_s27 + $0x1a0] sm:$0xff] %v3258_v39   ;;  %v1130_v47 = vadd.f32 %v4055_v12, %v4038_v59  ;;  %v1386_v48 = vadd.f32 %v4055_v12, %v4040_v60  ;;  %v4100_v49 = vpop.f32.mrb[52].mxu1  ;;  %v4102_v50 = vpop.f32.mrb[53].mxu0  ;;  %v1827_v51 = vsel %vm1571_vm10, %v1391_v32, %v1699_v41  ;;  %vm1569_vm12 = vcmp.gt.f32.partialorder %v1383_v43, 0.0 }
 0x150   : > { %v1761_v52 = vsel %vm1505_vm11, %v1127_v37, %v1633_v42  ;;  %v1697_v53 = vmul.f32 0.2, %v1383_v43  ;;  %v4104_v54 = vpop.f32.mrb[53].mxu1  ;;  %v4106_v55 = vpop.f32.mrb[54].mxu0  ;;  %vm1508_vm13 = vcmp.gt.f32.partialorder %v1138_v45, 0.0  ;;  %vm1572_vm14 = vcmp.gt.f32.partialorder %v1394_v46, 0.0 }
 0x151   : > { %v1636_v56 = vmul.f32 0.2, %v1138_v45  ;;  %v1700_v57 = vmul.f32 0.2, %v1394_v46  ;;  %vm1506_vm15 = vcmp.gt.f32.partialorder %v1130_v47, 0.0  ;;  %vm1570_vm0 = vcmp.gt.f32.partialorder %v1386_v48, 0.0 }
 0x152   : > { %v1825_v58 = vsel %vm1569_vm12, %v1383_v43, %v1697_v53  ;;  %v1634_v59 = vmul.f32 0.2, %v1130_v47  ;;  %v4108_v60 = vpop.f32.mrb[54].mxu1  ;;  %v4110_v61 = vpop.f32.mrb[55].mxu0  ;;  %v1698_v0 = vmul.f32 0.2, %v1386_v48  ;;  %v1151_v2 = vadd.f32 %v4055_v12, %v4061_v1 }
 0x153   : > { %v1764_v62 = vsel %vm1508_vm13, %v1138_v45, %v1636_v56  ;;  %v1828_v63 = vsel %vm1572_vm14, %v1394_v46, %v1700_v57  ;;  %v4114_v3 = vpop.f32.mrb[55].mxu1  ;;  %v1407_v7 = vadd.f32 %v4055_v12, %v4063_v15  ;;  %v1143_v14 = vadd.f32 %v4055_v12, %v4068_v20 }
 0x154   : > { %v3113_v4 = vpack.c.bf16 %v1764_v62, %v1763_v40  ;;  %v3273_v5 = vpack.c.bf16 %v1828_v63, %v1827_v51  ;;  %v1762_v6 = vsel %vm1506_vm15, %v1130_v47, %v1634_v59  ;;  %v1826_v9 = vsel %vm1570_vm0, %v1386_v48, %v1698_v0 }
 0x155   : > { %v3108_v8 = vpack.c.bf16 %v1762_v6, %v1761_v52  ;;  %vm1511_vm1 = vcmp.gt.f32.partialorder %v1151_v2, 0.0  ;;  %v1639_v10 = vmul.f32 0.2, %v1151_v2  ;;  %v3268_v11 = vpack.c.bf16 %v1826_v9, %v1825_v58 }
 0x156   : > { %3337 = vst [vmem:[%s3886_s27 + $0xb8] sm:$0xff] %v3113_v4   ;;  %3369 = vst [vmem:[%s3886_s27 + $0x1b8] sm:$0xff] %v3273_v5   ;;  %vm1575_vm2 = vcmp.gt.f32.partialorder %v1407_v7, 0.0  ;;  %v1703_v13 = vmul.f32 0.2, %v1407_v7  ;;  %v4122_v1 = vpop.f32.mrb[56].mxu0  ;;  %v1399_v15 = vadd.f32 %v4055_v12, %v4070_v21  ;;  %v1154_v17 = vadd.f32 %v4055_v12, %v4072_v24 }
 0x157   : > { %3336 = vst [vmem:[%s3886_s27 + $0xb0] sm:$0xff] %v3108_v8   ;;  %v1767_v16 = vsel %vm1511_vm1, %v1151_v2, %v1639_v10  ;;  %v1410_v18 = vadd.f32 %v4055_v12, %v4074_v25  ;;  %v4131_v19 = vpop.f32.mrb[56].mxu1  ;;  %v4133_v22 = vpop.f32.mrb[57].mxu0  ;;  %3368 = vst [vmem:[%s3886_s27 + $0x1b0] sm:$0xff] %v3268_v11   ;;  %vm1509_vm3 = vcmp.gt.f32.partialorder %v1143_v14, 0.0  ;;  %v1146_v26 = vadd.f32 %v4055_v12, %v4076_v27 }
 0x158   : > { %v1831_v23 = vsel %vm1575_vm2, %v1407_v7, %v1703_v13  ;;  %v1637_v20 = vmul.f32 0.2, %v1143_v14  ;;  %v4138_v28 = vpop.f32.mrb[57].mxu1  ;;  %v4140_v21 = vpop.f32.mrb[58].mxu0  ;;  %vm1573_vm4 = vcmp.gt.f32.partialorder %v1399_v15, 0.0  ;;  %vm1512_vm5 = vcmp.gt.f32.partialorder %v1154_v17, 0.0 }
 0x159   : > { %v1701_v24 = vmul.f32 0.2, %v1399_v15  ;;  %v1640_v29 = vmul.f32 0.2, %v1154_v17  ;;  %vm1576_vm6 = vcmp.gt.f32.partialorder %v1410_v18, 0.0  ;;  %vm1510_vm7 = vcmp.gt.f32.partialorder %v1146_v26, 0.0 }
 0x15a   : > { %v1765_v25 = vsel %vm1509_vm3, %v1143_v14, %v1637_v20  ;;  %v1704_v30 = vmul.f32 0.2, %v1410_v18  ;;  %v4142_v31 = vpop.f32.mrb[58].mxu1  ;;  %v4144_v32 = vpop.f32.mrb[59].mxu0  ;;  %v1638_v27 = vmul.f32 0.2, %v1146_v26  ;;  %v1402_v36 = vadd.f32 %v4055_v12, %v4080_v33 }
 0x15b   : > { %v1829_v34 = vsel %vm1573_vm4, %v1399_v15, %v1701_v24  ;;  %v1768_v35 = vsel %vm1512_vm5, %v1154_v17, %v1640_v29  ;;  %v4148_v37 = vpop.f32.mrb[59].mxu1  ;;  %v1167_v40 = vadd.f32 %v4055_v12, %v4088_v44  ;;  %v1423_v41 = vadd.f32 %v4055_v12, %v4100_v49 }
 0x15c   : > { %v3123_v38 = vpack.c.bf16 %v1768_v35, %v1767_v16  ;;  %v1832_v39 = vsel %vm1576_vm6, %v1410_v18, %v1704_v30  ;;  %v1766_v43 = vsel %vm1510_vm7, %v1146_v26, %v1638_v27  ;;  %vm1574_vm8 = vcmp.gt.f32.partialorder %v1402_v36, 0.0 }
 0x15d   : > { %v3283_v42 = vpack.c.bf16 %v1832_v39, %v1831_v23  ;;  %v1702_v45 = vmul.f32 0.2, %v1402_v36  ;;  %v3118_v46 = vpack.c.bf16 %v1766_v43, %v1765_v25  ;;  %vm1515_vm9 = vcmp.gt.f32.partialorder %v1167_v40, 0.0 }
 0x15e   : > { %3339 = vst [vmem:[%s3886_s27 + $0xc8] sm:$0xff] %v3123_v38   ;;  %v1643_v33 = vmul.f32 0.2, %v1167_v40  ;;  %vm1579_vm10 = vcmp.gt.f32.partialorder %v1423_v41, 0.0  ;;  %v4155_v47 = vpop.f32.mrb[60].mxu0  ;;  %v1159_v44 = vadd.f32 %v4055_v12, %v4102_v50  ;;  %v1415_v49 = vadd.f32 %v4055_v12, %v4104_v54 }
 0x15f   : > { %3371 = vst [vmem:[%s3886_s27 + $0x1c8] sm:$0xff] %v3283_v42   ;;  %v1830_v48 = vsel %vm1574_vm8, %v1402_v36, %v1702_v45  ;;  %v1707_v51 = vmul.f32 0.2, %v1423_v41  ;;  %v4162_v52 = vpop.f32.mrb[60].mxu1  ;;  %v4164_v53 = vpop.f32.mrb[61].mxu0  ;;  %3338 = vst [vmem:[%s3886_s27 + $0xc0] sm:$0xff] %v3118_v46   ;;  %v1170_v58 = vadd.f32 %v4055_v12, %v4106_v55  ;;  %v1426_v59 = vadd.f32 %v4055_v12, %v4108_v60 }
 0x160   : > { %v3278_v56 = vpack.c.bf16 %v1830_v48, %v1829_v34  ;;  %v1771_v57 = vsel %vm1515_vm9, %v1167_v40, %v1643_v33  ;;  %v4171_v62 = vpop.f32.mrb[61].mxu1  ;;  %v4173_v50 = vpop.f32.mrb[62].mxu0  ;;  %vm1513_vm11 = vcmp.gt.f32.partialorder %v1159_v44, 0.0  ;;  %v1641_v63 = vmul.f32 0.2, %v1159_v44 }
 0x161   : > { %v1835_v54 = vsel %vm1579_vm10, %v1423_v41, %v1707_v51  ;;  %vm1577_vm12 = vcmp.gt.f32.partialorder %v1415_v49, 0.0  ;;  %v4176_v0 = vpop.f32.mrb[62].mxu1  ;;  %v4178_v2 = vpop.f32.mrb[63].mxu0  ;;  %v1705_v4 = vmul.f32 0.2, %v1415_v49  ;;  %vm1516_vm13 = vcmp.gt.f32.partialorder %v1170_v58, 0.0 }
 0x162   : > { %3370 = vst [vmem:[%s3886_s27 + $0x1c0] sm:$0xff] %v3278_v56   ;;  %v1644_v55 = vmul.f32 0.2, %v1170_v58  ;;  %vm1580_vm14 = vcmp.gt.f32.partialorder %v1426_v59, 0.0  ;;  %v1769_v5 = vsel %vm1513_vm11, %v1159_v44, %v1641_v63  ;;  %v1708_v60 = vmul.f32 0.2, %v1426_v59 }
 0x163   : > { %v1162_v6 = vadd.f32 %v4055_v12, %v4110_v61  ;;  %v1418_v7 = vadd.f32 %v4055_v12, %v4114_v3  ;;  %v4185_v8 = vpop.f32.mrb[63].mxu1  ;;  %v1833_v9 = vsel %vm1577_vm12, %v1415_v49, %v1705_v4  ;;  %v1183_v11 = vadd.f32 %v4055_v12, %v4122_v1 }
 0x164   : > { %v1772_v10 = vsel %vm1516_vm13, %v1170_v58, %v1644_v55  ;;  %v1439_v13 = vadd.f32 %v4055_v12, %v4131_v19  ;;  %v1836_v16 = vsel %vm1580_vm14, %v1426_v59, %v1708_v60  ;;  %v1175_v19 = vadd.f32 %v4055_v12, %v4133_v22 }
 0x165   : > { %v3133_v14 = vpack.c.bf16 %v1772_v10, %v1771_v57  ;;  %vm1514_vm15 = vcmp.gt.f32.partialorder %v1162_v6, 0.0  ;;  %v1642_v15 = vmul.f32 0.2, %v1162_v6  ;;  %v3293_v17 = vpack.c.bf16 %v1836_v16, %v1835_v54 }
 0x166   : > { %vm1578_vm0 = vcmp.gt.f32.partialorder %v1418_v7, 0.0  ;;  %v1706_v61 = vmul.f32 0.2, %v1418_v7  ;;  %vm1519_vm1 = vcmp.gt.f32.partialorder %v1183_v11, 0.0  ;;  %v1647_v18 = vmul.f32 0.2, %v1183_v11 }
 0x167   : > { %3341 = vst [vmem:[%s3886_s27 + $0xd8] sm:$0xff] %v3133_v14   ;;  %v1770_v3 = vsel %vm1514_vm15, %v1162_v6, %v1642_v15  ;;  %vm1583_vm2 = vcmp.gt.f32.partialorder %v1439_v13, 0.0  ;;  %v1711_v23 = vmul.f32 0.2, %v1439_v13  ;;  %3373 = vst [vmem:[%s3886_s27 + $0x1d8] sm:$0xff] %v3293_v17   ;;  %v1431_v26 = vadd.f32 %v4055_v12, %v4138_v28 }
 0x168   : > { %v3128_v1 = vpack.c.bf16 %v1770_v3, %v1769_v5  ;;  %v1834_v20 = vsel %vm1578_vm0, %v1418_v7, %v1706_v61  ;;  %v1775_v29 = vsel %vm1519_vm1, %v1183_v11, %v1647_v18  ;;  %v1186_v30 = vadd.f32 %v4055_v12, %v4140_v21 }
 0x169   : > { %v3288_v24 = vpack.c.bf16 %v1834_v20, %v1833_v9  ;;  %v1839_v25 = vsel %vm1583_vm2, %v1439_v13, %v1711_v23  ;;  %vm1517_vm3 = vcmp.gt.f32.partialorder %v1175_v19, 0.0  ;;  %v1645_v34 = vmul.f32 0.2, %v1175_v19 }
 0x16a   : > { %3340 = vst [vmem:[%s3886_s27 + $0xd0] sm:$0xff] %v3128_v1   ;;  %vm1581_vm4 = vcmp.gt.f32.partialorder %v1431_v26, 0.0  ;;  %v1709_v35 = vmul.f32 0.2, %v1431_v26  ;;  %vm1520_vm5 = vcmp.gt.f32.partialorder %v1186_v30, 0.0  ;;  %v1442_v22 = vadd.f32 %v4055_v12, %v4142_v31 }
 0x16b   : > { %3372 = vst [vmem:[%s3886_s27 + $0x1d0] sm:$0xff] %v3288_v24   ;;  %v1648_v27 = vmul.f32 0.2, %v1186_v30  ;;  %v1178_v28 = vadd.f32 %v4055_v12, %v4144_v32  ;;  %v1773_v36 = vsel %vm1517_vm3, %v1175_v19, %v1645_v34  ;;  %v1434_v21 = vadd.f32 %v4055_v12, %v4148_v37 }
 0x16c   : > { %v1837_v38 = vsel %vm1581_vm4, %v1431_v26, %v1709_v35  ;;  %v1199_v39 = vadd.f32 %v4055_v12, %v4155_v47  ;;  %vm1584_vm6 = vcmp.gt.f32.partialorder %v1442_v22, 0.0  ;;  %v1712_v41 = vmul.f32 0.2, %v1442_v22 }
 0x16d   : > { %v1776_v40 = vsel %vm1520_vm5, %v1186_v30, %v1648_v27  ;;  %vm1518_vm7 = vcmp.gt.f32.partialorder %v1178_v28, 0.0  ;;  %v1646_v43 = vmul.f32 0.2, %v1178_v28  ;;  %vm1582_vm8 = vcmp.gt.f32.partialorder %v1434_v21, 0.0 }
 0x16e   : > { %v3143_v42 = vpack.c.bf16 %v1776_v40, %v1775_v29  ;;  %v1710_v31 = vmul.f32 0.2, %v1434_v21  ;;  %v1840_v32 = vsel %vm1584_vm6, %v1442_v22, %v1712_v41  ;;  %vm1523_vm9 = vcmp.gt.f32.partialorder %v1199_v39, 0.0 }
 0x16f   : > { %v1651_v45 = vmul.f32 0.2, %v1199_v39  ;;  %v1455_v37 = vadd.f32 %v4055_v12, %v4162_v52  ;;  %v3303_v46 = vpack.c.bf16 %v1840_v32, %v1839_v25  ;;  %v1774_v33 = vsel %vm1518_vm7, %v1178_v28, %v1646_v43 }
 0x170   : > { %3343 = vst [vmem:[%s3886_s27 + $0xe8] sm:$0xff] %v3143_v42   ;;  %v1838_v47 = vsel %vm1582_vm8, %v1434_v21, %v1710_v31  ;;  %v1191_v48 = vadd.f32 %v4055_v12, %v4164_v53  ;;  %v3138_v51 = vpack.c.bf16 %v1774_v33, %v1773_v36  ;;  %v1447_v57 = vadd.f32 %v4055_v12, %v4171_v62 }
 0x171   : > { %v3298_v44 = vpack.c.bf16 %v1838_v47, %v1837_v38  ;;  %3375 = vst [vmem:[%s3886_s27 + $0x1e8] sm:$0xff] %v3303_v46   ;;  %v1779_v49 = vsel %vm1523_vm9, %v1199_v39, %v1651_v45  ;;  %v1715_v56 = vmul.f32 0.2, %v1455_v37  ;;  %v1202_v52 = vadd.f32 %v4055_v12, %v4173_v50 }
 0x172   : > { %3342 = vst [vmem:[%s3886_s27 + $0xe0] sm:$0xff] %v3138_v51   ;;  %v1458_v58 = vadd.f32 %v4055_v12, %v4176_v0  ;;  %v1194_v59 = vadd.f32 %v4055_v12, %v4178_v2  ;;  %v1450_v53 = vadd.f32 %v4055_v12, %v4185_v8  ;;  %vm1587_vm10 = vcmp.gt.f32.partialorder %v1455_v37, 0.0 }
 0x173   : > { %3374 = vst [vmem:[%s3886_s27 + $0x1e0] sm:$0xff] %v3298_v44   ;;  %vm1521_vm11 = vcmp.gt.f32.partialorder %v1191_v48, 0.0  ;;  %v1649_v54 = vmul.f32 0.2, %v1191_v48  ;;  %v1713_v63 = vmul.f32 0.2, %v1447_v57  ;;  %v1843_v0 = vsel %vm1587_vm10, %v1455_v37, %v1715_v56 }
 0x174   : > { %vm1524_vm12 = vcmp.gt.f32.partialorder %v1202_v52, 0.0  ;;  %v1652_v62 = vmul.f32 0.2, %v1202_v52  ;;  %vm1588_vm13 = vcmp.gt.f32.partialorder %v1458_v58, 0.0  ;;  %v1716_v4 = vmul.f32 0.2, %v1458_v58 }
 0x175   : > { %vm1585_vm14 = vcmp.gt.f32.partialorder %v1447_v57, 0.0  ;;  %vm1522_vm15 = vcmp.gt.f32.partialorder %v1194_v59, 0.0  ;;  %v1650_v50 = vmul.f32 0.2, %v1194_v59  ;;  %vm1586_vm0 = vcmp.gt.f32.partialorder %v1450_v53, 0.0 }
 0x176   : > { %v1780_v2 = vsel %vm1524_vm12, %v1202_v52, %v1652_v62  ;;  %v1844_v55 = vsel %vm1588_vm13, %v1458_v58, %v1716_v4  ;;  %v1714_v12 = vmul.f32 0.2, %v1450_v53  ;;  %v1777_v5 = vsel %vm1521_vm11, %v1191_v48, %v1649_v54 }
 0x177   : > { %v3153_v60 = vpack.c.bf16 %v1780_v2, %v1779_v49  ;;  %v3313_v6 = vpack.c.bf16 %v1844_v55, %v1843_v0  ;;  %v1778_v7 = vsel %vm1522_vm15, %v1194_v59, %v1650_v50  ;;  %v1841_v8 = vsel %vm1585_vm14, %v1447_v57, %v1713_v63 }
 0x178   : > { %v3148_v9 = vpack.c.bf16 %v1778_v7, %v1777_v5  ;;  %v1842_v10 = vsel %vm1586_vm0, %v1450_v53, %v1714_v12 }
 0x179   : > { %3345 = vst [vmem:[%s3886_s27 + $0xf8] sm:$0xff] %v3153_v60   ;;  %3377 = vst [vmem:[%s3886_s27 + $0x1f8] sm:$0xff] %v3313_v6   ;;  %v3308_v11 = vpack.c.bf16 %v1842_v10, %v1841_v8 }
 0x17a   : > { %3344 = vst [vmem:[%s3886_s27 + $0xf0] sm:$0xff] %v3148_v9  }
 0x17b   : > { %3376 = vst [vmem:[%s3886_s27 + $0x1f0] sm:$0xff] %v3308_v11  }
 0x17c PF: > { %s13_s14 = sadd.s32 1, %s3687_s14   ;;  %s4244_s12 = smov %s3683_s13 }
 0x17d   : > { %p10_p5 = scmp.ge.s32.totalorder %s13_s14, 4   ;;  %s4245_s13 = smov %s4247_s15 }
 0x17f   :  { %12 = sbr.rel (!%p10_p5) target bundleno = 2 (0x2), region = 68 }

// kernel: discriminator_forward.5
= control target key start
LH: loop header
LB: loop body
LE: loop exit
PB: predicated region body
PF: predicated region fallthrough
CT: control target
= control target key end

     0   :  { %vm1155_vm0 = vcmask 1040384   ;;  %s2207_s1 = inlined_call_operand.vmem [shape: bf16[128,128], index: 1, kind: input, shape index: {}]   ;;  %s2208_s0 = inlined_call_operand.vmem [shape: bf16[512,128], index: 0, kind: input, shape index: {}]   ;;  %s2209_s2 = inlined_call_operand.vmem [shape: f32[1,128], index: 2, kind: input, shape index: {}]   ;;  %s2210_s3 = inlined_call_operand.vmem [shape: bf16[512,128], index: 3, kind: output, shape index: {0}]   ;;  %s2211_s4 = inlined_call_operand.vmem [shape: f32[1,2,128], index: 4, kind: output, shape index: {1}]  }
   0x1   :  { %v1662_v0 = vld [vmem:[%s2207_s1] sm:$0xff]   ;;  %v1663_v1 = vld [vmem:[%s2207_s1 + $0x8] sm:$0xff]   ;;  %v1664_v2 = vld [vmem:[%s2207_s1 + $0x10] sm:$0xff]  }
   0x2   :  { %1566 = vmatprep.subr.bf16.mxu0 %v1662_v0  ;;  %1646 = vmatprep.subr.bf16.mxu1 %v1662_v0  ;;  %v1665_v3 = vld [vmem:[%s2207_s1 + $0x18] sm:$0xff]   ;;  %v1670_v4 = vld [vmem:[%s2208_s0] sm:$0xff]   ;;  %v1667_v6 = vld [vmem:[%s2207_s1 + $0x28] sm:$0xff]  }
   0x3   :  { %1567 = vmatpush3.bf16.msra.mxu0 %v1662_v0  ;;  %1654 = vmatpush3.bf16.msra.mxu1 %v1662_v0  ;;  %v1666_v5 = vld [vmem:[%s2207_s1 + $0x20] sm:$0xff]   ;;  %v1668_v7 = vld [vmem:[%s2207_s1 + $0x30] sm:$0xff]   ;;  %v1669_v8 = vld [vmem:[%s2207_s1 + $0x38] sm:$0xff]  }
   0x4   :  { %1568 = vmatprep.subr.bf16.mxu0 %v1663_v1  ;;  %1647 = vmatprep.subr.bf16.mxu1 %v1663_v1  ;;  %v1686_v9 = vld [vmem:[%s2208_s0 + $0x80] sm:$0xff]   ;;  %v1671_v10 = vld [vmem:[%s2208_s0 + $0x8] sm:$0xff]   ;;  %v1672_v11 = vld [vmem:[%s2208_s0 + $0x10] sm:$0xff]  }
   0x5   :  { %1582 = vmatprep.mubr.bf16.mxu0 %v1670_v4  ;;  %1614 = vmatprep.mubr.bf16.mxu1 %v1686_v9  ;;  %v1687_v12 = vld [vmem:[%s2208_s0 + $0x88] sm:$0xff]   ;;  %v1688_v13 = vld [vmem:[%s2208_s0 + $0x90] sm:$0xff]   ;;  %v1673_v14 = vld [vmem:[%s2208_s0 + $0x18] sm:$0xff]  }
   0x6   :  { %v1674_v15 = vld [vmem:[%s2208_s0 + $0x20] sm:$0xff]   ;;  %v1689_v16 = vld [vmem:[%s2208_s0 + $0x98] sm:$0xff]   ;;  %v1675_v18 = vld [vmem:[%s2208_s0 + $0x28] sm:$0xff]  }
   0x7   :  { %1569 = vmatpush3.bf16.msra.mxu0 %v1663_v1  ;;  %1655 = vmatpush3.bf16.msra.mxu1 %v1663_v1  ;;  %v1690_v17 = vld [vmem:[%s2208_s0 + $0xa0] sm:$0xff]   ;;  %v1691_v19 = vld [vmem:[%s2208_s0 + $0xa8] sm:$0xff]   ;;  %v1676_v20 = vld [vmem:[%s2208_s0 + $0x30] sm:$0xff]  }
   0x8   :  { %1570 = vmatprep.subr.bf16.mxu0 %v1664_v2  ;;  %1648 = vmatprep.subr.bf16.mxu1 %v1664_v2  ;;  %v1692_v21 = vld [vmem:[%s2208_s0 + $0xb0] sm:$0xff]   ;;  %v1677_v22 = vld [vmem:[%s2208_s0 + $0x38] sm:$0xff]   ;;  %v1678_v24 = vld [vmem:[%s2208_s0 + $0x40] sm:$0xff]  }
   0x9   :  { %v1693_v23 = vld [vmem:[%s2208_s0 + $0xb8] sm:$0xff]   ;;  %v1694_v25 = vld [vmem:[%s2208_s0 + $0xc0] sm:$0xff]   ;;  %v1679_v26 = vld [vmem:[%s2208_s0 + $0x48] sm:$0xff]  }
   0xa   :  { %v1695_v27 = vld [vmem:[%s2208_s0 + $0xc8] sm:$0xff]   ;;  %v1680_v28 = vld [vmem:[%s2208_s0 + $0x50] sm:$0xff]   ;;  %v1681_v30 = vld [vmem:[%s2208_s0 + $0x58] sm:$0xff]  }
   0xb   :  { %1571 = vmatpush3.bf16.msra.mxu0 %v1664_v2  ;;  %1656 = vmatpush3.bf16.msra.mxu1 %v1664_v2  ;;  %v1696_v29 = vld [vmem:[%s2208_s0 + $0xd0] sm:$0xff]   ;;  %v1697_v31 = vld [vmem:[%s2208_s0 + $0xd8] sm:$0xff]   ;;  %v1682_v32 = vld [vmem:[%s2208_s0 + $0x60] sm:$0xff]  }
   0xc   :  { %1572 = vmatprep.subr.bf16.mxu0 %v1665_v3  ;;  %1649 = vmatprep.subr.bf16.mxu1 %v1665_v3  ;;  %v1698_v33 = vld [vmem:[%s2208_s0 + $0xe0] sm:$0xff]   ;;  %v1683_v34 = vld [vmem:[%s2208_s0 + $0x68] sm:$0xff]   ;;  %v1684_v36 = vld [vmem:[%s2208_s0 + $0x70] sm:$0xff]  }
   0xd   :  { %v1699_v35 = vld [vmem:[%s2208_s0 + $0xe8] sm:$0xff]   ;;  %v1700_v37 = vld [vmem:[%s2208_s0 + $0xf0] sm:$0xff]   ;;  %v1685_v38 = vld [vmem:[%s2208_s0 + $0x78] sm:$0xff]  }
   0xe   :  { %v1701_v39 = vld [vmem:[%s2208_s0 + $0xf8] sm:$0xff]   ;;  %v1850_v40 = vld [vmem:[%s2209_s2] ss:$0 sm:$0xff] }
   0xf   :  { %1573 = vmatpush3.bf16.msra.mxu0 %v1665_v3  ;;  %1657 = vmatpush3.bf16.msra.mxu1 %v1665_v3 }
  0x10   :  { %1574 = vmatprep.subr.bf16.mxu0 %v1666_v5  ;;  %1650 = vmatprep.subr.bf16.mxu1 %v1666_v5 }
  0x13   :  { %1575 = vmatpush3.bf16.msra.mxu0 %v1666_v5  ;;  %1658 = vmatpush3.bf16.msra.mxu1 %v1666_v5 }
  0x14   :  { %1576 = vmatprep.subr.bf16.mxu0 %v1667_v6  ;;  %1651 = vmatprep.subr.bf16.mxu1 %v1667_v6 }
  0x17   :  { %1577 = vmatpush3.bf16.msra.mxu0 %v1667_v6  ;;  %1659 = vmatpush3.bf16.msra.mxu1 %v1667_v6 }
  0x18   :  { %1578 = vmatprep.subr.bf16.mxu0 %v1668_v7  ;;  %1652 = vmatprep.subr.bf16.mxu1 %v1668_v7 }
  0x1b   :  { %1579 = vmatpush3.bf16.msra.mxu0 %v1668_v7  ;;  %1660 = vmatpush3.bf16.msra.mxu1 %v1668_v7 }
  0x1c   :  { %1580 = vmatprep.subr.bf16.mxu0 %v1669_v8  ;;  %1653 = vmatprep.subr.bf16.mxu1 %v1669_v8 }
  0x1f   :  { %1581 = vmatpush3.bf16.msra.mxu0 %v1669_v8  ;;  %1661 = vmatpush3.bf16.msra.mxu1 %v1669_v8 }
  0x22   :  { %1583 = vmatmul.mubr.bf16.vlgmr.msra.gmra.mrb[0].mxu0 %v1671_v10  ;;  %1615 = vmatmul.mubr.bf16.vlgmr.msra.gmra.mrb[0].mxu1 %v1687_v12 }
  0x23   :  { %1586 = vmatprep.mubr.bf16.mxu0 %v1672_v11  ;;  %1618 = vmatprep.mubr.bf16.mxu1 %v1688_v13 }
  0x2a   :  { %1587 = vmatmul.mubr.bf16.gmra.mrb[4].mxu0 %v1673_v14  ;;  %1619 = vmatmul.mubr.bf16.gmra.mrb[4].mxu1 %v1689_v16 }
  0x2b   :  { %1590 = vmatprep.mubr.bf16.mxu0 %v1674_v15  ;;  %1622 = vmatprep.mubr.bf16.mxu1 %v1690_v17 }
  0x32   :  { %1591 = vmatmul.mubr.bf16.gmra.mrb[8].mxu0 %v1675_v18  ;;  %1623 = vmatmul.mubr.bf16.gmra.mrb[8].mxu1 %v1691_v19 }
  0x33   :  { %1594 = vmatprep.mubr.bf16.mxu0 %v1676_v20  ;;  %1626 = vmatprep.mubr.bf16.mxu1 %v1692_v21 }
  0x3a   :  { %1595 = vmatmul.mubr.bf16.gmra.mrb[12].mxu0 %v1677_v22  ;;  %1627 = vmatmul.mubr.bf16.gmra.mrb[12].mxu1 %v1693_v23 }
  0x3b   :  { %1598 = vmatprep.mubr.bf16.mxu0 %v1678_v24  ;;  %1630 = vmatprep.mubr.bf16.mxu1 %v1694_v25 }
  0x42   :  { %1599 = vmatmul.mubr.bf16.gmra.mrb[16].mxu0 %v1679_v26  ;;  %1631 = vmatmul.mubr.bf16.gmra.mrb[16].mxu1 %v1695_v27 }
  0x43   :  { %1602 = vmatprep.mubr.bf16.mxu0 %v1680_v28  ;;  %1634 = vmatprep.mubr.bf16.mxu1 %v1696_v29 }
  0x4a   :  { %1603 = vmatmul.mubr.bf16.gmra.mrb[20].mxu0 %v1681_v30  ;;  %1635 = vmatmul.mubr.bf16.gmra.mrb[20].mxu1 %v1697_v31 }
  0x4b   :  { %1606 = vmatprep.mubr.bf16.mxu0 %v1682_v32  ;;  %1638 = vmatprep.mubr.bf16.mxu1 %v1698_v33 }
  0x52   :  { %1607 = vmatmul.mubr.bf16.gmra.mrb[24].mxu0 %v1683_v34  ;;  %1639 = vmatmul.mubr.bf16.gmra.mrb[24].mxu1 %v1699_v35 }
  0x53   :  { %1610 = vmatprep.mubr.bf16.mxu0 %v1684_v36  ;;  %1642 = vmatprep.mubr.bf16.mxu1 %v1700_v37 }
  0x5a   :  { %1611 = vmatmul.mubr.bf16.gmra.mrb[28].mxu0 %v1685_v38  ;;  %1643 = vmatmul.mubr.bf16.gmra.mrb[28].mxu1 %v1701_v39 }
  0xf5   :  { %v1584_v41 = vpop.f32.mrb[0].mxu0  ;;  %v1616_v42 = vpop.f32.mrb[0].mxu1 }
  0xf6   :  { %v378_v43 = vpop.f32.mrb[1].mxu0  ;;  %v1853_v44 = vadd.f32 %v1616_v42, %v1850_v40  ;;  %v506_v45 = vpop.f32.mrb[1].mxu1  ;;  %v387_v50 = vadd.f32 %v1584_v41, %v1850_v40 }
  0xf7   :  { %v379_v46 = vadd.f32 %v1850_v40, %v378_v43  ;;  %v1585_v47 = vpop.f32.mrb[2].mxu0  ;;  %v1857_v48 = vadd.f32 %v1850_v40, %v506_v45  ;;  %v1617_v49 = vpop.f32.mrb[2].mxu1 }
  0xf8   :  { %v390_v51 = vadd.f32 %v1585_v47, %v1850_v40  ;;  %v381_v52 = vpop.f32.mrb[3].mxu0  ;;  %v1862_v53 = vadd.f32 %v1617_v49, %v1850_v40  ;;  %v509_v54 = vpop.f32.mrb[3].mxu1  ;;  %v1024_v0 = vmul.f32 %v387_v50, %v387_v50 }
  0xf9   :  { %v382_v55 = vadd.f32 %v1850_v40, %v381_v52  ;;  %v1866_v56 = vadd.f32 %v1850_v40, %v509_v54  ;;  %v1022_v57 = vmul.f32 %v379_v46, %v379_v46 }
  0xfa   :  { %v1343_v58 = vpack.c.bf16 %v390_v51, %v387_v50  ;;  %v1423_v59 = vpack.c.bf16 %v1862_v53, %v1853_v44  ;;  %v1025_v8 = vmul.f32 %v390_v51, %v390_v51 }
  0xfb   :  { %v1338_v60 = vpack.c.bf16 %v382_v55, %v379_v46  ;;  %v953_v61 = vadd.f32 %v382_v55, %v379_v46  ;;  %v1023_v62 = vmul.f32 %v382_v55, %v382_v55  ;;  %v1418_v63 = vpack.c.bf16 %v1866_v56, %v1857_v48 }
  0xfc   :  { %1495 = vst [vmem:[%s2210_s3 + $0x8] sm:$0xff] %v1343_v58   ;;  %1511 = vst [vmem:[%s2210_s3 + $0x88] sm:$0xff] %v1423_v59  }
  0xfd   :  { %1339 = vst [vmem:[%s2210_s3] sm:$0xff] %v1338_v60   ;;  %v954_v1 = vadd.f32 %v953_v61, %v387_v50  ;;  %v1086_v2 = vadd.f32 %v1023_v62, %v1022_v57  ;;  %v1588_v3 = vpop.f32.mrb[4].mxu0  ;;  %1510 = vst [vmem:[%s2210_s3 + $0x80] sm:$0xff] %v1418_v63   ;;  %v1620_v4 = vpop.f32.mrb[4].mxu1 }
  0xfe   :  { %v394_v5 = vpop.f32.mrb[5].mxu0  ;;  %v1885_v6 = vadd.f32 %v1620_v4, %v1850_v40  ;;  %v522_v7 = vpop.f32.mrb[5].mxu1  ;;  %v403_v14 = vadd.f32 %v1588_v3, %v1850_v40 }
  0xff   :  { %v1087_v9 = vadd.f32 %v1086_v2, %v1024_v0  ;;  %v395_v10 = vadd.f32 %v1850_v40, %v394_v5  ;;  %v955_v11 = vadd.f32 %v954_v1, %v390_v51  ;;  %v1589_v12 = vpop.f32.mrb[6].mxu0  ;;  %v1621_v13 = vpop.f32.mrb[6].mxu1  ;;  %v1895_v24 = vadd.f32 %v1850_v40, %v522_v7 }
 0x100   :  { %v406_v15 = vadd.f32 %v1589_v12, %v1850_v40  ;;  %v397_v16 = vpop.f32.mrb[7].mxu0  ;;  %v1891_v17 = vadd.f32 %v1621_v13, %v1850_v40  ;;  %v525_v18 = vpop.f32.mrb[7].mxu1  ;;  %v1028_v31 = vmul.f32 %v403_v14, %v403_v14 }
 0x101   :  { %v956_v19 = vadd.f32 %v955_v11, %v395_v10  ;;  %v1026_v20 = vmul.f32 %v395_v10, %v395_v10  ;;  %v1088_v21 = vadd.f32 %v1087_v9, %v1025_v8  ;;  %v398_v22 = vadd.f32 %v1850_v40, %v397_v16 }
 0x102   :  { %v1353_v23 = vpack.c.bf16 %v406_v15, %v403_v14  ;;  %v1433_v25 = vpack.c.bf16 %v1891_v17, %v1885_v6  ;;  %v1906_v30 = vadd.f32 %v1850_v40, %v525_v18  ;;  %v1029_v41 = vmul.f32 %v406_v15, %v406_v15 }
 0x103   :  { %v1089_v26 = vadd.f32 %v1088_v21, %v1026_v20  ;;  %v1348_v27 = vpack.c.bf16 %v398_v22, %v395_v10  ;;  %v957_v28 = vadd.f32 %v956_v19, %v398_v22  ;;  %v1027_v29 = vmul.f32 %v398_v22, %v398_v22 }
 0x104   :  { %1497 = vst [vmem:[%s2210_s3 + $0x18] sm:$0xff] %v1353_v23   ;;  %1513 = vst [vmem:[%s2210_s3 + $0x98] sm:$0xff] %v1433_v25   ;;  %v1428_v37 = vpack.c.bf16 %v1906_v30, %v1895_v24 }
 0x105   :  { %1496 = vst [vmem:[%s2210_s3 + $0x10] sm:$0xff] %v1348_v27   ;;  %v958_v32 = vadd.f32 %v957_v28, %v403_v14  ;;  %v1090_v33 = vadd.f32 %v1089_v26, %v1027_v29  ;;  %v1592_v34 = vpop.f32.mrb[8].mxu0  ;;  %v1624_v35 = vpop.f32.mrb[8].mxu1 }
 0x106   :  { %v410_v36 = vpop.f32.mrb[9].mxu0  ;;  %v1914_v38 = vadd.f32 %v1624_v35, %v1850_v40  ;;  %v538_v39 = vpop.f32.mrb[9].mxu1  ;;  %v419_v49 = vadd.f32 %v1592_v34, %v1850_v40  ;;  %1512 = vst [vmem:[%s2210_s3 + $0x90] sm:$0xff] %v1428_v37  }
 0x107   :  { %v1091_v42 = vadd.f32 %v1090_v33, %v1028_v31  ;;  %v411_v43 = vadd.f32 %v1850_v40, %v410_v36  ;;  %v959_v45 = vadd.f32 %v958_v32, %v406_v15  ;;  %v1593_v46 = vpop.f32.mrb[10].mxu0  ;;  %v1625_v47 = vpop.f32.mrb[10].mxu1  ;;  %v1927_v61 = vadd.f32 %v1850_v40, %v538_v39 }
 0x108   :  { %v422_v50 = vadd.f32 %v1593_v46, %v1850_v40  ;;  %v413_v51 = vpop.f32.mrb[11].mxu0  ;;  %v1923_v52 = vadd.f32 %v1625_v47, %v1850_v40  ;;  %v541_v54 = vpop.f32.mrb[11].mxu1  ;;  %v1032_v4 = vmul.f32 %v419_v49, %v419_v49 }
 0x109   :  { %v960_v55 = vadd.f32 %v959_v45, %v411_v43  ;;  %v1030_v57 = vmul.f32 %v411_v43, %v411_v43  ;;  %v1092_v58 = vadd.f32 %v1091_v42, %v1029_v41  ;;  %v414_v59 = vadd.f32 %v1850_v40, %v413_v51 }
 0x10a   :  { %v1363_v60 = vpack.c.bf16 %v422_v50, %v419_v49  ;;  %v1443_v62 = vpack.c.bf16 %v1923_v52, %v1914_v38  ;;  %v1938_v3 = vadd.f32 %v1850_v40, %v541_v54  ;;  %v1033_v14 = vmul.f32 %v422_v50, %v422_v50 }
 0x10b   :  { %v1093_v63 = vadd.f32 %v1092_v58, %v1030_v57  ;;  %v1358_v0 = vpack.c.bf16 %v414_v59, %v411_v43  ;;  %v961_v1 = vadd.f32 %v960_v55, %v414_v59  ;;  %v1031_v2 = vmul.f32 %v414_v59, %v414_v59 }
 0x10c   :  { %1499 = vst [vmem:[%s2210_s3 + $0x28] sm:$0xff] %v1363_v60   ;;  %1515 = vst [vmem:[%s2210_s3 + $0xa8] sm:$0xff] %v1443_v62   ;;  %v1438_v11 = vpack.c.bf16 %v1938_v3, %v1927_v61 }
 0x10d   :  { %1498 = vst [vmem:[%s2210_s3 + $0x20] sm:$0xff] %v1358_v0   ;;  %v962_v5 = vadd.f32 %v961_v1, %v419_v49  ;;  %v1094_v7 = vadd.f32 %v1093_v63, %v1031_v2  ;;  %v1596_v8 = vpop.f32.mrb[12].mxu0  ;;  %v1628_v9 = vpop.f32.mrb[12].mxu1 }
 0x10e   :  { %v426_v10 = vpop.f32.mrb[13].mxu0  ;;  %v1946_v12 = vadd.f32 %v1628_v9, %v1850_v40  ;;  %v554_v13 = vpop.f32.mrb[13].mxu1  ;;  %v435_v21 = vadd.f32 %v1596_v8, %v1850_v40  ;;  %1514 = vst [vmem:[%s2210_s3 + $0xa0] sm:$0xff] %v1438_v11  }
 0x10f   :  { %v1095_v15 = vadd.f32 %v1094_v7, %v1032_v4  ;;  %v427_v16 = vadd.f32 %v1850_v40, %v426_v10  ;;  %v963_v18 = vadd.f32 %v962_v5, %v422_v50  ;;  %v1597_v19 = vpop.f32.mrb[14].mxu0  ;;  %v1629_v20 = vpop.f32.mrb[14].mxu1  ;;  %v1959_v33 = vadd.f32 %v1850_v40, %v554_v13 }
 0x110   :  { %v438_v22 = vadd.f32 %v1597_v19, %v1850_v40  ;;  %v429_v23 = vpop.f32.mrb[15].mxu0  ;;  %v1955_v25 = vadd.f32 %v1629_v20, %v1850_v40  ;;  %v557_v26 = vpop.f32.mrb[15].mxu1  ;;  %v1036_v42 = vmul.f32 %v435_v21, %v435_v21 }
 0x111   :  { %v964_v27 = vadd.f32 %v963_v18, %v427_v16  ;;  %v1034_v28 = vmul.f32 %v427_v16, %v427_v16  ;;  %v1096_v29 = vadd.f32 %v1095_v15, %v1033_v14  ;;  %v430_v31 = vadd.f32 %v1850_v40, %v429_v23 }
 0x112   :  { %v1373_v32 = vpack.c.bf16 %v438_v22, %v435_v21  ;;  %v1453_v34 = vpack.c.bf16 %v1955_v25, %v1946_v12  ;;  %v1970_v41 = vadd.f32 %v1850_v40, %v557_v26  ;;  %v1037_v55 = vmul.f32 %v438_v22, %v438_v22 }
 0x113   :  { %v1097_v35 = vadd.f32 %v1096_v29, %v1034_v28  ;;  %v1368_v36 = vpack.c.bf16 %v430_v31, %v427_v16  ;;  %v965_v37 = vadd.f32 %v964_v27, %v430_v31  ;;  %v1035_v39 = vmul.f32 %v430_v31, %v430_v31 }
 0x114   :  { %1501 = vst [vmem:[%s2210_s3 + $0x38] sm:$0xff] %v1373_v32   ;;  %1517 = vst [vmem:[%s2210_s3 + $0xb8] sm:$0xff] %v1453_v34   ;;  %v1448_v50 = vpack.c.bf16 %v1970_v41, %v1959_v33 }
 0x115   :  { %1500 = vst [vmem:[%s2210_s3 + $0x30] sm:$0xff] %v1368_v36   ;;  %v966_v43 = vadd.f32 %v965_v37, %v435_v21  ;;  %v1098_v45 = vadd.f32 %v1097_v35, %v1035_v39  ;;  %v1600_v46 = vpop.f32.mrb[16].mxu0  ;;  %v1632_v47 = vpop.f32.mrb[16].mxu1 }
 0x116   :  { %v442_v49 = vpop.f32.mrb[17].mxu0  ;;  %v1978_v51 = vadd.f32 %v1632_v47, %v1850_v40  ;;  %v570_v54 = vpop.f32.mrb[17].mxu1  ;;  %v451_v63 = vadd.f32 %v1600_v46, %v1850_v40  ;;  %1516 = vst [vmem:[%s2210_s3 + $0xb0] sm:$0xff] %v1448_v50  }
 0x117   :  { %v1099_v57 = vadd.f32 %v1098_v45, %v1036_v42  ;;  %v443_v58 = vadd.f32 %v1850_v40, %v442_v49  ;;  %v967_v59 = vadd.f32 %v966_v43, %v438_v22  ;;  %v1601_v60 = vpop.f32.mrb[18].mxu0  ;;  %v1633_v62 = vpop.f32.mrb[18].mxu1  ;;  %v1991_v11 = vadd.f32 %v1850_v40, %v570_v54 }
 0x118   :  { %v454_v0 = vadd.f32 %v1601_v60, %v1850_v40  ;;  %v445_v1 = vpop.f32.mrb[19].mxu0  ;;  %v1987_v2 = vadd.f32 %v1633_v62, %v1850_v40  ;;  %v573_v4 = vpop.f32.mrb[19].mxu1  ;;  %v1040_v20 = vmul.f32 %v451_v63, %v451_v63 }
 0x119   :  { %v968_v5 = vadd.f32 %v967_v59, %v443_v58  ;;  %v1038_v7 = vmul.f32 %v443_v58, %v443_v58  ;;  %v1100_v8 = vadd.f32 %v1099_v57, %v1037_v55  ;;  %v446_v9 = vadd.f32 %v1850_v40, %v445_v1 }
 0x11a   :  { %v1383_v10 = vpack.c.bf16 %v454_v0, %v451_v63  ;;  %v1463_v13 = vpack.c.bf16 %v1987_v2, %v1978_v51  ;;  %v2002_v19 = vadd.f32 %v1850_v40, %v573_v4  ;;  %v1041_v32 = vmul.f32 %v454_v0, %v454_v0 }
 0x11b   :  { %v1101_v14 = vadd.f32 %v1100_v8, %v1038_v7  ;;  %v1378_v15 = vpack.c.bf16 %v446_v9, %v443_v58  ;;  %v969_v16 = vadd.f32 %v968_v5, %v446_v9  ;;  %v1039_v18 = vmul.f32 %v446_v9, %v446_v9 }
 0x11c   :  { %1503 = vst [vmem:[%s2210_s3 + $0x48] sm:$0xff] %v1383_v10   ;;  %1519 = vst [vmem:[%s2210_s3 + $0xc8] sm:$0xff] %v1463_v13   ;;  %v1458_v28 = vpack.c.bf16 %v2002_v19, %v1991_v11 }
 0x11d   :  { %1502 = vst [vmem:[%s2210_s3 + $0x40] sm:$0xff] %v1378_v15   ;;  %v970_v21 = vadd.f32 %v969_v16, %v451_v63  ;;  %v1102_v22 = vadd.f32 %v1101_v14, %v1039_v18  ;;  %v1604_v23 = vpop.f32.mrb[20].mxu0  ;;  %v1636_v26 = vpop.f32.mrb[20].mxu1 }
 0x11e   :  { %v458_v27 = vpop.f32.mrb[21].mxu0  ;;  %v2010_v29 = vadd.f32 %v1636_v26, %v1850_v40  ;;  %v586_v31 = vpop.f32.mrb[21].mxu1  ;;  %v467_v42 = vadd.f32 %v1604_v23, %v1850_v40  ;;  %1518 = vst [vmem:[%s2210_s3 + $0xc0] sm:$0xff] %v1458_v28  }
 0x11f   :  { %v1103_v34 = vadd.f32 %v1102_v22, %v1040_v20  ;;  %v459_v35 = vadd.f32 %v1850_v40, %v458_v27  ;;  %v971_v36 = vadd.f32 %v970_v21, %v454_v0  ;;  %v1605_v37 = vpop.f32.mrb[22].mxu0  ;;  %v1637_v39 = vpop.f32.mrb[22].mxu1  ;;  %v2023_v58 = vadd.f32 %v1850_v40, %v586_v31 }
 0x120   :  { %v470_v43 = vadd.f32 %v1605_v37, %v1850_v40  ;;  %v461_v45 = vpop.f32.mrb[23].mxu0  ;;  %v2019_v46 = vadd.f32 %v1637_v39, %v1850_v40  ;;  %v589_v47 = vpop.f32.mrb[23].mxu1  ;;  %v1044_v4 = vmul.f32 %v467_v42, %v467_v42 }
 0x121   :  { %v972_v49 = vadd.f32 %v971_v36, %v459_v35  ;;  %v1042_v50 = vmul.f32 %v459_v35, %v459_v35  ;;  %v1104_v54 = vadd.f32 %v1103_v34, %v1041_v32  ;;  %v462_v55 = vadd.f32 %v1850_v40, %v461_v45 }
 0x122   :  { %v1393_v57 = vpack.c.bf16 %v470_v43, %v467_v42  ;;  %v1473_v59 = vpack.c.bf16 %v2019_v46, %v2010_v29  ;;  %v2034_v1 = vadd.f32 %v1850_v40, %v589_v47  ;;  %v1045_v16 = vmul.f32 %v470_v43, %v470_v43 }
 0x123   :  { %v1105_v60 = vadd.f32 %v1104_v54, %v1042_v50  ;;  %v1388_v62 = vpack.c.bf16 %v462_v55, %v459_v35  ;;  %v973_v63 = vadd.f32 %v972_v49, %v462_v55  ;;  %v1043_v0 = vmul.f32 %v462_v55, %v462_v55 }
 0x124   :  { %1505 = vst [vmem:[%s2210_s3 + $0x58] sm:$0xff] %v1393_v57   ;;  %1521 = vst [vmem:[%s2210_s3 + $0xd8] sm:$0xff] %v1473_v59   ;;  %v1468_v13 = vpack.c.bf16 %v2034_v1, %v2023_v58 }
 0x125   :  { %1504 = vst [vmem:[%s2210_s3 + $0x50] sm:$0xff] %v1388_v62   ;;  %v974_v5 = vadd.f32 %v973_v63, %v467_v42  ;;  %v1106_v7 = vadd.f32 %v1105_v60, %v1043_v0  ;;  %v1608_v8 = vpop.f32.mrb[24].mxu0  ;;  %v1640_v9 = vpop.f32.mrb[24].mxu1 }
 0x126   :  { %v474_v10 = vpop.f32.mrb[25].mxu0  ;;  %v2042_v14 = vadd.f32 %v1640_v9, %v1850_v40  ;;  %v602_v15 = vpop.f32.mrb[25].mxu1  ;;  %v483_v26 = vadd.f32 %v1608_v8, %v1850_v40  ;;  %1520 = vst [vmem:[%s2210_s3 + $0xd0] sm:$0xff] %v1468_v13  }
 0x127   :  { %v1107_v18 = vadd.f32 %v1106_v7, %v1044_v4  ;;  %v475_v20 = vadd.f32 %v1850_v40, %v474_v10  ;;  %v975_v21 = vadd.f32 %v974_v5, %v470_v43  ;;  %v1609_v22 = vpop.f32.mrb[26].mxu0  ;;  %v1641_v23 = vpop.f32.mrb[26].mxu1  ;;  %v2055_v42 = vadd.f32 %v1850_v40, %v602_v15 }
 0x128   :  { %v486_v27 = vadd.f32 %v1609_v22, %v1850_v40  ;;  %v477_v28 = vpop.f32.mrb[27].mxu0  ;;  %v2051_v31 = vadd.f32 %v1641_v23, %v1850_v40  ;;  %v605_v32 = vpop.f32.mrb[27].mxu1  ;;  %v1048_v55 = vmul.f32 %v483_v26, %v483_v26 }
 0x129   :  { %v976_v34 = vadd.f32 %v975_v21, %v475_v20  ;;  %v1046_v35 = vmul.f32 %v475_v20, %v475_v20  ;;  %v1108_v36 = vadd.f32 %v1107_v18, %v1045_v16  ;;  %v478_v37 = vadd.f32 %v1850_v40, %v477_v28 }
 0x12a   :  { %v1403_v39 = vpack.c.bf16 %v486_v27, %v483_v26  ;;  %v1483_v43 = vpack.c.bf16 %v2051_v31, %v2042_v14  ;;  %v2066_v54 = vadd.f32 %v1850_v40, %v605_v32  ;;  %v1049_v7 = vmul.f32 %v486_v27, %v486_v27 }
 0x12b   :  { %v1109_v45 = vadd.f32 %v1108_v36, %v1046_v35  ;;  %v1398_v47 = vpack.c.bf16 %v478_v37, %v475_v20  ;;  %v977_v49 = vadd.f32 %v976_v34, %v478_v37  ;;  %v1047_v50 = vmul.f32 %v478_v37, %v478_v37 }
 0x12c   :  { %1507 = vst [vmem:[%s2210_s3 + $0x68] sm:$0xff] %v1403_v39   ;;  %1523 = vst [vmem:[%s2210_s3 + $0xe8] sm:$0xff] %v1483_v43   ;;  %v1478_v0 = vpack.c.bf16 %v2066_v54, %v2055_v42 }
 0x12d   :  { %1506 = vst [vmem:[%s2210_s3 + $0x60] sm:$0xff] %v1398_v47   ;;  %v978_v57 = vadd.f32 %v977_v49, %v483_v26  ;;  %v1110_v59 = vadd.f32 %v1109_v45, %v1047_v50  ;;  %v1612_v60 = vpop.f32.mrb[28].mxu0  ;;  %v1644_v62 = vpop.f32.mrb[28].mxu1 }
 0x12e   :  { %v490_v63 = vpop.f32.mrb[29].mxu0  ;;  %v2074_v4 = vadd.f32 %v1644_v62, %v1850_v40  ;;  %v618_v5 = vpop.f32.mrb[29].mxu1  ;;  %v499_v16 = vadd.f32 %v1612_v60, %v1850_v40  ;;  %1522 = vst [vmem:[%s2210_s3 + $0xe0] sm:$0xff] %v1478_v0   ;;  %v1054_v62 = vmul.f32 %v1857_v48, %v1857_v48 }
 0x12f   :  { %v1111_v8 = vadd.f32 %v1110_v59, %v1048_v55  ;;  %v491_v9 = vadd.f32 %v1850_v40, %v490_v63  ;;  %v979_v10 = vadd.f32 %v978_v57, %v486_v27  ;;  %v1613_v13 = vpop.f32.mrb[30].mxu0  ;;  %v1645_v15 = vpop.f32.mrb[30].mxu1  ;;  %v2087_v34 = vadd.f32 %v1850_v40, %v618_v5 }
 0x130   :  { %v502_v18 = vadd.f32 %v1613_v13, %v1850_v40  ;;  %v493_v20 = vpop.f32.mrb[31].mxu0  ;;  %v2083_v21 = vadd.f32 %v1645_v15, %v1850_v40  ;;  %v621_v22 = vpop.f32.mrb[31].mxu1  ;;  %v1052_v47 = vmul.f32 %v499_v16, %v499_v16  ;;  %v1057_v13 = vmul.f32 %v1862_v53, %v1862_v53 }
 0x131   :  { %v980_v23 = vadd.f32 %v979_v10, %v491_v9  ;;  %v1050_v26 = vmul.f32 %v491_v9, %v491_v9  ;;  %v1112_v28 = vadd.f32 %v1111_v8, %v1049_v7  ;;  %v494_v27 = vadd.f32 %v1850_v40, %v493_v20 }
 0x132   :  { %v1413_v32 = vpack.c.bf16 %v502_v18, %v499_v16  ;;  %v1493_v35 = vpack.c.bf16 %v2083_v21, %v2074_v4  ;;  %v2098_v45 = vadd.f32 %v1850_v40, %v621_v22  ;;  %v1053_v57 = vmul.f32 %v502_v18, %v502_v18 }
 0x133   :  { %v1113_v36 = vadd.f32 %v1112_v28, %v1050_v26  ;;  %v1408_v37 = vpack.c.bf16 %v494_v27, %v491_v9  ;;  %v981_v39 = vadd.f32 %v980_v23, %v494_v27  ;;  %v1051_v43 = vmul.f32 %v494_v27, %v494_v27 }
 0x134   :  { %1509 = vst [vmem:[%s2210_s3 + $0x78] sm:$0xff] %v1413_v32   ;;  %1525 = vst [vmem:[%s2210_s3 + $0xf8] sm:$0xff] %v1493_v35   ;;  %v1488_v55 = vpack.c.bf16 %v2098_v45, %v2087_v34  ;;  %v1055_v7 = vmul.f32 %v1866_v56, %v1866_v56  ;;  %v1056_v8 = vmul.f32 %v1853_v44, %v1853_v44 }
 0x135   :  { %1508 = vst [vmem:[%s2210_s3 + $0x70] sm:$0xff] %v1408_v37   ;;  %v982_v49 = vadd.f32 %v981_v39, %v499_v16  ;;  %v1114_v50 = vadd.f32 %v1113_v36, %v1051_v43  ;;  %v1059_v23 = vmul.f32 %v1906_v30, %v1906_v30  ;;  %v1063_v39 = vmul.f32 %v1938_v3, %v1938_v3 }
 0x136   :  { %1524 = vst [vmem:[%s2210_s3 + $0xf0] sm:$0xff] %v1488_v55  }
 0x137   :  { %v1115_v59 = vadd.f32 %v1114_v50, %v1052_v47  ;;  %v983_v60 = vadd.f32 %v982_v49, %v502_v18 }
 0x139   :  { %v984_v40 = vadd.f32 %v983_v60, %v1857_v48  ;;  %v1116_v63 = vadd.f32 %v1115_v59, %v1053_v57  ;;  %v1058_v48 = vmul.f32 %v1895_v24, %v1895_v24  ;;  %v1067_v60 = vmul.f32 %v1970_v41, %v1970_v41 }
 0x13b   :  { %v1117_v0 = vadd.f32 %v1116_v63, %v1054_v62  ;;  %v985_v5 = vadd.f32 %v984_v40, %v1866_v56 }
 0x13d   :  { %v986_v9 = vadd.f32 %v985_v5, %v1853_v44  ;;  %v1118_v10 = vadd.f32 %v1117_v0, %v1055_v7  ;;  %v1060_v44 = vmul.f32 %v1885_v6, %v1885_v6 }
 0x13f   :  { %v1119_v15 = vadd.f32 %v1118_v10, %v1056_v8  ;;  %v987_v16 = vadd.f32 %v986_v9, %v1862_v53  ;;  %v1061_v53 = vmul.f32 %v1891_v17, %v1891_v17  ;;  %v1071_v9 = vmul.f32 %v2002_v19, %v2002_v19 }
 0x141   :  { %v988_v18 = vadd.f32 %v987_v16, %v1895_v24  ;;  %v1120_v20 = vadd.f32 %v1119_v15, %v1057_v13  ;;  %v1062_v24 = vmul.f32 %v1927_v61, %v1927_v61 }
 0x143   :  { %v1121_v22 = vadd.f32 %v1120_v20, %v1058_v48  ;;  %v989_v56 = vadd.f32 %v988_v18, %v1906_v30 }
 0x145   :  { %v990_v26 = vadd.f32 %v989_v56, %v1885_v6  ;;  %v1122_v28 = vadd.f32 %v1121_v22, %v1059_v23  ;;  %v1064_v6 = vmul.f32 %v1914_v38, %v1914_v38  ;;  %v1075_v22 = vmul.f32 %v2034_v1, %v2034_v1 }
 0x147   :  { %v1123_v27 = vadd.f32 %v1122_v28, %v1060_v44  ;;  %v991_v32 = vadd.f32 %v990_v26, %v1891_v17  ;;  %v1065_v17 = vmul.f32 %v1923_v52, %v1923_v52 }
 0x149   :  { %v992_v35 = vadd.f32 %v991_v32, %v1927_v61  ;;  %v1124_v36 = vadd.f32 %v1123_v27, %v1061_v53  ;;  %v1066_v61 = vmul.f32 %v1959_v33, %v1959_v33  ;;  %v1079_v32 = vmul.f32 %v2066_v54, %v2066_v54 }
 0x14b   :  { %v1125_v37 = vadd.f32 %v1124_v36, %v1062_v24  ;;  %v993_v30 = vadd.f32 %v992_v35, %v1938_v3 }
 0x14d   :  { %v994_v43 = vadd.f32 %v993_v30, %v1914_v38  ;;  %v1126_v47 = vadd.f32 %v1125_v37, %v1063_v39  ;;  %v1068_v38 = vmul.f32 %v1946_v12, %v1946_v12 }
 0x14f   :  { %v1127_v49 = vadd.f32 %v1126_v47, %v1064_v6  ;;  %v995_v50 = vadd.f32 %v994_v43, %v1923_v52  ;;  %v1069_v52 = vmul.f32 %v1955_v25, %v1955_v25  ;;  %v1083_v43 = vmul.f32 %v2098_v45, %v2098_v45 }
 0x151   :  { %v996_v55 = vadd.f32 %v995_v50, %v1959_v33  ;;  %v1128_v57 = vadd.f32 %v1127_v49, %v1065_v17  ;;  %v1070_v33 = vmul.f32 %v1991_v11, %v1991_v11 }
 0x153   :  { %v1129_v59 = vadd.f32 %v1128_v57, %v1066_v61  ;;  %v997_v3 = vadd.f32 %v996_v55, %v1970_v41 }
 0x155   :  { %v998_v62 = vadd.f32 %v997_v3, %v1946_v12  ;;  %v1130_v40 = vadd.f32 %v1129_v59, %v1067_v60  ;;  %v1072_v12 = vmul.f32 %v1978_v51, %v1978_v51 }
 0x157   :  { %v1131_v63 = vadd.f32 %v1130_v40, %v1068_v38  ;;  %v999_v0 = vadd.f32 %v998_v62, %v1955_v25  ;;  %v1073_v25 = vmul.f32 %v1987_v2, %v1987_v2 }
 0x159   :  { %v1000_v5 = vadd.f32 %v999_v0, %v1991_v11  ;;  %v1132_v7 = vadd.f32 %v1131_v63, %v1069_v52  ;;  %v1074_v11 = vmul.f32 %v2023_v58, %v2023_v58 }
 0x15b   :  { %v1133_v8 = vadd.f32 %v1132_v7, %v1070_v33  ;;  %v1001_v41 = vadd.f32 %v1000_v5, %v2002_v19 }
 0x15d   :  { %v1002_v10 = vadd.f32 %v1001_v41, %v1978_v51  ;;  %v1134_v13 = vadd.f32 %v1133_v8, %v1071_v9  ;;  %v1076_v51 = vmul.f32 %v2010_v29, %v2010_v29 }
 0x15f   :  { %v1135_v15 = vadd.f32 %v1134_v13, %v1072_v12  ;;  %v1003_v16 = vadd.f32 %v1002_v10, %v1987_v2  ;;  %v1077_v2 = vmul.f32 %v2019_v46, %v2019_v46 }
 0x161   :  { %v1004_v48 = vadd.f32 %v1003_v16, %v2023_v58  ;;  %v1136_v18 = vadd.f32 %v1135_v15, %v1073_v25  ;;  %v1078_v58 = vmul.f32 %v2055_v42, %v2055_v42 }
 0x163   :  { %v1137_v20 = vadd.f32 %v1136_v18, %v1074_v11  ;;  %v1005_v19 = vadd.f32 %v1004_v48, %v2034_v1 }
 0x165   :  { %v1006_v56 = vadd.f32 %v1005_v19, %v2010_v29  ;;  %v1138_v23 = vadd.f32 %v1137_v20, %v1075_v22  ;;  %v1080_v29 = vmul.f32 %v2042_v14, %v2042_v14 }
 0x167   :  { %v1139_v44 = vadd.f32 %v1138_v23, %v1076_v51  ;;  %v1007_v26 = vadd.f32 %v1006_v56, %v2019_v46  ;;  %v1081_v46 = vmul.f32 %v2051_v31, %v2051_v31 }
 0x169   :  { %v1008_v28 = vadd.f32 %v1007_v26, %v2055_v42  ;;  %v1140_v53 = vadd.f32 %v1139_v44, %v1077_v2  ;;  %v1082_v42 = vmul.f32 %v2087_v34, %v2087_v34 }
 0x16b   :  { %v1141_v27 = vadd.f32 %v1140_v53, %v1078_v58  ;;  %v1009_v1 = vadd.f32 %v1008_v28, %v2066_v54 }
 0x16d   :  { %v1010_v24 = vadd.f32 %v1009_v1, %v2042_v14  ;;  %v1142_v35 = vadd.f32 %v1141_v27, %v1079_v32  ;;  %v1084_v14 = vmul.f32 %v2074_v4, %v2074_v4 }
 0x16f   :  { %v1143_v36 = vadd.f32 %v1142_v35, %v1080_v29  ;;  %v1011_v37 = vadd.f32 %v1010_v24, %v2051_v31  ;;  %v1085_v31 = vmul.f32 %v2083_v21, %v2083_v21 }
 0x171   :  { %v1012_v30 = vadd.f32 %v1011_v37, %v2087_v34  ;;  %v1144_v39 = vadd.f32 %v1143_v36, %v1081_v46 }
 0x173   :  { %v1145_v6 = vadd.f32 %v1144_v39, %v1082_v42  ;;  %v1013_v54 = vadd.f32 %v1012_v30, %v2098_v45 }
 0x175   :  { %v1014_v47 = vadd.f32 %v1013_v54, %v2074_v4  ;;  %v1146_v17 = vadd.f32 %v1145_v6, %v1083_v43 }
 0x177   :  { %v1015_v49 = vadd.f32 %v1014_v47, %v2083_v21  ;;  %v1147_v50 = vadd.f32 %v1146_v17, %v1084_v14 }
 0x179   :  { %v1016_v34 = vrot.slane %v1015_v49, 4  ;;  %v1148_v61 = vadd.f32 %v1147_v50, %v1085_v31 }
 0x17b   :  { %v1017_v55 = vadd.f32 %v1016_v34, %v1015_v49  ;;  %v1149_v57 = vrot.slane %v1148_v61, 4 }
 0x17d   :  { %v1018_v59 = vrot.slane %v1017_v55, 2  ;;  %v1150_v3 = vadd.f32 %v1149_v57, %v1148_v61 }
 0x17f   :  { %v1019_v60 = vadd.f32 %v1018_v59, %v1017_v55  ;;  %v1151_v45 = vrot.slane %v1150_v3, 2 }
 0x181   :  { %v1020_v38 = vrot.slane %v1019_v60, 1  ;;  %v1152_v62 = vadd.f32 %v1151_v45, %v1150_v3 }
 0x183   :  { %v1153_v40 = vrot.slane %v1152_v62, 1  ;;  %v1021_v4 = vadd.f32 %v1020_v38, %v1019_v60 }
 0x185   :  { %v1154_v52 = vadd.f32 %v1153_v40, %v1152_v62 }
 0x187   :  { %v1156_v63 = vsel %vm1155_vm0, %v1021_v4, %v1154_v52 }
 0x188   :  { %1157 = vst [vmem:[%s2211_s4] sm:$0x3] %v1156_v63 }

// kernel: tile.23
= control target key start
LH: loop header
LB: loop body
LE: loop exit
PB: predicated region body
PF: predicated region fallthrough
CT: control target
= control target key end

     0   :  { %s28_s0 = inlined_call_operand.vmem [shape: f32[16], index: 0, kind: input, shape index: {}]   ;;  %s29_s1 = inlined_call_operand.vmem [shape: f32[16,16], index: 1, kind: output, shape index: {}]  }
   0x1   :  { %v4_v0 = vld [vmem:[%s28_s0] ss:$0 sm:$0xff] }
   0x2   :  { %5 = vst [vmem:[%s29_s1] sm:$0xff] %v4_v0  ;;  %8 = vst [vmem:[%s29_s1 + $0x8] sm:$0xff] %v4_v0 }

// kernel: tile.24
= control target key start
LH: loop header
LB: loop body
LE: loop exit
PB: predicated region body
PF: predicated region fallthrough
CT: control target
= control target key end

     0   :  { %s7_s6 = smov 3  ;;  %s21_s9 = smov 3  ;;  %vm4_vm0 = vcmask 130048   ;;  %vm11_vm1 = vcmask 1048448   ;;  %vm18_vm2 = vcmask 917248   ;;  %vm25_vm3 = vcmask 786048   ;;  %s128_s0 = inlined_call_operand.vmem [shape: f32[16,16], index: 0, kind: input, shape index: {}]   ;;  %s129_s1 = inlined_call_operand.vmem [shape: f32[1,256], index: 1, kind: output, shape index: {}]  }
   0x1   :  { %v66_v0 = vld [vmem:[%s128_s0 + $0x7] ss:$8 sm:%s7_s6]   ;;  %s81_s10 = smov 112   ;;  %v68_v1 = vld [vmem:[%s128_s0 + $0x5] ss:$8 sm:%s21_s9]   ;;  %s14_s13 = smov 3 }
   0x2   :  { %9 = vrot.lane.b32.xlu0 %v66_v0, %s81_s10  ;;  %s82_s14 = smov 80   ;;  %v67_v2 = vld [vmem:[%s128_s0 + $0x6] ss:$8 sm:%s14_s13]   ;;  %s28_s17 = smov 3  ;;  %vm32_vm4 = vcmask 654848   ;;  %vm39_vm5 = vcmask 523648  }
   0x3   :  { %23 = vrot.lane.b32.xlu1 %v68_v1, %s82_s14  ;;  %v69_v3 = vld [vmem:[%s128_s0 + $0x4] ss:$8 sm:%s28_s17]   ;;  %s35_s20 = smov 3  ;;  %s42_s21 = smov 3  ;;  %vm46_vm6 = vcmask 392448   ;;  %vm53_vm7 = vcmask 261248  }
   0x4   :  { %s83_s22 = smov 96   ;;  %s84_s23 = smov 64   ;;  %v70_v4 = vld [vmem:[%s128_s0 + $0x3] ss:$8 sm:%s35_s20]   ;;  %v71_v5 = vld [vmem:[%s128_s0 + $0x2] ss:$8 sm:%s42_s21]  }
   0x5   :  { %s2_s26 = smov 3  ;;  %s49_s29 = smov 3 }
   0x6   :  { %16 = vrot.lane.b32.xlu0 %v67_v2, %s83_s22  ;;  %v3_v6 = vld [vmem:[%s128_s0] ss:$8 sm:%s2_s26]   ;;  %s85_s3 = smov 48   ;;  %s86_s4 = smov 32  }
   0x7   :  { %30 = vrot.lane.b32.xlu1 %v69_v3, %s84_s23  ;;  %5 = vst.msk [vmem:[#allocation0] ss:$8 sm:$0x3] %vm4_vm0, %v3_v6   ;;  %v72_v7 = vld [vmem:[%s128_s0 + $0x1] ss:$8 sm:%s49_s29]   ;;  %s87_s0 = smov 16  }
   0xa   :  { %37 = vrot.lane.b32.xlu0 %v70_v4, %s85_s3 }
   0xb   :  { %44 = vrot.lane.b32.xlu1 %v71_v5, %s86_s4 }
   0xe   :  { %51 = vrot.lane.b32.xlu0 %v72_v7, %s87_s0 }
  0x74   :  { %v10_v8 = vpop.permute.xlu0 %9  }
  0x75   :  { %12 = vst.msk [vmem:[#allocation0] ss:$8 sm:$0x3] %vm11_vm1, %v10_v8   ;;  %v24_v9 = vpop.permute.xlu1 %23  }
  0x78   :  { %v17_v10 = vpop.permute.xlu0 %16  }
  0x79   :  { %19 = vst.msk [vmem:[#allocation0] ss:$8 sm:$0x3] %vm18_vm2, %v17_v10   ;;  %v31_v11 = vpop.permute.xlu1 %30  }
  0x7a   :  { %26 = vst.msk [vmem:[#allocation0] ss:$8 sm:$0x3] %vm25_vm3, %v24_v9  }
  0x7b   :  { %33 = vst.msk [vmem:[#allocation0] ss:$8 sm:$0x3] %vm32_vm4, %v31_v11  }
  0x7c   :  { %v38_v12 = vpop.permute.xlu0 %37  }
  0x7d   :  { %40 = vst.msk [vmem:[#allocation0] ss:$8 sm:$0x3] %vm39_vm5, %v38_v12   ;;  %v45_v13 = vpop.permute.xlu1 %44  }
  0x7e   :  { %47 = vst.msk [vmem:[#allocation0] ss:$8 sm:$0x3] %vm46_vm6, %v45_v13  }
  0x80   :  { %v52_v14 = vpop.permute.xlu0 %51  }
  0x81   :  { %54 = vst.msk [vmem:[#allocation0] ss:$8 sm:$0x3] %vm53_vm7, %v52_v14  }
  0x88   :  { %v58_v15 = vld [vmem:[#allocation0] sm:$0x1]  ;;  %v62_v16 = vld [vmem:[#allocation0 + $0x8] sm:$0x1] }
  0x89   :  { %60 = vst [vmem:[%s129_s1] sm:$0x1] %v58_v15  ;;  %73 = vst [vmem:[%s129_s1 + $0x1] sm:$0x1] %v62_v16 }

// kernel: discriminator_forward.6
= control target key start
LH: loop header
LB: loop body
LE: loop exit
PB: predicated region body
PF: predicated region fallthrough
CT: control target
= control target key end

     0   :  { %v73_v5 = vlaneseq  ;;  %s1107_s3 = inlined_call_operand.vmem [shape: bf16[256,128], index: 3, kind: input, shape index: {}]   ;;  %s1108_s0 = inlined_call_operand.vmem [shape: f32[1,256], index: 0, kind: input, shape index: {}]   ;;  %s1109_s2 = inlined_call_operand.vmem [shape: bf16[128,256], index: 2, kind: input, shape index: {}]   ;;  %s1110_s1 = inlined_call_operand.vmem [shape: f32[1,256], index: 1, kind: input, shape index: {}]   ;;  %s1111_s4 = inlined_call_operand.vmem [shape: f32[1,128], index: 4, kind: input, shape index: {}]   ;;  %s1112_s5 = inlined_call_operand.vmem [shape: bf16[128,128], index: 5, kind: output, shape index: {0}]   ;;  %s1113_s6 = inlined_call_operand.vmem [shape: f32[1,2,128], index: 6, kind: output, shape index: {1}]  }
   0x1   :  { %v828_v0 = vld [vmem:[%s1107_s3 + $0x40] sm:$0xff]   ;;  %v830_v2 = vld [vmem:[%s1107_s3 + $0x48] sm:$0xff]   ;;  %v832_v4 = vld [vmem:[%s1107_s3 + $0x50] sm:$0xff]  }
   0x2   :  { %v829_v1 = vld [vmem:[%s1107_s3] sm:$0xff]   ;;  %748 = vmatprep.subr.bf16.mxu0 %v828_v0  ;;  %812 = vmatprep.subr.bf16.mxu1 %v828_v0  ;;  %v831_v3 = vld [vmem:[%s1107_s3 + $0x8] sm:$0xff]   ;;  %v833_v6 = vld [vmem:[%s1107_s3 + $0x10] sm:$0xff]   ;;  %v74_v8 = vshrl.u32 %v73_v5, 7 }
   0x3   :  { %749 = vmatpush3.bf16.msra.mxu0 %v829_v1  ;;  %820 = vmatpush3.bf16.msra.mxu1 %v829_v1  ;;  %v834_v7 = vld [vmem:[%s1107_s3 + $0x58] sm:$0xff]   ;;  %v836_v10 = vld [vmem:[%s1107_s3 + $0x60] sm:$0xff]   ;;  %v838_v14 = vld [vmem:[%s1107_s3 + $0x68] sm:$0xff]  }
   0x4   :  { %750 = vmatprep.subr.bf16.mxu0 %v830_v2  ;;  %813 = vmatprep.subr.bf16.mxu1 %v830_v2  ;;  %v835_v9 = vld [vmem:[%s1107_s3 + $0x18] sm:$0xff]   ;;  %v75_v11 = vsub.s32 0, %v74_v8  ;;  %v837_v12 = vld [vmem:[%s1107_s3 + $0x20] sm:$0xff]   ;;  %v79_v13 = vsub.s32 1, %v74_v8  ;;  %v24_v16 = vld [vmem:[%s1109_s2 + $0x8] sm:$0xff] }
   0x5   :  { %v23_v15 = vld [vmem:[%s1109_s2] sm:$0xff]  ;;  %v41_v20 = vunpack.c.l.bf16 %v24_v16  ;;  %v42_v21 = vunpack.c.h.bf16 %v24_v16  ;;  %v25_v23 = vld [vmem:[%s1109_s2 + $0x10] sm:$0xff]  ;;  %v26_v24 = vld [vmem:[%s1109_s2 + $0x18] sm:$0xff] }
   0x6   :  { %v71_v17 = vld [vmem:[%s1108_s0] sm:$0x3]  ;;  %v39_v18 = vunpack.c.l.bf16 %v23_v15  ;;  %v40_v19 = vunpack.c.h.bf16 %v23_v15  ;;  %v839_v29 = vld [vmem:[%s1107_s3 + $0x28] sm:$0xff]   ;;  %v44_v30 = vunpack.c.h.bf16 %v25_v23  ;;  %v46_v31 = vunpack.c.h.bf16 %v26_v24  ;;  %v840_v34 = vld [vmem:[%s1107_s3 + $0x70] sm:$0xff]  }
   0x7   :  { %751 = vmatpush3.bf16.msra.mxu0 %v831_v3  ;;  %821 = vmatpush3.bf16.msra.mxu1 %v831_v3  ;;  %v115_v22 = vld [vmem:[%s1110_s1] sm:$0x3]  ;;  %v930_v25 = vrot.slane %v71_v17, %v75_v11  ;;  %v932_v26 = vrot.slane %v71_v17, %v79_v13  ;;  %v43_v32 = vunpack.c.l.bf16 %v25_v23  ;;  %v45_v33 = vunpack.c.l.bf16 %v26_v24  ;;  %v841_v48 = vld [vmem:[%s1107_s3 + $0x30] sm:$0xff]   ;;  %v842_v49 = vld [vmem:[%s1107_s3 + $0x78] sm:$0xff]  }
   0x8   :  { %752 = vmatprep.subr.bf16.mxu0 %v832_v4  ;;  %814 = vmatprep.subr.bf16.mxu1 %v832_v4  ;;  %v934_v27 = vrot.slane %v115_v22, %v75_v11  ;;  %v936_v28 = vrot.slane %v115_v22, %v79_v13  ;;  %v951_v39 = vld [vmem:[%s1109_s2 + $0x40] sm:$0xff]  ;;  %v32_v60 = vld [vmem:[%s1109_s2 + $0x48] sm:$0xff]  ;;  %v843_v61 = vld [vmem:[%s1107_s3 + $0x38] sm:$0xff]  }
   0x9   :  { %v84_v35 = vmul.f32 %v932_v26, %v40_v19  ;;  %v86_v36 = vmul.f32 %v932_v26, %v42_v21  ;;  %v83_v37 = vmul.f32 %v930_v25, %v39_v18  ;;  %v85_v38 = vmul.f32 %v930_v25, %v41_v20  ;;  %v27_v5 = vld [vmem:[%s1109_s2 + $0x20] sm:$0xff]  ;;  %v28_v13 = vld [vmem:[%s1109_s2 + $0x28] sm:$0xff] }
   0xa   :  { %v88_v40 = vmul.f32 %v932_v26, %v44_v30  ;;  %v90_v41 = vmul.f32 %v932_v26, %v46_v31  ;;  %v87_v42 = vmul.f32 %v930_v25, %v43_v32  ;;  %v89_v43 = vmul.f32 %v930_v25, %v45_v33 }
   0xb   :  { %753 = vmatpush3.bf16.msra.mxu0 %v833_v6  ;;  %822 = vmatpush3.bf16.msra.mxu1 %v833_v6  ;;  %v128_v44 = vadd.f32 %v936_v28, %v84_v35  ;;  %v130_v45 = vadd.f32 %v936_v28, %v86_v36  ;;  %v127_v46 = vadd.f32 %v934_v27, %v83_v37  ;;  %v55_v53 = vunpack.c.l.bf16 %v951_v39 }
   0xc   :  { %754 = vmatprep.subr.bf16.mxu0 %v834_v7  ;;  %815 = vmatprep.subr.bf16.mxu1 %v834_v7  ;;  %v129_v47 = vadd.f32 %v934_v27, %v85_v38  ;;  %v132_v50 = vadd.f32 %v936_v28, %v88_v40  ;;  %v134_v51 = vadd.f32 %v936_v28, %v90_v41  ;;  %v56_v8 = vunpack.c.h.bf16 %v951_v39 }
   0xd   :  { %v131_v52 = vadd.f32 %v934_v27, %v87_v42  ;;  %vm160_vm0 = vcmp.gt.f32.partialorder %v128_v44, 0.0  ;;  %vm162_vm1 = vcmp.gt.f32.partialorder %v130_v45, 0.0  ;;  %v192_v54 = vmul.f32 0.2, %v128_v44 }
   0xe   :  { %v194_v55 = vmul.f32 0.2, %v130_v45  ;;  %vm159_vm2 = vcmp.gt.f32.partialorder %v127_v46, 0.0  ;;  %vm161_vm3 = vcmp.gt.f32.partialorder %v129_v47, 0.0  ;;  %v191_v56 = vmul.f32 0.2, %v127_v46 }
   0xf   :  { %755 = vmatpush3.bf16.msra.mxu0 %v835_v9  ;;  %823 = vmatpush3.bf16.msra.mxu1 %v835_v9  ;;  %v193_v57 = vmul.f32 0.2, %v129_v47  ;;  %v224_v58 = vsel %vm160_vm0, %v128_v44, %v192_v54  ;;  %vm164_vm4 = vcmp.gt.f32.partialorder %v132_v50, 0.0  ;;  %vm166_vm5 = vcmp.gt.f32.partialorder %v134_v51, 0.0 }
  0x10   :  { %756 = vmatprep.subr.bf16.mxu0 %v836_v10  ;;  %816 = vmatprep.subr.bf16.mxu1 %v836_v10  ;;  %v226_v59 = vsel %vm162_vm1, %v130_v45, %v194_v55  ;;  %v223_v63 = vsel %vm159_vm2, %v127_v46, %v191_v56  ;;  %v196_v1 = vmul.f32 0.2, %v132_v50  ;;  %v198_v3 = vmul.f32 0.2, %v134_v51  ;;  %v33_v45 = vld [vmem:[%s1109_s2 + $0x50] sm:$0xff]  ;;  %v34_v46 = vld [vmem:[%s1109_s2 + $0x58] sm:$0xff] }
  0x11   :  { %v256_v62 = vpack.c.bf16 %v226_v59, %v224_v58  ;;  %v225_v0 = vsel %vm161_vm3, %v129_v47, %v193_v57  ;;  %v133_v4 = vadd.f32 %v934_v27, %v89_v43  ;;  %vm163_vm6 = vcmp.gt.f32.partialorder %v131_v52, 0.0 }
  0x12   :  { %v255_v2 = vpack.c.bf16 %v225_v0, %v223_v63  ;;  %v228_v6 = vsel %vm164_vm4, %v132_v50, %v196_v1  ;;  %v195_v7 = vmul.f32 0.2, %v131_v52  ;;  %v57_v9 = vunpack.c.l.bf16 %v32_v60  ;;  %v29_v50 = vld [vmem:[%s1109_s2 + $0x30] sm:$0xff] }
  0x13   :  { %757 = vmatpush3.bf16.msra.mxu0 %v837_v12  ;;  %824 = vmatpush3.bf16.msra.mxu1 %v837_v12  ;;  %v230_v10 = vsel %vm166_vm5, %v134_v51, %v198_v3  ;;  %vm165_vm7 = vcmp.gt.f32.partialorder %v133_v4, 0.0  ;;  %v197_v11 = vmul.f32 0.2, %v133_v4  ;;  %v58_v12 = vunpack.c.h.bf16 %v32_v60  ;;  %v30_v3 = vld [vmem:[%s1109_s2 + $0x38] sm:$0xff] }
  0x14   :  { %758 = vmatprep.subr.bf16.mxu0 %v838_v14  ;;  %817 = vmatprep.subr.bf16.mxu1 %v838_v14  ;;  %v258_v14 = vpack.c.bf16 %v230_v10, %v228_v6  ;;  %v227_v15 = vsel %vm163_vm6, %v131_v52, %v195_v7  ;;  %v100_v16 = vmul.f32 %v932_v26, %v56_v8  ;;  %v48_v17 = vunpack.c.h.bf16 %v27_v5 }
  0x15   :  { %438 = vmatprep.mubr.bf16.mxu0 %v256_v62  ;;  %v229_v18 = vsel %vm165_vm7, %v133_v4, %v197_v11  ;;  %v102_v19 = vmul.f32 %v932_v26, %v58_v12  ;;  %v99_v20 = vmul.f32 %v930_v25, %v55_v53  ;;  %v101_v21 = vmul.f32 %v930_v25, %v57_v9 }
  0x16   :  { %v257_v22 = vpack.c.bf16 %v229_v18, %v227_v15  ;;  %v144_v23 = vadd.f32 %v936_v28, %v100_v16  ;;  %v50_v24 = vunpack.c.h.bf16 %v28_v13  ;;  %v47_v33 = vunpack.c.l.bf16 %v27_v5 }
  0x17   :  { %759 = vmatpush3.bf16.msra.mxu0 %v839_v29  ;;  %825 = vmatpush3.bf16.msra.mxu1 %v839_v29  ;;  %v92_v29 = vmul.f32 %v932_v26, %v48_v17  ;;  %v146_v30 = vadd.f32 %v936_v28, %v102_v19  ;;  %v143_v31 = vadd.f32 %v934_v27, %v99_v20  ;;  %v49_v44 = vunpack.c.l.bf16 %v28_v13 }
  0x18   :  { %760 = vmatprep.subr.bf16.mxu0 %v840_v34  ;;  %818 = vmatprep.subr.bf16.mxu1 %v840_v34  ;;  %v145_v32 = vadd.f32 %v934_v27, %v101_v21  ;;  %vm176_vm8 = vcmp.gt.f32.partialorder %v144_v23, 0.0  ;;  %v208_v34 = vmul.f32 0.2, %v144_v23  ;;  %v94_v35 = vmul.f32 %v932_v26, %v50_v24 }
  0x19   :  { %v136_v36 = vadd.f32 %v936_v28, %v92_v29  ;;  %vm178_vm9 = vcmp.gt.f32.partialorder %v146_v30, 0.0  ;;  %v210_v37 = vmul.f32 0.2, %v146_v30  ;;  %vm175_vm10 = vcmp.gt.f32.partialorder %v143_v31, 0.0 }
  0x1a   :  { %vm177_vm11 = vcmp.gt.f32.partialorder %v145_v32, 0.0  ;;  %v240_v38 = vsel %vm176_vm8, %v144_v23, %v208_v34  ;;  %v207_v39 = vmul.f32 0.2, %v143_v31  ;;  %v209_v40 = vmul.f32 0.2, %v145_v32 }
  0x1b   :  { %761 = vmatpush3.bf16.msra.mxu0 %v841_v48  ;;  %826 = vmatpush3.bf16.msra.mxu1 %v841_v48  ;;  %v138_v41 = vadd.f32 %v936_v28, %v94_v35  ;;  %v242_v42 = vsel %vm178_vm9, %v146_v30, %v210_v37  ;;  %vm168_vm12 = vcmp.gt.f32.partialorder %v136_v36, 0.0  ;;  %v200_v43 = vmul.f32 0.2, %v136_v36  ;;  %v35_v30 = vld [vmem:[%s1109_s2 + $0x60] sm:$0xff] }
  0x1c   :  { %762 = vmatprep.subr.bf16.mxu0 %v842_v49  ;;  %819 = vmatprep.subr.bf16.mxu1 %v842_v49  ;;  %v264_v47 = vpack.c.bf16 %v242_v42, %v240_v38  ;;  %v239_v48 = vsel %vm175_vm10, %v143_v31, %v207_v39  ;;  %v241_v49 = vsel %vm177_vm11, %v145_v32, %v209_v40  ;;  %v60_v56 = vunpack.c.h.bf16 %v33_v45  ;;  %v36_v31 = vld [vmem:[%s1109_s2 + $0x68] sm:$0xff] }
  0x1d   :  { %vm170_vm13 = vcmp.gt.f32.partialorder %v138_v41, 0.0  ;;  %v263_v51 = vpack.c.bf16 %v241_v49, %v239_v48  ;;  %v202_v52 = vmul.f32 0.2, %v138_v41  ;;  %v232_v53 = vsel %vm168_vm12, %v136_v36, %v200_v43 }
  0x1e   :  { %v91_v54 = vmul.f32 %v930_v25, %v47_v33  ;;  %470 = vmatprep.mubr.bf16.mxu1 %v264_v47  ;;  %v93_v55 = vmul.f32 %v930_v25, %v49_v44  ;;  %v62_v57 = vunpack.c.h.bf16 %v34_v46  ;;  %v59_v58 = vunpack.c.l.bf16 %v33_v45 }
  0x1f   :  { %763 = vmatpush3.bf16.msra.mxu0 %v843_v61  ;;  %827 = vmatpush3.bf16.msra.mxu1 %v843_v61  ;;  %v234_v59 = vsel %vm170_vm13, %v138_v41, %v202_v52  ;;  %v61_v61 = vunpack.c.l.bf16 %v34_v46  ;;  %v52_v62 = vunpack.c.h.bf16 %v29_v50  ;;  %v104_v1 = vmul.f32 %v932_v26, %v60_v56 }
  0x20   :  { %v135_v60 = vadd.f32 %v934_v27, %v91_v54  ;;  %v260_v63 = vpack.c.bf16 %v234_v59, %v232_v53  ;;  %v137_v0 = vadd.f32 %v934_v27, %v93_v55  ;;  %v103_v5 = vmul.f32 %v930_v25, %v59_v58 }
  0x21   :  { %v105_v6 = vmul.f32 %v930_v25, %v61_v61  ;;  %v148_v8 = vadd.f32 %v936_v28, %v104_v1  ;;  %v54_v13 = vunpack.c.h.bf16 %v30_v3  ;;  %v96_v21 = vmul.f32 %v932_v26, %v52_v62 }
  0x22   :  { %439 = vmatmul.mubr.bf16.vlgmr.msra.gmra.mrb[0].mxu0 %v255_v2  ;;  %471 = vmatmul.mubr.bf16.vlgmr.msra.gmra.mrb[0].mxu1 %v263_v51  ;;  %v106_v2 = vmul.f32 %v932_v26, %v62_v57  ;;  %vm167_vm14 = vcmp.gt.f32.partialorder %v135_v60, 0.0  ;;  %v199_v4 = vmul.f32 0.2, %v135_v60  ;;  %vm169_vm15 = vcmp.gt.f32.partialorder %v137_v0, 0.0 }
  0x23   :  { %446 = vmatprep.mubr.bf16.mxu0 %v258_v14  ;;  %v201_v7 = vmul.f32 0.2, %v137_v0  ;;  %v147_v11 = vadd.f32 %v934_v27, %v103_v5  ;;  %v149_v12 = vadd.f32 %v934_v27, %v105_v6  ;;  %vm180_vm0 = vcmp.gt.f32.partialorder %v148_v8, 0.0 }
  0x24   :  { %v150_v9 = vadd.f32 %v936_v28, %v106_v2  ;;  %v231_v10 = vsel %vm167_vm14, %v135_v60, %v199_v4  ;;  %v212_v15 = vmul.f32 0.2, %v148_v8  ;;  %v98_v23 = vmul.f32 %v932_v26, %v54_v13  ;;  %v38_v60 = vld [vmem:[%s1109_s2 + $0x78] sm:$0xff] }
  0x25   :  { %v233_v14 = vsel %vm169_vm15, %v137_v0, %v201_v7  ;;  %vm179_vm2 = vcmp.gt.f32.partialorder %v147_v11, 0.0  ;;  %vm181_vm3 = vcmp.gt.f32.partialorder %v149_v12, 0.0  ;;  %v211_v19 = vmul.f32 0.2, %v147_v11 }
  0x26   :  { %vm182_vm1 = vcmp.gt.f32.partialorder %v150_v9, 0.0  ;;  %v259_v16 = vpack.c.bf16 %v233_v14, %v231_v10  ;;  %v214_v17 = vmul.f32 0.2, %v150_v9  ;;  %v244_v18 = vsel %vm180_vm0, %v148_v8, %v212_v15 }
  0x27   :  { %v213_v20 = vmul.f32 0.2, %v149_v12  ;;  %v51_v24 = vunpack.c.l.bf16 %v29_v50  ;;  %v53_v29 = vunpack.c.l.bf16 %v30_v3  ;;  %v243_v33 = vsel %vm179_vm2, %v147_v11, %v211_v19  ;;  %v37_v50 = vld [vmem:[%s1109_s2 + $0x70] sm:$0xff] }
  0x28   :  { %v140_v35 = vadd.f32 %v936_v28, %v96_v21  ;;  %v142_v37 = vadd.f32 %v936_v28, %v98_v23  ;;  %v64_v41 = vunpack.c.h.bf16 %v35_v30  ;;  %v66_v42 = vunpack.c.h.bf16 %v36_v31 }
  0x29   :  { %v245_v34 = vsel %vm181_vm3, %v149_v12, %v213_v20  ;;  %v95_v38 = vmul.f32 %v930_v25, %v51_v24  ;;  %v97_v39 = vmul.f32 %v930_v25, %v53_v29  ;;  %v63_v49 = vunpack.c.l.bf16 %v35_v30 }
  0x2a   :  { %447 = vmatmul.mubr.bf16.gmra.mrb[4].mxu0 %v257_v22  ;;  %v246_v22 = vsel %vm182_vm1, %v150_v9, %v214_v17  ;;  %v265_v36 = vpack.c.bf16 %v245_v34, %v243_v33  ;;  %vm172_vm4 = vcmp.gt.f32.partialorder %v140_v35, 0.0  ;;  %v204_v40 = vmul.f32 0.2, %v140_v35 }
  0x2b   :  { %454 = vmatprep.mubr.bf16.mxu0 %v260_v63  ;;  %v266_v32 = vpack.c.bf16 %v246_v22, %v244_v18  ;;  %vm174_vm5 = vcmp.gt.f32.partialorder %v142_v37, 0.0  ;;  %v206_v43 = vmul.f32 0.2, %v142_v37  ;;  %v139_v44 = vadd.f32 %v934_v27, %v95_v38 }
  0x2c   :  { %v141_v45 = vadd.f32 %v934_v27, %v97_v39  ;;  %v236_v46 = vsel %vm172_vm4, %v140_v35, %v204_v40  ;;  %v108_v47 = vmul.f32 %v932_v26, %v64_v41  ;;  %v110_v48 = vmul.f32 %v932_v26, %v66_v42 }
  0x2d   :  { %478 = vmatprep.mubr.bf16.mxu1 %v266_v32  ;;  %v238_v51 = vsel %vm174_vm5, %v142_v37, %v206_v43  ;;  %vm171_vm6 = vcmp.gt.f32.partialorder %v139_v44, 0.0  ;;  %v203_v52 = vmul.f32 0.2, %v139_v44  ;;  %v65_v58 = vunpack.c.l.bf16 %v36_v31 }
  0x2e   :  { %479 = vmatmul.mubr.bf16.gmra.mrb[4].mxu1 %v265_v36  ;;  %vm173_vm7 = vcmp.gt.f32.partialorder %v141_v45, 0.0  ;;  %v262_v53 = vpack.c.bf16 %v238_v51, %v236_v46  ;;  %v205_v54 = vmul.f32 0.2, %v141_v45  ;;  %v152_v55 = vadd.f32 %v936_v28, %v108_v47  ;;  %v1062_v36 = vld [vmem:[%s1111_s4] ss:$0 sm:$0xff] }
  0x2f   :  { %v154_v56 = vadd.f32 %v936_v28, %v110_v48  ;;  %v235_v57 = vsel %vm171_vm6, %v139_v44, %v203_v52  ;;  %v107_v59 = vmul.f32 %v930_v25, %v63_v49  ;;  %v68_v61 = vunpack.c.h.bf16 %v37_v50 }
  0x30   :  { %v237_v62 = vsel %vm173_vm7, %v141_v45, %v205_v54  ;;  %vm184_vm8 = vcmp.gt.f32.partialorder %v152_v55, 0.0  ;;  %v216_v63 = vmul.f32 0.2, %v152_v55  ;;  %v109_v2 = vmul.f32 %v930_v25, %v65_v58 }
  0x31   :  { %vm186_vm9 = vcmp.gt.f32.partialorder %v154_v56, 0.0  ;;  %v261_v0 = vpack.c.bf16 %v237_v62, %v235_v57  ;;  %v218_v1 = vmul.f32 0.2, %v154_v56  ;;  %v151_v3 = vadd.f32 %v934_v27, %v107_v59 }
  0x32   :  { %455 = vmatmul.mubr.bf16.gmra.mrb[8].mxu0 %v259_v16  ;;  %v248_v4 = vsel %vm184_vm8, %v152_v55, %v216_v63  ;;  %v70_v5 = vunpack.c.h.bf16 %v38_v60  ;;  %v112_v6 = vmul.f32 %v932_v26, %v68_v61  ;;  %v67_v7 = vunpack.c.l.bf16 %v37_v50 }
  0x33   :  { %462 = vmatprep.mubr.bf16.mxu0 %v262_v53  ;;  %v250_v8 = vsel %vm186_vm9, %v154_v56, %v218_v1  ;;  %v153_v9 = vadd.f32 %v934_v27, %v109_v2  ;;  %vm183_vm10 = vcmp.gt.f32.partialorder %v151_v3, 0.0  ;;  %v215_v10 = vmul.f32 0.2, %v151_v3 }
  0x34   :  { %v268_v11 = vpack.c.bf16 %v250_v8, %v248_v4  ;;  %v114_v12 = vmul.f32 %v932_v26, %v70_v5  ;;  %v156_v13 = vadd.f32 %v936_v28, %v112_v6  ;;  %v69_v14 = vunpack.c.l.bf16 %v38_v60 }
  0x35   :  { %vm185_vm11 = vcmp.gt.f32.partialorder %v153_v9, 0.0  ;;  %v217_v15 = vmul.f32 0.2, %v153_v9  ;;  %v247_v16 = vsel %vm183_vm10, %v151_v3, %v215_v10  ;;  %v111_v17 = vmul.f32 %v930_v25, %v67_v7 }
  0x36   :  { %486 = vmatprep.mubr.bf16.mxu1 %v268_v11  ;;  %v158_v18 = vadd.f32 %v936_v28, %v114_v12  ;;  %vm188_vm12 = vcmp.gt.f32.partialorder %v156_v13, 0.0  ;;  %v220_v19 = vmul.f32 0.2, %v156_v13  ;;  %v113_v20 = vmul.f32 %v930_v25, %v69_v14 }
  0x37   :  { %v249_v21 = vsel %vm185_vm11, %v153_v9, %v217_v15  ;;  %v155_v22 = vadd.f32 %v934_v27, %v111_v17  ;;  %vm641_vm0 = vcmask 1040384  }
  0x38   :  { %v267_v23 = vpack.c.bf16 %v249_v21, %v247_v16  ;;  %vm190_vm13 = vcmp.gt.f32.partialorder %v158_v18, 0.0  ;;  %v222_v26 = vmul.f32 0.2, %v158_v18  ;;  %v252_v24 = vsel %vm188_vm12, %v156_v13, %v220_v19 }
  0x39   :  { %v157_v29 = vadd.f32 %v934_v27, %v113_v20  ;;  %vm187_vm14 = vcmp.gt.f32.partialorder %v155_v22, 0.0  ;;  %v219_v30 = vmul.f32 0.2, %v155_v22 }
  0x3a   :  { %463 = vmatmul.mubr.bf16.gmra.mrb[12].mxu0 %v261_v0  ;;  %487 = vmatmul.mubr.bf16.gmra.mrb[8].mxu1 %v267_v23  ;;  %v254_v31 = vsel %vm190_vm13, %v158_v18, %v222_v26 }
  0x3b   :  { %v270_v32 = vpack.c.bf16 %v254_v31, %v252_v24  ;;  %vm189_vm15 = vcmp.gt.f32.partialorder %v157_v29, 0.0  ;;  %v221_v28 = vmul.f32 0.2, %v157_v29  ;;  %v251_v33 = vsel %vm187_vm14, %v155_v22, %v219_v30 }
  0x3d   :  { %494 = vmatprep.mubr.bf16.mxu1 %v270_v32  ;;  %v253_v34 = vsel %vm189_vm15, %v157_v29, %v221_v28 }
  0x3e   :  { %v269_v25 = vpack.c.bf16 %v253_v34, %v251_v33 }
  0x42   :  { %495 = vmatmul.mubr.bf16.gmra.mrb[12].mxu1 %v269_v25 }
  0xf5   :  { %v764_v35 = vpop.f32.mrb[0].mxu0  ;;  %v788_v48 = vpop.f32.mrb[0].mxu1 }
  0xf6   :  { %v765_v37 = vpop.f32.mrb[1].mxu0  ;;  %v789_v50 = vpop.f32.mrb[1].mxu1 }
  0xf7   :  { %v766_v27 = vadd.f32 %v765_v37, %v764_v35  ;;  %v767_v38 = vpop.f32.mrb[2].mxu0  ;;  %v790_v54 = vadd.f32 %v789_v50, %v788_v48  ;;  %v791_v55 = vpop.f32.mrb[2].mxu1 }
  0xf8   :  { %v768_v39 = vpop.f32.mrb[3].mxu0  ;;  %v792_v57 = vpop.f32.mrb[3].mxu1 }
  0xf9   :  { %v441_v40 = vadd.f32 %v766_v27, %v1062_v36  ;;  %v769_v41 = vadd.f32 %v768_v39, %v767_v38  ;;  %v793_v60 = vadd.f32 %v792_v57, %v791_v55  ;;  %v473_v61 = vadd.f32 %v790_v54, %v1062_v36 }
  0xfb   :  { %v444_v42 = vadd.f32 %v769_v41, %v1062_v36  ;;  %v604_v43 = vmul.f32 %v441_v40, %v441_v40  ;;  %v476_v1 = vadd.f32 %v793_v60, %v1062_v36 }
  0xfd   :  { %v704_v44 = vpack.c.bf16 %v444_v42, %v441_v40  ;;  %v583_v45 = vadd.f32 %v444_v42, %v441_v40  ;;  %v605_v46 = vmul.f32 %v444_v42, %v444_v42  ;;  %v770_v47 = vpop.f32.mrb[4].mxu0  ;;  %v724_v7 = vpack.c.bf16 %v476_v1, %v473_v61 }
  0xfe   :  { %v771_v49 = vpop.f32.mrb[5].mxu0  ;;  %v613_v57 = vmul.f32 %v476_v1, %v476_v1 }
  0xff   :  { %705 = vst [vmem:[%s1112_s5] sm:$0xff] %v704_v44   ;;  %v620_v51 = vadd.f32 %v605_v46, %v604_v43  ;;  %v772_v52 = vadd.f32 %v771_v49, %v770_v47  ;;  %v773_v53 = vpop.f32.mrb[6].mxu0  ;;  %744 = vst [vmem:[%s1112_s5 + $0x20] sm:$0xff] %v724_v7  }
 0x100   :  { %v774_v56 = vpop.f32.mrb[7].mxu0 }
 0x101   :  { %v449_v58 = vadd.f32 %v772_v52, %v1062_v36  ;;  %v775_v59 = vadd.f32 %v774_v56, %v773_v53  ;;  %v794_v15 = vpop.f32.mrb[4].mxu1 }
 0x102   :  { %v795_v16 = vpop.f32.mrb[5].mxu1 }
 0x103   :  { %v584_v62 = vadd.f32 %v583_v45, %v449_v58  ;;  %v606_v63 = vmul.f32 %v449_v58, %v449_v58  ;;  %v452_v0 = vadd.f32 %v775_v59, %v1062_v36  ;;  %v796_v20 = vadd.f32 %v795_v16, %v794_v15  ;;  %v797_v21 = vpop.f32.mrb[6].mxu1 }
 0x104   :  { %v798_v22 = vpop.f32.mrb[7].mxu1 }
 0x105   :  { %v621_v2 = vadd.f32 %v620_v51, %v606_v63  ;;  %v709_v3 = vpack.c.bf16 %v452_v0, %v449_v58  ;;  %v585_v4 = vadd.f32 %v584_v62, %v452_v0  ;;  %v607_v5 = vmul.f32 %v452_v0, %v452_v0  ;;  %v776_v6 = vpop.f32.mrb[8].mxu0 }
 0x106   :  { %v777_v8 = vpop.f32.mrb[9].mxu0  ;;  %v481_v30 = vadd.f32 %v796_v20, %v1062_v36  ;;  %v799_v31 = vadd.f32 %v798_v22, %v797_v21  ;;  %v612_v51 = vmul.f32 %v473_v61, %v473_v61 }
 0x107   :  { %741 = vst [vmem:[%s1112_s5 + $0x8] sm:$0xff] %v709_v3   ;;  %v622_v9 = vadd.f32 %v621_v2, %v607_v5  ;;  %v778_v10 = vadd.f32 %v777_v8, %v776_v6  ;;  %v779_v11 = vpop.f32.mrb[10].mxu0 }
 0x108   :  { %v780_v12 = vpop.f32.mrb[11].mxu0  ;;  %v484_v28 = vadd.f32 %v799_v31, %v1062_v36  ;;  %v614_v62 = vmul.f32 %v481_v30, %v481_v30 }
 0x109   :  { %v457_v13 = vadd.f32 %v778_v10, %v1062_v36  ;;  %v781_v14 = vadd.f32 %v780_v12, %v779_v11 }
 0x10a   :  { %v729_v34 = vpack.c.bf16 %v484_v28, %v481_v30 }
 0x10b   :  { %v586_v17 = vadd.f32 %v585_v4, %v457_v13  ;;  %v608_v18 = vmul.f32 %v457_v13, %v457_v13  ;;  %v460_v19 = vadd.f32 %v781_v14, %v1062_v36  ;;  %v615_v4 = vmul.f32 %v484_v28, %v484_v28 }
 0x10c   :  { %745 = vst [vmem:[%s1112_s5 + $0x28] sm:$0xff] %v729_v34  }
 0x10d   :  { %v623_v23 = vadd.f32 %v622_v9, %v608_v18  ;;  %v714_v26 = vpack.c.bf16 %v460_v19, %v457_v13  ;;  %v587_v24 = vadd.f32 %v586_v17, %v460_v19  ;;  %v609_v29 = vmul.f32 %v460_v19, %v460_v19  ;;  %v782_v33 = vpop.f32.mrb[12].mxu0  ;;  %v800_v43 = vpop.f32.mrb[8].mxu1 }
 0x10e   :  { %v783_v25 = vpop.f32.mrb[13].mxu0  ;;  %v801_v48 = vpop.f32.mrb[9].mxu1 }
 0x10f   :  { %742 = vst [vmem:[%s1112_s5 + $0x10] sm:$0xff] %v714_v26   ;;  %v624_v32 = vadd.f32 %v623_v23, %v609_v29  ;;  %v784_v35 = vadd.f32 %v783_v25, %v782_v33  ;;  %v785_v37 = vpop.f32.mrb[14].mxu0  ;;  %v802_v49 = vadd.f32 %v801_v48, %v800_v43  ;;  %v803_v50 = vpop.f32.mrb[10].mxu1 }
 0x110   :  { %v786_v27 = vpop.f32.mrb[15].mxu0  ;;  %v804_v54 = vpop.f32.mrb[11].mxu1 }
 0x111   :  { %v465_v38 = vadd.f32 %v784_v35, %v1062_v36  ;;  %v787_v39 = vadd.f32 %v786_v27, %v785_v37  ;;  %v489_v55 = vadd.f32 %v802_v49, %v1062_v36  ;;  %v805_v56 = vadd.f32 %v804_v54, %v803_v50 }
 0x113   :  { %v588_v40 = vadd.f32 %v587_v24, %v465_v38  ;;  %v610_v41 = vmul.f32 %v465_v38, %v465_v38  ;;  %v468_v42 = vadd.f32 %v787_v39, %v1062_v36  ;;  %v492_v60 = vadd.f32 %v805_v56, %v1062_v36 }
 0x115   :  { %v625_v44 = vadd.f32 %v624_v32, %v610_v41  ;;  %v719_v45 = vpack.c.bf16 %v468_v42, %v465_v38  ;;  %v589_v46 = vadd.f32 %v588_v40, %v468_v42  ;;  %v611_v47 = vmul.f32 %v468_v42, %v468_v42  ;;  %v806_v3 = vpop.f32.mrb[12].mxu1 }
 0x116   :  { %v734_v2 = vpack.c.bf16 %v492_v60, %v489_v55  ;;  %v807_v7 = vpop.f32.mrb[13].mxu1  ;;  %v617_v16 = vmul.f32 %v492_v60, %v492_v60 }
 0x117   :  { %743 = vst [vmem:[%s1112_s5 + $0x18] sm:$0xff] %v719_v45   ;;  %v590_v52 = vadd.f32 %v589_v46, %v473_v61  ;;  %v626_v53 = vadd.f32 %v625_v44, %v611_v47  ;;  %v808_v61 = vadd.f32 %v807_v7, %v806_v3  ;;  %v809_v8 = vpop.f32.mrb[14].mxu1 }
 0x118   :  { %746 = vst [vmem:[%s1112_s5 + $0x30] sm:$0xff] %v734_v2   ;;  %v810_v11 = vpop.f32.mrb[15].mxu1 }
 0x119   :  { %v591_v58 = vadd.f32 %v590_v52, %v476_v1  ;;  %v627_v59 = vadd.f32 %v626_v53, %v612_v51  ;;  %v616_v1 = vmul.f32 %v489_v55, %v489_v55  ;;  %v497_v12 = vadd.f32 %v808_v61, %v1062_v36 }
 0x11a   :  { %v811_v13 = vadd.f32 %v810_v11, %v809_v8 }
 0x11b   :  { %v628_v63 = vadd.f32 %v627_v59, %v613_v57  ;;  %v592_v0 = vadd.f32 %v591_v58, %v481_v30  ;;  %v618_v17 = vmul.f32 %v497_v12, %v497_v12 }
 0x11c   :  { %v500_v18 = vadd.f32 %v811_v13, %v1062_v36 }
 0x11d   :  { %v593_v5 = vadd.f32 %v592_v0, %v484_v28  ;;  %v629_v6 = vadd.f32 %v628_v63, %v614_v62 }
 0x11e   :  { %v739_v21 = vpack.c.bf16 %v500_v18, %v497_v12  ;;  %v619_v26 = vmul.f32 %v500_v18, %v500_v18 }
 0x11f   :  { %v594_v9 = vadd.f32 %v593_v5, %v489_v55  ;;  %v630_v10 = vadd.f32 %v629_v6, %v615_v4 }
 0x120   :  { %747 = vst [vmem:[%s1112_s5 + $0x38] sm:$0xff] %v739_v21  }
 0x121   :  { %v631_v14 = vadd.f32 %v630_v10, %v616_v1  ;;  %v595_v15 = vadd.f32 %v594_v9, %v492_v60 }
 0x123   :  { %v632_v19 = vadd.f32 %v631_v14, %v617_v16  ;;  %v596_v20 = vadd.f32 %v595_v15, %v497_v12 }
 0x125   :  { %v633_v22 = vadd.f32 %v632_v19, %v618_v17  ;;  %v597_v23 = vadd.f32 %v596_v20, %v500_v18 }
 0x127   :  { %v598_v24 = vrot.slane %v597_v23, 4  ;;  %v634_v29 = vadd.f32 %v633_v22, %v619_v26 }
 0x129   :  { %v599_v30 = vadd.f32 %v598_v24, %v597_v23  ;;  %v635_v31 = vrot.slane %v634_v29, 4 }
 0x12b   :  { %v600_v32 = vrot.slane %v599_v30, 2  ;;  %v636_v28 = vadd.f32 %v635_v31, %v634_v29 }
 0x12d   :  { %v601_v33 = vadd.f32 %v600_v32, %v599_v30  ;;  %v637_v34 = vrot.slane %v636_v28, 2 }
 0x12f   :  { %v602_v25 = vrot.slane %v601_v33, 1  ;;  %v638_v36 = vadd.f32 %v637_v34, %v636_v28 }
 0x131   :  { %v639_v35 = vrot.slane %v638_v36, 1  ;;  %v603_v37 = vadd.f32 %v602_v25, %v601_v33 }
 0x133   :  { %v640_v27 = vadd.f32 %v639_v35, %v638_v36 }
 0x135   :  { %v642_v38 = vsel %vm641_vm0, %v603_v37, %v640_v27 }
 0x136   :  { %643 = vst [vmem:[%s1113_s6] sm:$0x3] %v642_v38 }

// kernel: tile.33
= control target key start
LH: loop header
LB: loop body
LE: loop exit
PB: predicated region body
PF: predicated region fallthrough
CT: control target
= control target key end

     0   :  { %s28_s0 = inlined_call_operand.vmem [shape: f32[32], index: 0, kind: input, shape index: {}]   ;;  %s29_s1 = inlined_call_operand.vmem [shape: f32[16,32], index: 1, kind: output, shape index: {}]  }
   0x1   :  { %v4_v0 = vld [vmem:[%s28_s0] ss:$0 sm:$0xff] }
   0x2   :  { %5 = vst [vmem:[%s29_s1] sm:$0xff] %v4_v0  ;;  %8 = vst [vmem:[%s29_s1 + $0x8] sm:$0xff] %v4_v0 }

// kernel: tile.34
= control target key start
LH: loop header
LB: loop body
LE: loop exit
PB: predicated region body
PF: predicated region fallthrough
CT: control target
= control target key end

     0   :  { %s57_s8 = smov 96   ;;  %vm3_vm0 = vcmask 261120   ;;  %s59_s15 = smov 64   ;;  %vm9_vm1 = vcmask 1048320   ;;  %vm15_vm2 = vcmask 785920   ;;  %vm21_vm3 = vcmask 523520   ;;  %s94_s0 = inlined_call_operand.vmem [shape: f32[16,32], index: 0, kind: input, shape index: {}]   ;;  %s95_s1 = inlined_call_operand.vmem [shape: f32[1,512], index: 1, kind: output, shape index: {}]  }
   0x1   :  { %v48_v0 = vld [vmem:[%s94_s0 + $0x3] ss:$4 sm:$0xf]   ;;  %v49_v1 = vld [vmem:[%s94_s0 + $0x2] ss:$4 sm:$0xf]  }
   0x2   :  { %7 = vrot.lane.b32.xlu0 %v48_v0, %s57_s8  ;;  %v50_v2 = vld [vmem:[%s94_s0 + $0x1] ss:$4 sm:$0xf]   ;;  %v2_v3 = vld [vmem:[%s94_s0] ss:$4 sm:$0xf]  }
   0x3   :  { %s58_s0 = smov 32   ;;  %4 = vst.msk [vmem:[#allocation0] ss:$8 sm:$0xf] %vm3_vm0, %v2_v3  }
   0x4   :  { %19 = vrot.lane.b32.xlu1 %v50_v2, %s58_s0 }
   0x6   :  { %13 = vrot.lane.b32.xlu0 %v49_v1, %s59_s15 }
  0x74   :  { %v8_v4 = vpop.permute.xlu0 %7  }
  0x75   :  { %10 = vst.msk [vmem:[#allocation0] ss:$8 sm:$0xf] %vm9_vm1, %v8_v4  }
  0x76   :  { %v20_v5 = vpop.permute.xlu1 %19  }
  0x78   :  { %v14_v6 = vpop.permute.xlu0 %13  }
  0x79   :  { %16 = vst.msk [vmem:[#allocation0] ss:$8 sm:$0xf] %vm15_vm2, %v14_v6  }
  0x7a   :  { %22 = vst.msk [vmem:[#allocation0] ss:$8 sm:$0xf] %vm21_vm3, %v20_v5  }
  0x81   :  { %v26_v7 = vld [vmem:[#allocation0] sm:$0x1]  ;;  %v30_v8 = vld [vmem:[#allocation0 + $0x8] sm:$0x1]  ;;  %v35_v9 = vld [vmem:[#allocation0 + $0x10] sm:$0x1] }
  0x82   :  { %28 = vst [vmem:[%s95_s1] sm:$0x1] %v26_v7  ;;  %51 = vst [vmem:[%s95_s1 + $0x1] sm:$0x1] %v30_v8  ;;  %v41_v10 = vld [vmem:[#allocation0 + $0x18] sm:$0x1] }
  0x83   :  { %52 = vst [vmem:[%s95_s1 + $0x2] sm:$0x1] %v35_v9  ;;  %53 = vst [vmem:[%s95_s1 + $0x3] sm:$0x1] %v41_v10 }

// kernel: discriminator_forward.7
= control target key start
LH: loop header
LB: loop body
LE: loop exit
PB: predicated region body
PF: predicated region fallthrough
CT: control target
= control target key end

     0   :  { %v49_v23 = vlaneseq  ;;  %s954_s3 = inlined_call_operand.vmem [shape: bf16[512,128], index: 3, kind: input, shape index: {}]   ;;  %s955_s0 = inlined_call_operand.vmem [shape: f32[1,512], index: 0, kind: input, shape index: {}]   ;;  %s956_s2 = inlined_call_operand.vmem [shape: bf16[32,512], index: 2, kind: input, shape index: {}]   ;;  %s957_s1 = inlined_call_operand.vmem [shape: f32[1,512], index: 1, kind: input, shape index: {}]   ;;  %s958_s4 = inlined_call_operand.vmem [shape: f32[1,128], index: 4, kind: input, shape index: {}]   ;;  %s959_s5 = inlined_call_operand.vmem [shape: bf16[32,128], index: 5, kind: output, shape index: {0}]   ;;  %s960_s6 = inlined_call_operand.vmem [shape: f32[1,2,128], index: 6, kind: output, shape index: {1}]  }
   0x1   :  { %v701_v0 = vld [vmem:[%s954_s3 + $0x40] sm:$0xff]   ;;  %v705_v4 = vld [vmem:[%s954_s3 + $0x48] sm:$0xff]   ;;  %v709_v8 = vld [vmem:[%s954_s3 + $0x50] sm:$0xff]  }
   0x2   :  { %v702_v1 = vld [vmem:[%s954_s3 + $0xc0] sm:$0xff]   ;;  %645 = vmatprep.subr.bf16.mxu0 %v701_v0  ;;  %v706_v5 = vld [vmem:[%s954_s3 + $0xc8] sm:$0xff]   ;;  %v710_v9 = vld [vmem:[%s954_s3 + $0xd0] sm:$0xff]   ;;  %v50_v28 = vshrl.u32 %v49_v23, 7 }
   0x3   :  { %v703_v2 = vld [vmem:[%s954_s3] sm:$0xff]   ;;  %673 = vmatprep.subr.bf16.mxu1 %v702_v1  ;;  %v707_v6 = vld [vmem:[%s954_s3 + $0x8] sm:$0xff]   ;;  %v711_v10 = vld [vmem:[%s954_s3 + $0x10] sm:$0xff]  }
   0x4   :  { %v704_v3 = vld [vmem:[%s954_s3 + $0x80] sm:$0xff]   ;;  %646 = vmatpush3.bf16.msra.mxu0 %v703_v2  ;;  %v708_v7 = vld [vmem:[%s954_s3 + $0x88] sm:$0xff]   ;;  %v712_v11 = vld [vmem:[%s954_s3 + $0x90] sm:$0xff]   ;;  %v55_v33 = vsub.s32 1, %v50_v28  ;;  %v63_v35 = vsub.s32 3, %v50_v28  ;;  %v51_v39 = vsub.s32 0, %v50_v28 }
   0x5   :  { %674 = vmatpush3.bf16.msra.mxu1 %v704_v3  ;;  %647 = vmatprep.subr.bf16.mxu0 %v705_v4  ;;  %v713_v12 = vld [vmem:[%s954_s3 + $0x58] sm:$0xff]   ;;  %v717_v16 = vld [vmem:[%s954_s3 + $0x60] sm:$0xff]   ;;  %v721_v20 = vld [vmem:[%s954_s3 + $0x68] sm:$0xff]   ;;  %v59_v40 = vsub.s32 2, %v50_v28 }
   0x6   :  { %675 = vmatprep.subr.bf16.mxu1 %v706_v5  ;;  %v714_v13 = vld [vmem:[%s954_s3 + $0xd8] sm:$0xff]   ;;  %v718_v17 = vld [vmem:[%s954_s3 + $0xe0] sm:$0xff]   ;;  %v722_v21 = vld [vmem:[%s954_s3 + $0xe8] sm:$0xff]  }
   0x7   :  { %v715_v14 = vld [vmem:[%s954_s3 + $0x18] sm:$0xff]   ;;  %v719_v18 = vld [vmem:[%s954_s3 + $0x20] sm:$0xff]   ;;  %v723_v22 = vld [vmem:[%s954_s3 + $0x28] sm:$0xff]  }
   0x8   :  { %648 = vmatpush3.bf16.msra.mxu0 %v707_v6  ;;  %v716_v15 = vld [vmem:[%s954_s3 + $0x98] sm:$0xff]   ;;  %v720_v19 = vld [vmem:[%s954_s3 + $0xa0] sm:$0xff]   ;;  %v724_v24 = vld [vmem:[%s954_s3 + $0xa8] sm:$0xff]  }
   0x9   :  { %676 = vmatpush3.bf16.msra.mxu1 %v708_v7  ;;  %649 = vmatprep.subr.bf16.mxu0 %v709_v8  ;;  %v725_v25 = vld [vmem:[%s954_s3 + $0x70] sm:$0xff]   ;;  %v729_v30 = vld [vmem:[%s954_s3 + $0x78] sm:$0xff]   ;;  %v23_v36 = vld [vmem:[%s956_s2] sm:$0xff] }
   0xa   :  { %677 = vmatprep.subr.bf16.mxu1 %v710_v9  ;;  %v726_v26 = vld [vmem:[%s954_s3 + $0xf0] sm:$0xff]   ;;  %v730_v31 = vld [vmem:[%s954_s3 + $0xf8] sm:$0xff]   ;;  %v47_v38 = vld [vmem:[%s955_s0] sm:$0xf]  ;;  %v31_v41 = vunpack.c.l.bf16 %v23_v36  ;;  %v32_v42 = vunpack.c.h.bf16 %v23_v36 }
   0xb   :  { %v727_v27 = vld [vmem:[%s954_s3 + $0x30] sm:$0xff]   ;;  %v731_v32 = vld [vmem:[%s954_s3 + $0x38] sm:$0xff]   ;;  %v85_v45 = vld [vmem:[%s957_s1] sm:$0xf]  ;;  %v882_v48 = vrot.slane %v47_v38, %v55_v33  ;;  %v886_v54 = vrot.slane %v47_v38, %v63_v35  ;;  %v892_v58 = vrot.slane %v47_v38, %v51_v39  ;;  %v898_v62 = vrot.slane %v47_v38, %v59_v40 }
   0xc   :  { %650 = vmatpush3.bf16.msra.mxu0 %v711_v10  ;;  %v728_v29 = vld [vmem:[%s954_s3 + $0xb0] sm:$0xff]   ;;  %v732_v34 = vld [vmem:[%s954_s3 + $0xb8] sm:$0xff]   ;;  %v24_v46 = vld [vmem:[%s956_s2 + $0x8] sm:$0xff]  ;;  %v884_v49 = vrot.slane %v85_v45, %v55_v33  ;;  %v888_v55 = vrot.slane %v85_v45, %v63_v35  ;;  %v894_v59 = vrot.slane %v85_v45, %v51_v39  ;;  %v900_v63 = vrot.slane %v85_v45, %v59_v40 }
   0xd   :  { %678 = vmatpush3.bf16.msra.mxu1 %v712_v11  ;;  %651 = vmatprep.subr.bf16.mxu0 %v713_v12  ;;  %v25_v37 = vld [vmem:[%s956_s2 + $0x10] sm:$0xff]  ;;  %v26_v47 = vld [vmem:[%s956_s2 + $0x18] sm:$0xff]  ;;  %v33_v50 = vunpack.c.l.bf16 %v24_v46  ;;  %v34_v51 = vunpack.c.h.bf16 %v24_v46  ;;  %v70_v56 = vmul.f32 %v882_v48, %v32_v42  ;;  %v69_v2 = vmul.f32 %v892_v58, %v31_v41 }
   0xe   :  { %679 = vmatprep.subr.bf16.mxu1 %v714_v13  ;;  %v35_v43 = vunpack.c.l.bf16 %v25_v37  ;;  %v36_v44 = vunpack.c.h.bf16 %v25_v37  ;;  %v37_v52 = vunpack.c.l.bf16 %v26_v47  ;;  %v38_v53 = vunpack.c.h.bf16 %v26_v47  ;;  %v30_v28 = vld [vmem:[%s956_s2 + $0x38] sm:$0xff] }
   0xf   :  { %v72_v60 = vmul.f32 %v886_v54, %v34_v51  ;;  %v108_v0 = vadd.f32 %v884_v49, %v70_v56  ;;  %v71_v6 = vmul.f32 %v898_v62, %v33_v50  ;;  %v46_v39 = vunpack.c.h.bf16 %v30_v28 }
  0x10   :  { %652 = vmatpush3.bf16.msra.mxu0 %v715_v14  ;;  %v74_v57 = vmul.f32 %v882_v48, %v36_v44  ;;  %v76_v61 = vmul.f32 %v886_v54, %v38_v53  ;;  %v73_v3 = vmul.f32 %v892_v58, %v35_v43  ;;  %v75_v7 = vmul.f32 %v898_v62, %v37_v52 }
  0x11   :  { %680 = vmatpush3.bf16.msra.mxu1 %v716_v15  ;;  %653 = vmatprep.subr.bf16.mxu0 %v717_v16  ;;  %v110_v4 = vadd.f32 %v888_v55, %v72_v60  ;;  %vm124_vm0 = vcmp.gt.f32.partialorder %v108_v0, 0.0  ;;  %v140_v8 = vmul.f32 0.2, %v108_v0  ;;  %v107_v14 = vadd.f32 %v894_v59, %v69_v2 }
  0x12   :  { %681 = vmatprep.subr.bf16.mxu1 %v718_v17  ;;  %v112_v1 = vadd.f32 %v884_v49, %v74_v57  ;;  %v114_v5 = vadd.f32 %v888_v55, %v76_v61  ;;  %v111_v15 = vadd.f32 %v894_v59, %v73_v3  ;;  %v84_v47 = vmul.f32 %v886_v54, %v46_v39 }
  0x13   :  { %vm126_vm2 = vcmp.gt.f32.partialorder %v110_v4, 0.0  ;;  %v142_v10 = vmul.f32 0.2, %v110_v4  ;;  %v156_v12 = vsel %vm124_vm0, %v108_v0, %v140_v8  ;;  %vm123_vm4 = vcmp.gt.f32.partialorder %v107_v14, 0.0 }
  0x14   :  { %654 = vmatpush3.bf16.msra.mxu0 %v719_v18  ;;  %vm128_vm1 = vcmp.gt.f32.partialorder %v112_v1, 0.0  ;;  %v144_v9 = vmul.f32 0.2, %v112_v1  ;;  %vm130_vm3 = vcmp.gt.f32.partialorder %v114_v5, 0.0  ;;  %v146_v11 = vmul.f32 0.2, %v114_v5 }
  0x15   :  { %682 = vmatpush3.bf16.msra.mxu1 %v720_v19  ;;  %655 = vmatprep.subr.bf16.mxu0 %v721_v20  ;;  %v158_v17 = vsel %vm126_vm2, %v110_v4, %v142_v10  ;;  %v109_v19 = vadd.f32 %v900_v63, %v71_v6  ;;  %v27_v20 = vld [vmem:[%s956_s2 + $0x20] sm:$0xff]  ;;  %vm127_vm5 = vcmp.gt.f32.partialorder %v111_v15, 0.0  ;;  %v122_v57 = vadd.f32 %v888_v55, %v84_v47 }
  0x16   :  { %683 = vmatprep.subr.bf16.mxu1 %v722_v21  ;;  %v160_v13 = vsel %vm128_vm1, %v112_v1, %v144_v9  ;;  %v162_v18 = vsel %vm130_vm3, %v114_v5, %v146_v11  ;;  %v29_v21 = vld [vmem:[%s956_s2 + $0x30] sm:$0xff]  ;;  %v39_v42 = vunpack.c.l.bf16 %v27_v20  ;;  %v45_v1 = vunpack.c.l.bf16 %v30_v28 }
  0x17   :  { %v172_v16 = vpack.c.bf16 %v160_v13, %v156_v12  ;;  %v174_v23 = vpack.c.bf16 %v162_v18, %v158_v17  ;;  %vm125_vm6 = vcmp.gt.f32.partialorder %v109_v19, 0.0  ;;  %v43_v43 = vunpack.c.l.bf16 %v29_v21 }
  0x18   :  { %656 = vmatpush3.bf16.msra.mxu0 %v723_v22  ;;  %v28_v22 = vld [vmem:[%s956_s2 + $0x28] sm:$0xff]  ;;  %v77_v51 = vmul.f32 %v892_v58, %v39_v42  ;;  %vm138_vm11 = vcmp.gt.f32.partialorder %v122_v57, 0.0  ;;  %vm582_vm0 = vcmask 1040384  }
  0x19   :  { %684 = vmatpush3.bf16.msra.mxu1 %v724_v24  ;;  %657 = vmatprep.subr.bf16.mxu0 %v725_v25  ;;  %v139_v24 = vmul.f32 0.2, %v107_v14  ;;  %v143_v25 = vmul.f32 0.2, %v111_v15  ;;  %v41_v52 = vunpack.c.l.bf16 %v28_v22 }
  0x1a   :  { %685 = vmatprep.subr.bf16.mxu1 %v726_v26  ;;  %474 = vmatprep.mubr.bf16.mxu0 %v172_v16  ;;  %v113_v26 = vadd.f32 %v900_v63, %v75_v7  ;;  %v83_v7 = vmul.f32 %v898_v62, %v45_v1 }
  0x1b   :  { %523 = vmatprep.mubr.bf16.mxu1 %v174_v23  ;;  %v159_v33 = vsel %vm127_vm5, %v111_v15, %v143_v25 }
  0x1c   :  { %658 = vmatpush3.bf16.msra.mxu0 %v727_v27  ;;  %v141_v27 = vmul.f32 0.2, %v109_v19  ;;  %vm129_vm7 = vcmp.gt.f32.partialorder %v113_v26, 0.0  ;;  %v121_v12 = vadd.f32 %v900_v63, %v83_v7 }
  0x1d   :  { %686 = vmatpush3.bf16.msra.mxu1 %v728_v29  ;;  %659 = vmatprep.subr.bf16.mxu0 %v729_v30  ;;  %v155_v29 = vsel %vm123_vm4, %v107_v14, %v139_v24  ;;  %v40_v30 = vunpack.c.h.bf16 %v27_v20 }
  0x1e   :  { %687 = vmatprep.subr.bf16.mxu1 %v730_v31  ;;  %v44_v31 = vunpack.c.h.bf16 %v29_v21  ;;  %v157_v35 = vsel %vm125_vm6, %v109_v19, %v141_v27  ;;  %v171_v36 = vpack.c.bf16 %v159_v33, %v155_v29  ;;  %vm137_vm15 = vcmp.gt.f32.partialorder %v121_v12, 0.0 }
  0x1f   :  { %v78_v37 = vmul.f32 %v882_v48, %v40_v30  ;;  %v153_v14 = vmul.f32 0.2, %v121_v12 }
  0x20   :  { %660 = vmatpush3.bf16.msra.mxu0 %v731_v32  ;;  %v42_v32 = vunpack.c.h.bf16 %v28_v22  ;;  %v82_v38 = vmul.f32 %v882_v48, %v44_v31  ;;  %v81_v48 = vmul.f32 %v892_v58, %v43_v43  ;;  %v154_v58 = vmul.f32 0.2, %v122_v57 }
  0x21   :  { %688 = vmatpush3.bf16.msra.mxu1 %v732_v34  ;;  %v145_v34 = vmul.f32 0.2, %v113_v26  ;;  %v116_v45 = vadd.f32 %v884_v49, %v78_v37  ;;  %v169_v16 = vsel %vm137_vm15, %v121_v12, %v153_v14 }
  0x22   :  { %v80_v41 = vmul.f32 %v886_v54, %v42_v32  ;;  %v120_v46 = vadd.f32 %v884_v49, %v82_v38  ;;  %v115_v49 = vadd.f32 %v894_v59, %v77_v51  ;;  %v119_v0 = vadd.f32 %v894_v59, %v81_v48 }
  0x23   :  { %v161_v40 = vsel %vm129_vm7, %v113_v26, %v145_v34  ;;  %475 = vmatmul.mubr.bf16.vlgmr.msra.gmra.mrb[0].mxu0 %v171_v36  ;;  %vm132_vm8 = vcmp.gt.f32.partialorder %v116_v45, 0.0  ;;  %v148_v53 = vmul.f32 0.2, %v116_v45  ;;  %v170_v6 = vsel %vm138_vm11, %v122_v57, %v154_v58 }
  0x24   :  { %v173_v44 = vpack.c.bf16 %v161_v40, %v157_v35  ;;  %v118_v50 = vadd.f32 %v888_v55, %v80_v41  ;;  %vm136_vm9 = vcmp.gt.f32.partialorder %v120_v46, 0.0  ;;  %v152_v56 = vmul.f32 0.2, %v120_v46 }
  0x25   :  { %v164_v61 = vsel %vm132_vm8, %v116_v45, %v148_v53  ;;  %vm131_vm12 = vcmp.gt.f32.partialorder %v115_v49, 0.0  ;;  %vm135_vm13 = vcmp.gt.f32.partialorder %v119_v0, 0.0  ;;  %v147_v4 = vmul.f32 0.2, %v115_v49 }
  0x26   :  { %524 = vmatmul.mubr.bf16.vlgmr.msra.gmra.mrb[0].mxu1 %v173_v44  ;;  %vm134_vm10 = vcmp.gt.f32.partialorder %v118_v50, 0.0  ;;  %v150_v60 = vmul.f32 0.2, %v118_v50  ;;  %v168_v54 = vsel %vm136_vm9, %v120_v46, %v152_v56  ;;  %v151_v5 = vmul.f32 0.2, %v119_v0 }
  0x27   :  { %v176_v2 = vpack.c.bf16 %v168_v54, %v164_v61  ;;  %v79_v55 = vmul.f32 %v898_v62, %v41_v52  ;;  %v163_v9 = vsel %vm131_vm12, %v115_v49, %v147_v4  ;;  %v593_v62 = vld [vmem:[%s958_s4] ss:$0 sm:$0xff] }
  0x28   :  { %v166_v3 = vsel %vm134_vm10, %v118_v50, %v150_v60  ;;  %v167_v10 = vsel %vm135_vm13, %v119_v0, %v151_v5 }
  0x29   :  { %482 = vmatprep.mubr.bf16.mxu0 %v176_v2  ;;  %v178_v8 = vpack.c.bf16 %v170_v6, %v166_v3  ;;  %v175_v11 = vpack.c.bf16 %v167_v10, %v163_v9  ;;  %v117_v59 = vadd.f32 %v900_v63, %v79_v55 }
  0x2b   :  { %531 = vmatprep.mubr.bf16.mxu1 %v178_v8  ;;  %483 = vmatmul.mubr.bf16.gmra.mrb[4].mxu0 %v175_v11  ;;  %vm133_vm14 = vcmp.gt.f32.partialorder %v117_v59, 0.0  ;;  %v149_v13 = vmul.f32 0.2, %v117_v59 }
  0x2d   :  { %v165_v15 = vsel %vm133_vm14, %v117_v59, %v149_v13 }
  0x2e   :  { %v177_v17 = vpack.c.bf16 %v169_v16, %v165_v15 }
  0x30   :  { %532 = vmatmul.mubr.bf16.gmra.mrb[4].mxu1 %v177_v17 }
  0xf6   :  { %v661_v18 = vpop.f32.mrb[0].mxu0 }
  0xf7   :  { %v662_v19 = vpop.f32.mrb[1].mxu0 }
  0xf8   :  { %v663_v21 = vadd.f32 %v662_v19, %v661_v18  ;;  %v664_v22 = vpop.f32.mrb[2].mxu0 }
  0xf9   :  { %v689_v20 = vpop.f32.mrb[0].mxu1  ;;  %v665_v23 = vpop.f32.mrb[3].mxu0 }
  0xfa   :  { %v690_v63 = vpop.f32.mrb[1].mxu1  ;;  %v477_v24 = vadd.f32 %v663_v21, %v593_v62  ;;  %v666_v27 = vadd.f32 %v665_v23, %v664_v22 }
  0xfb   :  { %v691_v25 = vadd.f32 %v690_v63, %v689_v20  ;;  %v692_v26 = vpop.f32.mrb[2].mxu1 }
  0xfc   :  { %v693_v28 = vpop.f32.mrb[3].mxu1  ;;  %v480_v30 = vadd.f32 %v666_v27, %v593_v62 }
  0xfd   :  { %v526_v29 = vadd.f32 %v691_v25, %v477_v24  ;;  %v694_v31 = vadd.f32 %v693_v28, %v692_v26 }
  0xfe   :  { %v667_v37 = vpop.f32.mrb[4].mxu0 }
  0xff   :  { %v529_v32 = vadd.f32 %v694_v31, %v480_v30  ;;  %v569_v33 = vmul.f32 %v526_v29, %v526_v29  ;;  %v668_v39 = vpop.f32.mrb[5].mxu0 }
 0x100   :  { %v669_v40 = vadd.f32 %v668_v39, %v667_v37  ;;  %v670_v41 = vpop.f32.mrb[6].mxu0 }
 0x101   :  { %v637_v34 = vpack.c.bf16 %v529_v32, %v526_v29  ;;  %v560_v35 = vadd.f32 %v529_v32, %v526_v29  ;;  %v570_v36 = vmul.f32 %v529_v32, %v529_v32  ;;  %v671_v42 = vpop.f32.mrb[7].mxu0 }
 0x102   :  { %v672_v43 = vadd.f32 %v671_v42, %v670_v41  ;;  %v485_v45 = vadd.f32 %v669_v40, %v593_v62 }
 0x103   :  { %638 = vst [vmem:[%s959_s5] sm:$0xff] %v637_v34   ;;  %v573_v38 = vadd.f32 %v570_v36, %v569_v33  ;;  %v695_v44 = vpop.f32.mrb[4].mxu1 }
 0x104   :  { %v696_v46 = vpop.f32.mrb[5].mxu1  ;;  %v488_v51 = vadd.f32 %v672_v43, %v593_v62 }
 0x105   :  { %v697_v47 = vadd.f32 %v696_v46, %v695_v44  ;;  %v698_v50 = vpop.f32.mrb[6].mxu1 }
 0x106   :  { %v699_v48 = vpop.f32.mrb[7].mxu1 }
 0x107   :  { %v534_v52 = vadd.f32 %v697_v47, %v485_v45  ;;  %v700_v53 = vadd.f32 %v699_v48, %v698_v50 }
 0x109   :  { %v561_v56 = vadd.f32 %v560_v35, %v534_v52  ;;  %v571_v57 = vmul.f32 %v534_v52, %v534_v52  ;;  %v537_v60 = vadd.f32 %v700_v53, %v488_v51 }
 0x10b   :  { %v574_v49 = vadd.f32 %v573_v38, %v571_v57  ;;  %v642_v61 = vpack.c.bf16 %v537_v60, %v534_v52  ;;  %v562_v54 = vadd.f32 %v561_v56, %v537_v60  ;;  %v572_v0 = vmul.f32 %v537_v60, %v537_v60 }
 0x10d   :  { %644 = vst [vmem:[%s959_s5 + $0x8] sm:$0xff] %v642_v61   ;;  %v563_v1 = vrot.slane %v562_v54, 4  ;;  %v575_v2 = vadd.f32 %v574_v49, %v572_v0 }
 0x10f   :  { %v564_v58 = vadd.f32 %v563_v1, %v562_v54  ;;  %v576_v3 = vrot.slane %v575_v2, 4 }
 0x111   :  { %v565_v4 = vrot.slane %v564_v58, 2  ;;  %v577_v5 = vadd.f32 %v576_v3, %v575_v2 }
 0x113   :  { %v566_v6 = vadd.f32 %v565_v4, %v564_v58  ;;  %v578_v55 = vrot.slane %v577_v5, 2 }
 0x115   :  { %v567_v7 = vrot.slane %v566_v6, 1  ;;  %v579_v8 = vadd.f32 %v578_v55, %v577_v5 }
 0x117   :  { %v580_v9 = vrot.slane %v579_v8, 1  ;;  %v568_v10 = vadd.f32 %v567_v7, %v566_v6 }
 0x119   :  { %v581_v11 = vadd.f32 %v580_v9, %v579_v8 }
 0x11b   :  { %v583_v59 = vsel %vm582_vm0, %v568_v10, %v581_v11 }
 0x11c   :  { %584 = vst [vmem:[%s960_s6] sm:$0x3] %v583_v59 }

</bundles_post_ra>
